<compile_context>
chip_gen: v7x
topology: tpu7x:2x2x1
jax: 0.10.0
libtpu: 0.0.40
codegen_flags: <defaults>
</compile_context>

<pallas_src>
import jax
import jax.numpy as jnp
from jax.experimental import pallas as pl
from jax.experimental.pallas import tpu as pltpu

EPS = 1e-5            # nn.BatchNorm2d default eps
_KSIZE = 4            # every conv in the Discriminator is 4x4


def _round_up(x, m):
    return (x + m - 1) // m * m


# ----------------------------------------------------------------------------
# Pallas kernel: direct convolution for one batch element.
#   x_ref   : (1, Hs, Ws, Kin)      bf16 padded (and s2d'd for stride-2) slab
#   w_ref   : (taps, Kin, CoutP)    bf16 per-tap weight matrices
#   b_ref   : (1, CoutP)            f32 bias (only non-BN layers)
#   o_ref   : (1, OH*OW, CoutP)     raw conv output (bf16; f32 for sigmoid)
#   sum/m2  : (1, 1, CoutP)         per-batch-element BN partial stats
#   acc_ref : (OH*OW, CoutP) f32    VMEM accumulator scratch
# ----------------------------------------------------------------------------
def _make_conv_kernel(k_eff, OH, OW, kin, coutp, add_bias, with_stats, sigmoid):
    M = OH * OW
    inv_m = 1.0 / M

    def kernel(*refs):
        idx = 0
        x_ref = refs[idx]; idx += 1
        w_ref = refs[idx]; idx += 1
        b_ref = None
        if add_bias:
            b_ref = refs[idx]; idx += 1
        o_ref = refs[idx]; idx += 1
        sum_ref = m2_ref = None
        if with_stats:
            sum_ref = refs[idx]; m2_ref = refs[idx + 1]; idx += 2
        acc_ref = refs[idx]

        # Direct conv as k_eff*k_eff shifted-slab matmuls (stride-2 layers were
        # space-to-depth'd in the wrapper so every slice here is contiguous).
        for i in range(k_eff):
            for j in range(k_eff):
                t = i * k_eff + j
                xs = x_ref[0, i:i + OH, j:j + OW, :].reshape(M, kin)
                part = jnp.dot(xs, w_ref[t],
                               preferred_element_type=jnp.float32)
                if t == 0:
                    acc_ref[...] = part
                else:
                    acc_ref[...] += part

        y = acc_ref[...]                                    # (M, CoutP) f32
        if add_bias:
            y = y + b_ref[...]

        if with_stats:
            # Centered per-step stats (sum, M2) so the cross-batch merge in the
            # host glue is Chan/Welford-stable (no E[x^2]-E[x]^2 cancellation).
            s = jnp.sum(y, axis=0, keepdims=True)           # (1, CoutP)
            mu = s * inv_m
            d = y - mu
            m2 = jnp.sum(d * d, axis=0, keepdims=True)
            sum_ref[0] = s
            m2_ref[0] = m2

        if sigmoid:
            # Numerically-stable sigmoid; exp on the EUP, exact reciprocal.
            e = jnp.exp(-jnp.abs(y))
            r = pl.reciprocal(1.0 + e)
            y = jnp.where(y >= 0.0, r, e * r)

        o_ref[0] = y.astype(o_ref.dtype)

    return kernel


def _conv_layer(x_slab, w_taps, bias, *, OH, OW, k_eff, add_bias, with_stats,
                sigmoid, out_dtype):
    N, Hs, Ws, kin = x_slab.shape
    ktaps, _, coutp = w_taps.shape
    M = OH * OW
    out_bytes = jnp.dtype(out_dtype).itemsize

    out_shape = [jax.ShapeDtypeStruct((N, M, coutp), out_dtype)]
    out_specs = [pl.BlockSpec((1, M, coutp), lambda n: (n, 0, 0))]
    if with_stats:
        out_shape += [jax.ShapeDtypeStruct((N, 1, coutp), jnp.float32)] * 2
        out_specs += [pl.BlockSpec((1, 1, coutp), lambda n: (n, 0, 0)),
                      pl.BlockSpec((1, 1, coutp), lambda n: (n, 0, 0))]

    in_specs = [
        pl.BlockSpec((1, Hs, Ws, kin), lambda n: (n, 0, 0, 0)),
        # Constant index_map: the pipeline keeps the weight resident and never
        # re-DMAs it across grid steps.
        pl.BlockSpec((ktaps, kin, coutp), lambda n: (0, 0, 0)),
    ]
    args = [x_slab, w_taps]
    if add_bias:
        in_specs.append(pl.BlockSpec((1, coutp), lambda n: (0, 0)))
        args.append(bias)

    # Per-layer VMEM budget: double-buffered in/out slabs + weight + f32
    # accumulator scratch + headroom.
    est = (2 * Hs * Ws * kin * 2            # input slab (bf16) x2 buffers
           + 2 * ktaps * kin * coutp * 2    # weight (bf16)
           + 2 * M * coutp * out_bytes      # output slab
           + 6 * coutp * 4                  # bias + stats
           + M * coutp * 4)                 # accumulator scratch
    vmem_limit = int(min(96 * 1024 * 1024,
                         max(32 * 1024 * 1024, est * 13 // 10 + (4 << 20))))

    cost = pl.CostEstimate(
        flops=2 * N * M * kin * coutp * ktaps,
        transcendentals=(N * M * coutp if sigmoid else 0),
        bytes_accessed=(N * Hs * Ws * kin * 2 + ktaps * kin * coutp * 2
                        + N * M * coutp * out_bytes))

    return pl.pallas_call(
        _make_conv_kernel(k_eff, OH, OW, kin, coutp, add_bias, with_stats,
                          sigmoid),
        out_shape=tuple(out_shape),
        grid=(N,),
        in_specs=in_specs,
        out_specs=tuple(out_specs),
        scratch_shapes=[pltpu.VMEM((M, coutp), jnp.float32)],
        compiler_params=pltpu.CompilerParams(
            dimension_semantics=("parallel",),      # batch elems -> 2 TCs on v7x
            vmem_limit_bytes=vmem_limit),
        cost_estimate=cost,
    )(*args)


# ----------------------------------------------------------------------------
# JAX glue: padding, space-to-depth and weight re-layout.
# ----------------------------------------------------------------------------
def _prep_input_slab(h, stride, pad):
    """Zero-pad spatially; for stride-2 convs apply space-to-depth so the
    Pallas kernel only needs contiguous (stride-1) slices."""
    N, H, W, C = h.shape
    hp = jnp.pad(h, ((0, 0), (pad, pad), (pad, pad), (0, 0)))
    Hp, Wp = H + 2 * pad, W + 2 * pad
    if stride == 2:
        assert Hp % 2 == 0 and Wp % 2 == 0, "spatial size must be even"
        Hs, Ws = Hp // 2, Wp // 2
        hs = hp.reshape(N, Hs, 2, Ws, 2, C)
        hs = hs.transpose(0, 1, 3, 2, 4, 5).reshape(N, Hs, Ws, 4 * C)
        return hs, 4 * C, _KSIZE // 2
    return hp, C, _KSIZE


def _prep_weight(w, cin_pad, coutp, stride):
    """(4,4,Cin,Cout) weight -> (taps, K, CoutP) matching the (possibly
    space-to-depth'd) input slab layout."""
    kh, kw, cin, cout = w.shape
    w = jnp.pad(w, ((0, 0), (0, 0), (0, cin_pad - cin), (0, coutp - cout)))
    if stride == 2:
        # kh = 2*a + dh, kw = 2*b + dw ; s2d channel order is (dh, dw, ci).
        w = w.reshape(2, 2, 2, 2, cin_pad, coutp)        # (a, dh, b, dw, ci, co)
        w = w.transpose(0, 2, 1, 3, 4, 5)                # (a, b, dh, dw, ci, co)
        w = w.reshape(4, 4 * cin_pad, coutp)
    else:
        w = w.reshape(kh * kw, cin_pad, coutp)
    return w.astype(jnp.bfloat16)


# ----------------------------------------------------------------------------
# Parameters (deterministic; mirrors Discriminator.__init__ shapes).
# Conv weights stored as (KH, KW, Cin, Cout).
# ----------------------------------------------------------------------------
def init_discriminator_params(key, in_channels=3, out_channels=1, features=64):
    layer_io = [
        (in_channels * 2, features),       # conv1
        (features, features * 2),          # conv2
        (features * 2, features * 4),      # conv3
        (features * 4, features * 8),      # conv4
        (features * 8, out_channels),      # conv5
    ]
    params = []
    k = _KSIZE
    for (cin, cout) in layer_io:
        key, kw_, kb_ = jax.random.split(key, 3)
        fan_in = cin * k * k
        w = jax.random.normal(kw_, (k, k, cin, cout), jnp.float32) / jnp.sqrt(fan_in)
        b = 0.01 * jax.random.normal(kb_, (cout,), jnp.float32)
        params.append({
            "w": w,
            "b": b,
            "gamma": jnp.ones((cout,), jnp.float32),
            "beta": jnp.zeros((cout,), jnp.float32),
        })
    return params


# Per-layer config: (stride, pad, add_bias, batch_norm, sigmoid_epilogue)
# (the LeakyReLU on a layer's *input* is applied in the glue on the previous
#  layer's output, fused with the BN scale/shift, pad and space-to-depth).
_LAYER_CFG = [
    (2, 1, True,  False, False),   # conv1: act=False, bn=False
    (2, 1, False, True,  False),   # conv2
    (2, 1, False, True,  False),   # conv3
    (1, 1, False, True,  False),   # conv4: stride=1
    (1, 1, True,  False, True),    # conv5: stride=1, bn=False, + Sigmoid
]


@jax.jit
def discriminator_forward(x_nchw, label_nchw, params):
    # torch.cat([x, label], dim=1) ; NCHW -> NHWC ; bf16 activations.
    h = jnp.concatenate([x_nchw, label_nchw], axis=1)
    h = jnp.transpose(h, (0, 2, 3, 1))
    c0 = h.shape[-1]
    c0p = _round_up(c0, 8)
    h = jnp.pad(h, ((0, 0), (0, 0), (0, 0), (0, c0p - c0))).astype(jnp.bfloat16)

    n_layers = len(params)
    for li, ((stride, pad, add_bias, bn, sig), lp) in enumerate(
            zip(_LAYER_CFG, params)):
        N = h.shape[0]
        cin_pad = h.shape[-1]
        cout = lp["w"].shape[-1]
        coutp = _round_up(cout, 128)                      # lane-dense stores

        slab, kin, k_eff = _prep_input_slab(h, stride, pad)
        Hs, Ws = slab.shape[1], slab.shape[2]
        OH, OW = Hs - k_eff + 1, Ws - k_eff + 1
        M = OH * OW

        w_taps = _prep_weight(lp["w"], cin_pad, coutp, stride)
        bias = jnp.pad(lp["b"], (0, coutp - cout)).reshape(1, coutp)
        bias = bias.astype(jnp.float32)

        out_dtype = jnp.float32 if sig else jnp.bfloat16
        outs = _conv_layer(slab, w_taps, bias, OH=OH, OW=OW, k_eff=k_eff,
                           add_bias=add_bias, with_stats=bn, sigmoid=sig,
                           out_dtype=out_dtype)

        # Drop padded output channels immediately (never multiplied again).
        y = outs[0].reshape(N, OH, OW, coutp)[..., :cout]

        if li == n_layers - 1:
            h = y                              # sigmoid already applied (f32)
            break

        # Input transform for the next CBlock (conv2..conv5 all have act=True):
        # training-mode BatchNorm (when this layer has one) + LeakyReLU(0.2).
        # Fuses in XLA with the next layer's pad / s2d / bf16 cast.
        z = y.astype(jnp.float32)
        if bn:
            s_sum = outs[1][:, 0, :cout]                  # (N, cout)
            s_m2 = outs[2][:, 0, :cout]                   # (N, cout)
            mean_i = s_sum / M
            mean = jnp.sum(s_sum, axis=0) / (N * M)
            m2 = jnp.sum(s_m2, axis=0) + M * jnp.sum((mean_i - mean) ** 2, axis=0)
            var = m2 / (N * M)                            # biased, as torch
            inv = jax.lax.rsqrt(var + EPS)
            scale = lp["gamma"] * inv
            shift = lp["beta"] - mean * scale
            z = z * scale + shift
            # TODO(synk): BatchNorm running_mean/running_var are not tracked;
            # only the training-mode normalisation itself is reproduced.
        z = jnp.maximum(z, 0.2 * z)                        # LeakyReLU(0.2)
        h = z.astype(jnp.bfloat16)

    out = jnp.transpose(h, (0, 3, 1, 2))                   # NHWC -> NCHW
    return out.astype(jnp.float32)


if __name__ == "__main__":
    # Small but shape-consistent configuration: spatial >= 32 so the two
    # stride-1 (k=4, p=1) convs keep positive spatial size.
    batch, in_channels, spatial, features = 2, 3, 32, 8

    key = jax.random.PRNGKey(0)
    kx, kl, kp = jax.random.split(key, 3)
    x = jax.random.normal(kx, (batch, in_channels, spatial, spatial), jnp.float32)
    label = jax.random.normal(kl, (batch, in_channels, spatial, spatial), jnp.float32)

    params = init_discriminator_params(kp, in_channels=in_channels,
                                       out_channels=1, features=features)

    out = jax.block_until_ready(discriminator_forward(x, label, params))

    # Expected spatial chain: 32 -> 16 -> 8 -> 4 -> 3 -> 2  => (2, 1, 2, 2)
    assert out.shape == (batch, 1, 2, 2), out.shape
    assert bool(jnp.all(jnp.isfinite(out)))
    assert bool(jnp.all((out >= 0.0) & (out <= 1.0)))      # sigmoid range
    print("KERNEL_OK")
</pallas_src>

<mosaic_0001>
module attributes {stable_mosaic.version = 11 : i64} {
  func.func @kernel(%arg0: i32, %arg1: memref<1x17x17x32xbf16, #tpu.memory_space<vmem>>, %arg2: memref<4x32x128xbf16, #tpu.memory_space<vmem>>, %arg3: memref<1x128xf32, #tpu.memory_space<vmem>>, %arg4: memref<1x256x128xbf16, #tpu.memory_space<vmem>>, %arg5: memref<256x128xf32, #tpu.memory_space<vmem>>) attributes {dimension_semantics = [#tpu.dimension_semantics<parallel>], iteration_bounds = array<i64: 2>, scalar_prefetch = 0 : i64, scratch_operands = 1 : i64, tpu.core_type = #tpu.core_type<tc>, window_params = [{transform_indices = @transform_0, window_bounds = array<i64: 1, 17, 17, 32>}, {pipeline_mode = #tpu.pipeline_mode<synchronous>, transform_indices = @transform_1, window_bounds = array<i64: 4, 32, 128>}, {pipeline_mode = #tpu.pipeline_mode<synchronous>, transform_indices = @transform_2, window_bounds = array<i64: 1, 128>}, {transform_indices = @transform_3, window_bounds = array<i64: 1, 256, 128>}]} {
    %c0 = arith.constant 0 : index
    %c0_0 = arith.constant 0 : index
    %c0_1 = arith.constant 0 : index
    %c0_2 = arith.constant 0 : index
    %0 = vector.load %arg1[%c0, %c0_0, %c0_1, %c0_2] : memref<1x17x17x32xbf16, #tpu.memory_space<vmem>>, vector<1x16x16x32xbf16>
    %1 = vector.shape_cast %0 : vector<1x16x16x32xbf16> to vector<16x16x32xbf16>
    %2 = vector.shape_cast %1 : vector<16x16x32xbf16> to vector<256x32xbf16>
    %c0_3 = arith.constant 0 : index
    %c0_4 = arith.constant 0 : index
    %c0_5 = arith.constant 0 : index
    %3 = vector.load %arg2[%c0_3, %c0_4, %c0_5] : memref<4x32x128xbf16, #tpu.memory_space<vmem>>, vector<1x32x128xbf16>
    %4 = vector.shape_cast %3 : vector<1x32x128xbf16> to vector<32x128xbf16>
    %cst = arith.constant dense<0.000000e+00> : vector<256x128xf32>
    %5 = tpu.matmul %2, %4, %cst {dimension_numbers = #tpu.dot_dimension_numbers<[1], [0], [0], [1], [0, 0, 1, 1], [], []>} : vector<256x32xbf16>, vector<32x128xbf16>, vector<256x128xf32> -> vector<256x128xf32>
    %c0_6 = arith.constant 0 : index
    %c0_7 = arith.constant 0 : index
    %6 = vector.load %arg5[%c0_6, %c0_7] : memref<256x128xf32, #tpu.memory_space<vmem>>, vector<256x128xf32>
    tpu.vector_store %arg5[%c0_6, %c0_7], %5 {strides = array<i32>} : memref<256x128xf32, #tpu.memory_space<vmem>>, vector<256x128xf32>,
    %c0_8 = arith.constant 0 : index
    %c0_9 = arith.constant 0 : index
    %c1 = arith.constant 1 : index
    %c0_10 = arith.constant 0 : index
    %7 = vector.load %arg1[%c0_8, %c0_9, %c1, %c0_10] : memref<1x17x17x32xbf16, #tpu.memory_space<vmem>>, vector<1x16x16x32xbf16>
    %8 = vector.shape_cast %7 : vector<1x16x16x32xbf16> to vector<16x16x32xbf16>
    %9 = vector.shape_cast %8 : vector<16x16x32xbf16> to vector<256x32xbf16>
    %c1_11 = arith.constant 1 : index
    %c0_12 = arith.constant 0 : index
    %c0_13 = arith.constant 0 : index
    %10 = vector.load %arg2[%c1_11, %c0_12, %c0_13] : memref<4x32x128xbf16, #tpu.memory_space<vmem>>, vector<1x32x128xbf16>
    %11 = vector.shape_cast %10 : vector<1x32x128xbf16> to vector<32x128xbf16>
    %cst_14 = arith.constant dense<0.000000e+00> : vector<256x128xf32>
    %12 = tpu.matmul %9, %11, %cst_14 {dimension_numbers = #tpu.dot_dimension_numbers<[1], [0], [0], [1], [0, 0, 1, 1], [], []>} : vector<256x32xbf16>, vector<32x128xbf16>, vector<256x128xf32> -> vector<256x128xf32>
    %c0_15 = arith.constant 0 : index
    %c0_16 = arith.constant 0 : index
    %13 = vector.load %arg5[%c0_15, %c0_16] : memref<256x128xf32, #tpu.memory_space<vmem>>, vector<256x128xf32>
    %14 = arith.addf %13, %12 : vector<256x128xf32>
    %c0_17 = arith.constant 0 : index
    %c0_18 = arith.constant 0 : index
    %15 = vector.load %arg5[%c0_17, %c0_18] : memref<256x128xf32, #tpu.memory_space<vmem>>, vector<256x128xf32>
    tpu.vector_store %arg5[%c0_17, %c0_18], %14 {strides = array<i32>} : memref<256x128xf32, #tpu.memory_space<vmem>>, vector<256x128xf32>,
    %c0_19 = arith.constant 0 : index
    %c1_20 = arith.constant 1 : index
    %c0_21 = arith.constant 0 : index
    %c0_22 = arith.constant 0 : index
    %16 = vector.load %arg1[%c0_19, %c1_20, %c0_21, %c0_22] : memref<1x17x17x32xbf16, #tpu.memory_space<vmem>>, vector<1x16x16x32xbf16>
    %17 = vector.shape_cast %16 : vector<1x16x16x32xbf16> to vector<16x16x32xbf16>
    %18 = vector.shape_cast %17 : vector<16x16x32xbf16> to vector<256x32xbf16>
    %c2 = arith.constant 2 : index
    %c0_23 = arith.constant 0 : index
    %c0_24 = arith.constant 0 : index
    %19 = vector.load %arg2[%c2, %c0_23, %c0_24] : memref<4x32x128xbf16, #tpu.memory_space<vmem>>, vector<1x32x128xbf16>
    %20 = vector.shape_cast %19 : vector<1x32x128xbf16> to vector<32x128xbf16>
    %cst_25 = arith.constant dense<0.000000e+00> : vector<256x128xf32>
    %21 = tpu.matmul %18, %20, %cst_25 {dimension_numbers = #tpu.dot_dimension_numbers<[1], [0], [0], [1], [0, 0, 1, 1], [], []>} : vector<256x32xbf16>, vector<32x128xbf16>, vector<256x128xf32> -> vector<256x128xf32>
    %c0_26 = arith.constant 0 : index
    %c0_27 = arith.constant 0 : index
    %22 = vector.load %arg5[%c0_26, %c0_27] : memref<256x128xf32, #tpu.memory_space<vmem>>, vector<256x128xf32>
    %23 = arith.addf %22, %21 : vector<256x128xf32>
    %c0_28 = arith.constant 0 : index
    %c0_29 = arith.constant 0 : index
    %24 = vector.load %arg5[%c0_28, %c0_29] : memref<256x128xf32, #tpu.memory_space<vmem>>, vector<256x128xf32>
    tpu.vector_store %arg5[%c0_28, %c0_29], %23 {strides = array<i32>} : memref<256x128xf32, #tpu.memory_space<vmem>>, vector<256x128xf32>,
    %c0_30 = arith.constant 0 : index
    %c1_31 = arith.constant 1 : index
    %c1_32 = arith.constant 1 : index
    %c0_33 = arith.constant 0 : index
    %25 = vector.load %arg1[%c0_30, %c1_31, %c1_32, %c0_33] : memref<1x17x17x32xbf16, #tpu.memory_space<vmem>>, vector<1x16x16x32xbf16>
    %26 = vector.shape_cast %25 : vector<1x16x16x32xbf16> to vector<16x16x32xbf16>
    %27 = vector.shape_cast %26 : vector<16x16x32xbf16> to vector<256x32xbf16>
    %c3 = arith.constant 3 : index
    %c0_34 = arith.constant 0 : index
    %c0_35 = arith.constant 0 : index
    %28 = vector.load %arg2[%c3, %c0_34, %c0_35] : memref<4x32x128xbf16, #tpu.memory_space<vmem>>, vector<1x32x128xbf16>
    %29 = vector.shape_cast %28 : vector<1x32x128xbf16> to vector<32x128xbf16>
    %cst_36 = arith.constant dense<0.000000e+00> : vector<256x128xf32>
    %30 = tpu.matmul %27, %29, %cst_36 {dimension_numbers = #tpu.dot_dimension_numbers<[1], [0], [0], [1], [0, 0, 1, 1], [], []>} : vector<256x32xbf16>, vector<32x128xbf16>, vector<256x128xf32> -> vector<256x128xf32>
    %c0_37 = arith.constant 0 : index
    %c0_38 = arith.constant 0 : index
    %31 = vector.load %arg5[%c0_37, %c0_38] : memref<256x128xf32, #tpu.memory_space<vmem>>, vector<256x128xf32>
    %32 = arith.addf %31, %30 : vector<256x128xf32>
    %c0_39 = arith.constant 0 : index
    %c0_40 = arith.constant 0 : index
    %33 = vector.load %arg5[%c0_39, %c0_40] : memref<256x128xf32, #tpu.memory_space<vmem>>, vector<256x128xf32>
    tpu.vector_store %arg5[%c0_39, %c0_40], %32 {strides = array<i32>} : memref<256x128xf32, #tpu.memory_space<vmem>>, vector<256x128xf32>,
    %c0_41 = arith.constant 0 : index
    %c0_42 = arith.constant 0 : index
    %34 = vector.load %arg5[%c0_41, %c0_42] : memref<256x128xf32, #tpu.memory_space<vmem>>, vector<256x128xf32>
    %c0_43 = arith.constant 0 : index
    %c0_44 = arith.constant 0 : index
    %35 = vector.load %arg3[%c0_43, %c0_44] : memref<1x128xf32, #tpu.memory_space<vmem>>, vector<1x128xf32>
    %36 = vector.broadcast %35 : vector<1x128xf32> to vector<256x128xf32>
    %37 = arith.addf %34, %36 : vector<256x128xf32>
    %38 = arith.truncf %37 : vector<256x128xf32> to vector<256x128xbf16>
    %c0_45 = arith.constant 0 : index
    %c0_46 = arith.constant 0 : index
    %c0_47 = arith.constant 0 : index
    %39 = vector.load %arg4[%c0_45, %c0_46, %c0_47] : memref<1x256x128xbf16, #tpu.memory_space<vmem>>, vector<1x256x128xbf16>
    %40 = vector.shape_cast %39 : vector<1x256x128xbf16> to vector<256x128xbf16>
    %41 = vector.shape_cast %38 : vector<256x128xbf16> to vector<1x256x128xbf16>
    tpu.vector_store %arg4[%c0_45, %c0_46, %c0_47], %41 {strides = array<i32>} : memref<1x256x128xbf16, #tpu.memory_space<vmem>>, vector<1x256x128xbf16>,
    return
  }
  func.func @transform_0(%arg0: i32) -> (i32, i32, i32, i32) {
    %c0_i32 = arith.constant 0 : i32
    %c0_i32_0 = arith.constant 0 : i32
    %c0_i32_1 = arith.constant 0 : i32
    %c0_i32_2 = arith.constant 0 : i32
    return %arg0, %c0_i32, %c0_i32_0, %c0_i32_1 : i32, i32, i32, i32
  }
  func.func @transform_1(%arg0: i32) -> (i32, i32, i32) {
    %c0_i32 = arith.constant 0 : i32
    %c0_i32_0 = arith.constant 0 : i32
    %c0_i32_1 = arith.constant 0 : i32
    %c0_i32_2 = arith.constant 0 : i32
    return %c0_i32, %c0_i32_0, %c0_i32_1 : i32, i32, i32
  }
  func.func @transform_2(%arg0: i32) -> (i32, i32) {
    %c0_i32 = arith.constant 0 : i32
    %c0_i32_0 = arith.constant 0 : i32
    %c0_i32_1 = arith.constant 0 : i32
    return %c0_i32, %c0_i32_0 : i32, i32
  }
  func.func @transform_3(%arg0: i32) -> (i32, i32, i32) {
    %c0_i32 = arith.constant 0 : i32
    %c0_i32_0 = arith.constant 0 : i32
    %c0_i32_1 = arith.constant 0 : i32
    return %arg0, %c0_i32, %c0_i32_0 : i32, i32, i32
  }
}

module attributes {stable_mosaic.version = 11 : i64} {
  func.func @kernel(%arg0: i32, %arg1: memref<1x9x9x32xbf16, #tpu.memory_space<vmem>>, %arg2: memref<4x32x128xbf16, #tpu.memory_space<vmem>>, %arg3: memref<1x64x128xbf16, #tpu.memory_space<vmem>>, %arg4: memref<1x1x128xf32, #tpu.memory_space<vmem>>, %arg5: memref<1x1x128xf32, #tpu.memory_space<vmem>>, %arg6: memref<64x128xf32, #tpu.memory_space<vmem>>) attributes {dimension_semantics = [#tpu.dimension_semantics<parallel>], iteration_bounds = array<i64: 2>, scalar_prefetch = 0 : i64, scratch_operands = 1 : i64, tpu.core_type = #tpu.core_type<tc>, window_params = [{transform_indices = @transform_0, window_bounds = array<i64: 1, 9, 9, 32>}, {pipeline_mode = #tpu.pipeline_mode<synchronous>, transform_indices = @transform_1, window_bounds = array<i64: 4, 32, 128>}, {transform_indices = @transform_2, window_bounds = array<i64: 1, 64, 128>}, {transform_indices = @transform_3, window_bounds = array<i64: 1, 1, 128>}, {transform_indices = @transform_4, window_bounds = array<i64: 1, 1, 128>}]} {
    %c0 = arith.constant 0 : index
    %c0_0 = arith.constant 0 : index
    %c0_1 = arith.constant 0 : index
    %c0_2 = arith.constant 0 : index
    %0 = vector.load %arg1[%c0, %c0_0, %c0_1, %c0_2] : memref<1x9x9x32xbf16, #tpu.memory_space<vmem>>, vector<1x8x8x32xbf16>
    %1 = vector.shape_cast %0 : vector<1x8x8x32xbf16> to vector<8x8x32xbf16>
    %2 = vector.shape_cast %1 : vector<8x8x32xbf16> to vector<64x32xbf16>
    %c0_3 = arith.constant 0 : index
    %c0_4 = arith.constant 0 : index
    %c0_5 = arith.constant 0 : index
    %3 = vector.load %arg2[%c0_3, %c0_4, %c0_5] : memref<4x32x128xbf16, #tpu.memory_space<vmem>>, vector<1x32x128xbf16>
    %4 = vector.shape_cast %3 : vector<1x32x128xbf16> to vector<32x128xbf16>
    %cst = arith.constant dense<0.000000e+00> : vector<64x128xf32>
    %5 = tpu.matmul %2, %4, %cst {dimension_numbers = #tpu.dot_dimension_numbers<[1], [0], [0], [1], [0, 0, 1, 1], [], []>} : vector<64x32xbf16>, vector<32x128xbf16>, vector<64x128xf32> -> vector<64x128xf32>
    %c0_6 = arith.constant 0 : index
    %c0_7 = arith.constant 0 : index
    %6 = vector.load %arg6[%c0_6, %c0_7] : memref<64x128xf32, #tpu.memory_space<vmem>>, vector<64x128xf32>
    tpu.vector_store %arg6[%c0_6, %c0_7], %5 {strides = array<i32>} : memref<64x128xf32, #tpu.memory_space<vmem>>, vector<64x128xf32>,
    %c0_8 = arith.constant 0 : index
    %c0_9 = arith.constant 0 : index
    %c1 = arith.constant 1 : index
    %c0_10 = arith.constant 0 : index
    %7 = vector.load %arg1[%c0_8, %c0_9, %c1, %c0_10] : memref<1x9x9x32xbf16, #tpu.memory_space<vmem>>, vector<1x8x8x32xbf16>
    %8 = vector.shape_cast %7 : vector<1x8x8x32xbf16> to vector<8x8x32xbf16>
    %9 = vector.shape_cast %8 : vector<8x8x32xbf16> to vector<64x32xbf16>
    %c1_11 = arith.constant 1 : index
    %c0_12 = arith.constant 0 : index
    %c0_13 = arith.constant 0 : index
    %10 = vector.load %arg2[%c1_11, %c0_12, %c0_13] : memref<4x32x128xbf16, #tpu.memory_space<vmem>>, vector<1x32x128xbf16>
    %11 = vector.shape_cast %10 : vector<1x32x128xbf16> to vector<32x128xbf16>
    %cst_14 = arith.constant dense<0.000000e+00> : vector<64x128xf32>
    %12 = tpu.matmul %9, %11, %cst_14 {dimension_numbers = #tpu.dot_dimension_numbers<[1], [0], [0], [1], [0, 0, 1, 1], [], []>} : vector<64x32xbf16>, vector<32x128xbf16>, vector<64x128xf32> -> vector<64x128xf32>
    %c0_15 = arith.constant 0 : index
    %c0_16 = arith.constant 0 : index
    %13 = vector.load %arg6[%c0_15, %c0_16] : memref<64x128xf32, #tpu.memory_space<vmem>>, vector<64x128xf32>
    %14 = arith.addf %13, %12 : vector<64x128xf32>
    %c0_17 = arith.constant 0 : index
    %c0_18 = arith.constant 0 : index
    %15 = vector.load %arg6[%c0_17, %c0_18] : memref<64x128xf32, #tpu.memory_space<vmem>>, vector<64x128xf32>
    tpu.vector_store %arg6[%c0_17, %c0_18], %14 {strides = array<i32>} : memref<64x128xf32, #tpu.memory_space<vmem>>, vector<64x128xf32>,
    %c0_19 = arith.constant 0 : index
    %c1_20 = arith.constant 1 : index
    %c0_21 = arith.constant 0 : index
    %c0_22 = arith.constant 0 : index
    %16 = vector.load %arg1[%c0_19, %c1_20, %c0_21, %c0_22] : memref<1x9x9x32xbf16, #tpu.memory_space<vmem>>, vector<1x8x8x32xbf16>
    %17 = vector.shape_cast %16 : vector<1x8x8x32xbf16> to vector<8x8x32xbf16>
    %18 = vector.shape_cast %17 : vector<8x8x32xbf16> to vector<64x32xbf16>
    %c2 = arith.constant 2 : index
    %c0_23 = arith.constant 0 : index
    %c0_24 = arith.constant 0 : index
    %19 = vector.load %arg2[%c2, %c0_23, %c0_24] : memref<4x32x128xbf16, #tpu.memory_space<vmem>>, vector<1x32x128xbf16>
    %20 = vector.shape_cast %19 : vector<1x32x128xbf16> to vector<32x128xbf16>
    %cst_25 = arith.constant dense<0.000000e+00> : vector<64x128xf32>
    %21 = tpu.matmul %18, %20, %cst_25 {dimension_numbers = #tpu.dot_dimension_numbers<[1], [0], [0], [1], [0, 0, 1, 1], [], []>} : vector<64x32xbf16>, vector<32x128xbf16>, vector<64x128xf32> -> vector<64x128xf32>
    %c0_26 = arith.constant 0 : index
    %c0_27 = arith.constant 0 : index
    %22 = vector.load %arg6[%c0_26, %c0_27] : memref<64x128xf32, #tpu.memory_space<vmem>>, vector<64x128xf32>
    %23 = arith.addf %22, %21 : vector<64x128xf32>
    %c0_28 = arith.constant 0 : index
    %c0_29 = arith.constant 0 : index
    %24 = vector.load %arg6[%c0_28, %c0_29] : memref<64x128xf32, #tpu.memory_space<vmem>>, vector<64x128xf32>
    tpu.vector_store %arg6[%c0_28, %c0_29], %23 {strides = array<i32>} : memref<64x128xf32, #tpu.memory_space<vmem>>, vector<64x128xf32>,
    %c0_30 = arith.constant 0 : index
    %c1_31 = arith.constant 1 : index
    %c1_32 = arith.constant 1 : index
    %c0_33 = arith.constant 0 : index
    %25 = vector.load %arg1[%c0_30, %c1_31, %c1_32, %c0_33] : memref<1x9x9x32xbf16, #tpu.memory_space<vmem>>, vector<1x8x8x32xbf16>
    %26 = vector.shape_cast %25 : vector<1x8x8x32xbf16> to vector<8x8x32xbf16>
    %27 = vector.shape_cast %26 : vector<8x8x32xbf16> to vector<64x32xbf16>
    %c3 = arith.constant 3 : index
    %c0_34 = arith.constant 0 : index
    %c0_35 = arith.constant 0 : index
    %28 = vector.load %arg2[%c3, %c0_34, %c0_35] : memref<4x32x128xbf16, #tpu.memory_space<vmem>>, vector<1x32x128xbf16>
    %29 = vector.shape_cast %28 : vector<1x32x128xbf16> to vector<32x128xbf16>
    %cst_36 = arith.constant dense<0.000000e+00> : vector<64x128xf32>
    %30 = tpu.matmul %27, %29, %cst_36 {dimension_numbers = #tpu.dot_dimension_numbers<[1], [0], [0], [1], [0, 0, 1, 1], [], []>} : vector<64x32xbf16>, vector<32x128xbf16>, vector<64x128xf32> -> vector<64x128xf32>
    %c0_37 = arith.constant 0 : index
    %c0_38 = arith.constant 0 : index
    %31 = vector.load %arg6[%c0_37, %c0_38] : memref<64x128xf32, #tpu.memory_space<vmem>>, vector<64x128xf32>
    %32 = arith.addf %31, %30 : vector<64x128xf32>
    %c0_39 = arith.constant 0 : index
    %c0_40 = arith.constant 0 : index
    %33 = vector.load %arg6[%c0_39, %c0_40] : memref<64x128xf32, #tpu.memory_space<vmem>>, vector<64x128xf32>
    tpu.vector_store %arg6[%c0_39, %c0_40], %32 {strides = array<i32>} : memref<64x128xf32, #tpu.memory_space<vmem>>, vector<64x128xf32>,
    %c0_41 = arith.constant 0 : index
    %c0_42 = arith.constant 0 : index
    %34 = vector.load %arg6[%c0_41, %c0_42] : memref<64x128xf32, #tpu.memory_space<vmem>>, vector<64x128xf32>
    %cst_43 = arith.constant dense<0.000000e+00> : vector<128xf32>
    %35 = vector.multi_reduction <add>, %34, %cst_43 [0] : vector<64x128xf32> to vector<128xf32>
    %36 = vector.shape_cast %35 : vector<128xf32> to vector<1x128xf32>
    %cst_44 = arith.constant 1.562500e-02 : f32
    %37 = vector.broadcast %cst_44 : f32 to vector<1x128xf32>
    %38 = arith.mulf %36, %37 : vector<1x128xf32>
    %39 = vector.broadcast %38 : vector<1x128xf32> to vector<64x128xf32>
    %40 = arith.subf %34, %39 : vector<64x128xf32>
    %41 = arith.mulf %40, %40 : vector<64x128xf32>
    %cst_45 = arith.constant dense<0.000000e+00> : vector<128xf32>
    %42 = vector.multi_reduction <add>, %41, %cst_45 [0] : vector<64x128xf32> to vector<128xf32>
    %43 = vector.shape_cast %42 : vector<128xf32> to vector<1x128xf32>
    %c0_46 = arith.constant 0 : index
    %c0_47 = arith.constant 0 : index
    %c0_48 = arith.constant 0 : index
    %44 = vector.load %arg4[%c0_46, %c0_47, %c0_48] : memref<1x1x128xf32, #tpu.memory_space<vmem>>, vector<1x1x128xf32>
    %45 = vector.shape_cast %44 : vector<1x1x128xf32> to vector<1x128xf32>
    %46 = vector.shape_cast %36 : vector<1x128xf32> to vector<1x1x128xf32>
    tpu.vector_store %arg4[%c0_46, %c0_47, %c0_48], %46 {strides = array<i32>} : memref<1x1x128xf32, #tpu.memory_space<vmem>>, vector<1x1x128xf32>,
    %c0_49 = arith.constant 0 : index
    %c0_50 = arith.constant 0 : index
    %c0_51 = arith.constant 0 : index
    %47 = vector.load %arg5[%c0_49, %c0_50, %c0_51] : memref<1x1x128xf32, #tpu.memory_space<vmem>>, vector<1x1x128xf32>
    %48 = vector.shape_cast %47 : vector<1x1x128xf32> to vector<1x128xf32>
    %49 = vector.shape_cast %43 : vector<1x128xf32> to vector<1x1x128xf32>
    tpu.vector_store %arg5[%c0_49, %c0_50, %c0_51], %49 {strides = array<i32>} : memref<1x1x128xf32, #tpu.memory_space<vmem>>, vector<1x1x128xf32>,
    %50 = arith.truncf %34 : vector<64x128xf32> to vector<64x128xbf16>
    %c0_52 = arith.constant 0 : index
    %c0_53 = arith.constant 0 : index
    %c0_54 = arith.constant 0 : index
    %51 = vector.load %arg3[%c0_52, %c0_53, %c0_54] : memref<1x64x128xbf16, #tpu.memory_space<vmem>>, vector<1x64x128xbf16>
    %52 = vector.shape_cast %51 : vector<1x64x128xbf16> to vector<64x128xbf16>
    %53 = vector.shape_cast %50 : vector<64x128xbf16> to vector<1x64x128xbf16>
    tpu.vector_store %arg3[%c0_52, %c0_53, %c0_54], %53 {strides = array<i32>} : memref<1x64x128xbf16, #tpu.memory_space<vmem>>, vector<1x64x128xbf16>,
    return
  }
  func.func @transform_0(%arg0: i32) -> (i32, i32, i32, i32) {
    %c0_i32 = arith.constant 0 : i32
    %c0_i32_0 = arith.constant 0 : i32
    %c0_i32_1 = arith.constant 0 : i32
    %c0_i32_2 = arith.constant 0 : i32
    return %arg0, %c0_i32, %c0_i32_0, %c0_i32_1 : i32, i32, i32, i32
  }
  func.func @transform_1(%arg0: i32) -> (i32, i32, i32) {
    %c0_i32 = arith.constant 0 : i32
    %c0_i32_0 = arith.constant 0 : i32
    %c0_i32_1 = arith.constant 0 : i32
    %c0_i32_2 = arith.constant 0 : i32
    return %c0_i32, %c0_i32_0, %c0_i32_1 : i32, i32, i32
  }
  func.func @transform_2(%arg0: i32) -> (i32, i32, i32) {
    %c0_i32 = arith.constant 0 : i32
    %c0_i32_0 = arith.constant 0 : i32
    %c0_i32_1 = arith.constant 0 : i32
    return %arg0, %c0_i32, %c0_i32_0 : i32, i32, i32
  }
  func.func @transform_3(%arg0: i32) -> (i32, i32, i32) {
    %c0_i32 = arith.constant 0 : i32
    %c0_i32_0 = arith.constant 0 : i32
    %c0_i32_1 = arith.constant 0 : i32
    return %arg0, %c0_i32, %c0_i32_0 : i32, i32, i32
  }
  func.func @transform_4(%arg0: i32) -> (i32, i32, i32) {
    %c0_i32 = arith.constant 0 : i32
    %c0_i32_0 = arith.constant 0 : i32
    %c0_i32_1 = arith.constant 0 : i32
    return %arg0, %c0_i32, %c0_i32_0 : i32, i32, i32
  }
}

module attributes {stable_mosaic.version = 11 : i64} {
  func.func @kernel(%arg0: i32, %arg1: memref<1x5x5x64xbf16, #tpu.memory_space<vmem>>, %arg2: memref<4x64x128xbf16, #tpu.memory_space<vmem>>, %arg3: memref<1x16x128xbf16, #tpu.memory_space<vmem>>, %arg4: memref<1x1x128xf32, #tpu.memory_space<vmem>>, %arg5: memref<1x1x128xf32, #tpu.memory_space<vmem>>, %arg6: memref<16x128xf32, #tpu.memory_space<vmem>>) attributes {dimension_semantics = [#tpu.dimension_semantics<parallel>], iteration_bounds = array<i64: 2>, scalar_prefetch = 0 : i64, scratch_operands = 1 : i64, tpu.core_type = #tpu.core_type<tc>, window_params = [{transform_indices = @transform_0, window_bounds = array<i64: 1, 5, 5, 64>}, {pipeline_mode = #tpu.pipeline_mode<synchronous>, transform_indices = @transform_1, window_bounds = array<i64: 4, 64, 128>}, {transform_indices = @transform_2, window_bounds = array<i64: 1, 16, 128>}, {transform_indices = @transform_3, window_bounds = array<i64: 1, 1, 128>}, {transform_indices = @transform_4, window_bounds = array<i64: 1, 1, 128>}]} {
    %c0 = arith.constant 0 : index
    %c0_0 = arith.constant 0 : index
    %c0_1 = arith.constant 0 : index
    %c0_2 = arith.constant 0 : index
    %0 = vector.load %arg1[%c0, %c0_0, %c0_1, %c0_2] : memref<1x5x5x64xbf16, #tpu.memory_space<vmem>>, vector<1x4x4x64xbf16>
    %1 = vector.shape_cast %0 : vector<1x4x4x64xbf16> to vector<4x4x64xbf16>
    %2 = vector.shape_cast %1 : vector<4x4x64xbf16> to vector<16x64xbf16>
    %c0_3 = arith.constant 0 : index
    %c0_4 = arith.constant 0 : index
    %c0_5 = arith.constant 0 : index
    %3 = vector.load %arg2[%c0_3, %c0_4, %c0_5] : memref<4x64x128xbf16, #tpu.memory_space<vmem>>, vector<1x64x128xbf16>
    %4 = vector.shape_cast %3 : vector<1x64x128xbf16> to vector<64x128xbf16>
    %cst = arith.constant dense<0.000000e+00> : vector<16x128xf32>
    %5 = tpu.matmul %2, %4, %cst {dimension_numbers = #tpu.dot_dimension_numbers<[1], [0], [0], [1], [0, 0, 1, 1], [], []>} : vector<16x64xbf16>, vector<64x128xbf16>, vector<16x128xf32> -> vector<16x128xf32>
    %c0_6 = arith.constant 0 : index
    %c0_7 = arith.constant 0 : index
    %6 = vector.load %arg6[%c0_6, %c0_7] : memref<16x128xf32, #tpu.memory_space<vmem>>, vector<16x128xf32>
    tpu.vector_store %arg6[%c0_6, %c0_7], %5 {strides = array<i32>} : memref<16x128xf32, #tpu.memory_space<vmem>>, vector<16x128xf32>,
    %c0_8 = arith.constant 0 : index
    %c0_9 = arith.constant 0 : index
    %c1 = arith.constant 1 : index
    %c0_10 = arith.constant 0 : index
    %7 = vector.load %arg1[%c0_8, %c0_9, %c1, %c0_10] : memref<1x5x5x64xbf16, #tpu.memory_space<vmem>>, vector<1x4x4x64xbf16>
    %8 = vector.shape_cast %7 : vector<1x4x4x64xbf16> to vector<4x4x64xbf16>
    %9 = vector.shape_cast %8 : vector<4x4x64xbf16> to vector<16x64xbf16>
    %c1_11 = arith.constant 1 : index
    %c0_12 = arith.constant 0 : index
    %c0_13 = arith.constant 0 : index
    %10 = vector.load %arg2[%c1_11, %c0_12, %c0_13] : memref<4x64x128xbf16, #tpu.memory_space<vmem>>, vector<1x64x128xbf16>
    %11 = vector.shape_cast %10 : vector<1x64x128xbf16> to vector<64x128xbf16>
    %cst_14 = arith.constant dense<0.000000e+00> : vector<16x128xf32>
    %12 = tpu.matmul %9, %11, %cst_14 {dimension_numbers = #tpu.dot_dimension_numbers<[1], [0], [0], [1], [0, 0, 1, 1], [], []>} : vector<16x64xbf16>, vector<64x128xbf16>, vector<16x128xf32> -> vector<16x128xf32>
    %c0_15 = arith.constant 0 : index
    %c0_16 = arith.constant 0 : index
    %13 = vector.load %arg6[%c0_15, %c0_16] : memref<16x128xf32, #tpu.memory_space<vmem>>, vector<16x128xf32>
    %14 = arith.addf %13, %12 : vector<16x128xf32>
    %c0_17 = arith.constant 0 : index
    %c0_18 = arith.constant 0 : index
    %15 = vector.load %arg6[%c0_17, %c0_18] : memref<16x128xf32, #tpu.memory_space<vmem>>, vector<16x128xf32>
    tpu.vector_store %arg6[%c0_17, %c0_18], %14 {strides = array<i32>} : memref<16x128xf32, #tpu.memory_space<vmem>>, vector<16x128xf32>,
    %c0_19 = arith.constant 0 : index
    %c1_20 = arith.constant 1 : index
    %c0_21 = arith.constant 0 : index
    %c0_22 = arith.constant 0 : index
    %16 = vector.load %arg1[%c0_19, %c1_20, %c0_21, %c0_22] : memref<1x5x5x64xbf16, #tpu.memory_space<vmem>>, vector<1x4x4x64xbf16>
    %17 = vector.shape_cast %16 : vector<1x4x4x64xbf16> to vector<4x4x64xbf16>
    %18 = vector.shape_cast %17 : vector<4x4x64xbf16> to vector<16x64xbf16>
    %c2 = arith.constant 2 : index
    %c0_23 = arith.constant 0 : index
    %c0_24 = arith.constant 0 : index
    %19 = vector.load %arg2[%c2, %c0_23, %c0_24] : memref<4x64x128xbf16, #tpu.memory_space<vmem>>, vector<1x64x128xbf16>
    %20 = vector.shape_cast %19 : vector<1x64x128xbf16> to vector<64x128xbf16>
    %cst_25 = arith.constant dense<0.000000e+00> : vector<16x128xf32>
    %21 = tpu.matmul %18, %20, %cst_25 {dimension_numbers = #tpu.dot_dimension_numbers<[1], [0], [0], [1], [0, 0, 1, 1], [], []>} : vector<16x64xbf16>, vector<64x128xbf16>, vector<16x128xf32> -> vector<16x128xf32>
    %c0_26 = arith.constant 0 : index
    %c0_27 = arith.constant 0 : index
    %22 = vector.load %arg6[%c0_26, %c0_27] : memref<16x128xf32, #tpu.memory_space<vmem>>, vector<16x128xf32>
    %23 = arith.addf %22, %21 : vector<16x128xf32>
    %c0_28 = arith.constant 0 : index
    %c0_29 = arith.constant 0 : index
    %24 = vector.load %arg6[%c0_28, %c0_29] : memref<16x128xf32, #tpu.memory_space<vmem>>, vector<16x128xf32>
    tpu.vector_store %arg6[%c0_28, %c0_29], %23 {strides = array<i32>} : memref<16x128xf32, #tpu.memory_space<vmem>>, vector<16x128xf32>,
    %c0_30 = arith.constant 0 : index
    %c1_31 = arith.constant 1 : index
    %c1_32 = arith.constant 1 : index
    %c0_33 = arith.constant 0 : index
    %25 = vector.load %arg1[%c0_30, %c1_31, %c1_32, %c0_33] : memref<1x5x5x64xbf16, #tpu.memory_space<vmem>>, vector<1x4x4x64xbf16>
    %26 = vector.shape_cast %25 : vector<1x4x4x64xbf16> to vector<4x4x64xbf16>
    %27 = vector.shape_cast %26 : vector<4x4x64xbf16> to vector<16x64xbf16>
    %c3 = arith.constant 3 : index
    %c0_34 = arith.constant 0 : index
    %c0_35 = arith.constant 0 : index
    %28 = vector.load %arg2[%c3, %c0_34, %c0_35] : memref<4x64x128xbf16, #tpu.memory_space<vmem>>, vector<1x64x128xbf16>
    %29 = vector.shape_cast %28 : vector<1x64x128xbf16> to vector<64x128xbf16>
    %cst_36 = arith.constant dense<0.000000e+00> : vector<16x128xf32>
    %30 = tpu.matmul %27, %29, %cst_36 {dimension_numbers = #tpu.dot_dimension_numbers<[1], [0], [0], [1], [0, 0, 1, 1], [], []>} : vector<16x64xbf16>, vector<64x128xbf16>, vector<16x128xf32> -> vector<16x128xf32>
    %c0_37 = arith.constant 0 : index
    %c0_38 = arith.constant 0 : index
    %31 = vector.load %arg6[%c0_37, %c0_38] : memref<16x128xf32, #tpu.memory_space<vmem>>, vector<16x128xf32>
    %32 = arith.addf %31, %30 : vector<16x128xf32>
    %c0_39 = arith.constant 0 : index
    %c0_40 = arith.constant 0 : index
    %33 = vector.load %arg6[%c0_39, %c0_40] : memref<16x128xf32, #tpu.memory_space<vmem>>, vector<16x128xf32>
    tpu.vector_store %arg6[%c0_39, %c0_40], %32 {strides = array<i32>} : memref<16x128xf32, #tpu.memory_space<vmem>>, vector<16x128xf32>,
    %c0_41 = arith.constant 0 : index
    %c0_42 = arith.constant 0 : index
    %34 = vector.load %arg6[%c0_41, %c0_42] : memref<16x128xf32, #tpu.memory_space<vmem>>, vector<16x128xf32>
    %cst_43 = arith.constant dense<0.000000e+00> : vector<128xf32>
    %35 = vector.multi_reduction <add>, %34, %cst_43 [0] : vector<16x128xf32> to vector<128xf32>
    %36 = vector.shape_cast %35 : vector<128xf32> to vector<1x128xf32>
    %cst_44 = arith.constant 6.250000e-02 : f32
    %37 = vector.broadcast %cst_44 : f32 to vector<1x128xf32>
    %38 = arith.mulf %36, %37 : vector<1x128xf32>
    %39 = vector.broadcast %38 : vector<1x128xf32> to vector<16x128xf32>
    %40 = arith.subf %34, %39 : vector<16x128xf32>
    %41 = arith.mulf %40, %40 : vector<16x128xf32>
    %cst_45 = arith.constant dense<0.000000e+00> : vector<128xf32>
    %42 = vector.multi_reduction <add>, %41, %cst_45 [0] : vector<16x128xf32> to vector<128xf32>
    %43 = vector.shape_cast %42 : vector<128xf32> to vector<1x128xf32>
    %c0_46 = arith.constant 0 : index
    %c0_47 = arith.constant 0 : index
    %c0_48 = arith.constant 0 : index
    %44 = vector.load %arg4[%c0_46, %c0_47, %c0_48] : memref<1x1x128xf32, #tpu.memory_space<vmem>>, vector<1x1x128xf32>
    %45 = vector.shape_cast %44 : vector<1x1x128xf32> to vector<1x128xf32>
    %46 = vector.shape_cast %36 : vector<1x128xf32> to vector<1x1x128xf32>
    tpu.vector_store %arg4[%c0_46, %c0_47, %c0_48], %46 {strides = array<i32>} : memref<1x1x128xf32, #tpu.memory_space<vmem>>, vector<1x1x128xf32>,
    %c0_49 = arith.constant 0 : index
    %c0_50 = arith.constant 0 : index
    %c0_51 = arith.constant 0 : index
    %47 = vector.load %arg5[%c0_49, %c0_50, %c0_51] : memref<1x1x128xf32, #tpu.memory_space<vmem>>, vector<1x1x128xf32>
    %48 = vector.shape_cast %47 : vector<1x1x128xf32> to vector<1x128xf32>
    %49 = vector.shape_cast %43 : vector<1x128xf32> to vector<1x1x128xf32>
    tpu.vector_store %arg5[%c0_49, %c0_50, %c0_51], %49 {strides = array<i32>} : memref<1x1x128xf32, #tpu.memory_space<vmem>>, vector<1x1x128xf32>,
    %50 = arith.truncf %34 : vector<16x128xf32> to vector<16x128xbf16>
    %c0_52 = arith.constant 0 : index
    %c0_53 = arith.constant 0 : index
    %c0_54 = arith.constant 0 : index
    %51 = vector.load %arg3[%c0_52, %c0_53, %c0_54] : memref<1x16x128xbf16, #tpu.memory_space<vmem>>, vector<1x16x128xbf16>
    %52 = vector.shape_cast %51 : vector<1x16x128xbf16> to vector<16x128xbf16>
    %53 = vector.shape_cast %50 : vector<16x128xbf16> to vector<1x16x128xbf16>
    tpu.vector_store %arg3[%c0_52, %c0_53, %c0_54], %53 {strides = array<i32>} : memref<1x16x128xbf16, #tpu.memory_space<vmem>>, vector<1x16x128xbf16>,
    return
  }
  func.func @transform_0(%arg0: i32) -> (i32, i32, i32, i32) {
    %c0_i32 = arith.constant 0 : i32
    %c0_i32_0 = arith.constant 0 : i32
    %c0_i32_1 = arith.constant 0 : i32
    %c0_i32_2 = arith.constant 0 : i32
    return %arg0, %c0_i32, %c0_i32_0, %c0_i32_1 : i32, i32, i32, i32
  }
  func.func @transform_1(%arg0: i32) -> (i32, i32, i32) {
    %c0_i32 = arith.constant 0 : i32
    %c0_i32_0 = arith.constant 0 : i32
    %c0_i32_1 = arith.constant 0 : i32
    %c0_i32_2 = arith.constant 0 : i32
    return %c0_i32, %c0_i32_0, %c0_i32_1 : i32, i32, i32
  }
  func.func @transform_2(%arg0: i32) -> (i32, i32, i32) {
    %c0_i32 = arith.constant 0 : i32
    %c0_i32_0 = arith.constant 0 : i32
    %c0_i32_1 = arith.constant 0 : i32
    return %arg0, %c0_i32, %c0_i32_0 : i32, i32, i32
  }
  func.func @transform_3(%arg0: i32) -> (i32, i32, i32) {
    %c0_i32 = arith.constant 0 : i32
    %c0_i32_0 = arith.constant 0 : i32
    %c0_i32_1 = arith.constant 0 : i32
    return %arg0, %c0_i32, %c0_i32_0 : i32, i32, i32
  }
  func.func @transform_4(%arg0: i32) -> (i32, i32, i32) {
    %c0_i32 = arith.constant 0 : i32
    %c0_i32_0 = arith.constant 0 : i32
    %c0_i32_1 = arith.constant 0 : i32
    return %arg0, %c0_i32, %c0_i32_0 : i32, i32, i32
  }
}

module attributes {stable_mosaic.version = 11 : i64} {
  func.func @kernel(%arg0: i32, %arg1: memref<1x6x6x32xbf16, #tpu.memory_space<vmem>>, %arg2: memref<16x32x128xbf16, #tpu.memory_space<vmem>>, %arg3: memref<1x9x128xbf16, #tpu.memory_space<vmem>>, %arg4: memref<1x1x128xf32, #tpu.memory_space<vmem>>, %arg5: memref<1x1x128xf32, #tpu.memory_space<vmem>>, %arg6: memref<9x128xf32, #tpu.memory_space<vmem>>) attributes {dimension_semantics = [#tpu.dimension_semantics<parallel>], iteration_bounds = array<i64: 2>, scalar_prefetch = 0 : i64, scratch_operands = 1 : i64, tpu.core_type = #tpu.core_type<tc>, window_params = [{transform_indices = @transform_0, window_bounds = array<i64: 1, 6, 6, 32>}, {pipeline_mode = #tpu.pipeline_mode<synchronous>, transform_indices = @transform_1, window_bounds = array<i64: 16, 32, 128>}, {transform_indices = @transform_2, window_bounds = array<i64: 1, 9, 128>}, {transform_indices = @transform_3, window_bounds = array<i64: 1, 1, 128>}, {transform_indices = @transform_4, window_bounds = array<i64: 1, 1, 128>}]} {
    %c0 = arith.constant 0 : index
    %c0_0 = arith.constant 0 : index
    %c0_1 = arith.constant 0 : index
    %c0_2 = arith.constant 0 : index
    %0 = vector.load %arg1[%c0, %c0_0, %c0_1, %c0_2] : memref<1x6x6x32xbf16, #tpu.memory_space<vmem>>, vector<1x3x3x32xbf16>
    %1 = vector.shape_cast %0 : vector<1x3x3x32xbf16> to vector<3x3x32xbf16>
    %2 = vector.shape_cast %1 : vector<3x3x32xbf16> to vector<9x32xbf16>
    %c0_3 = arith.constant 0 : index
    %c0_4 = arith.constant 0 : index
    %c0_5 = arith.constant 0 : index
    %3 = vector.load %arg2[%c0_3, %c0_4, %c0_5] : memref<16x32x128xbf16, #tpu.memory_space<vmem>>, vector<1x32x128xbf16>
    %4 = vector.shape_cast %3 : vector<1x32x128xbf16> to vector<32x128xbf16>
    %cst = arith.constant dense<0.000000e+00> : vector<9x128xf32>
    %5 = tpu.matmul %2, %4, %cst {dimension_numbers = #tpu.dot_dimension_numbers<[1], [0], [0], [1], [0, 0, 1, 1], [], []>} : vector<9x32xbf16>, vector<32x128xbf16>, vector<9x128xf32> -> vector<9x128xf32>
    %c0_6 = arith.constant 0 : index
    %c0_7 = arith.constant 0 : index
    %6 = vector.load %arg6[%c0_6, %c0_7] : memref<9x128xf32, #tpu.memory_space<vmem>>, vector<9x128xf32>
    tpu.vector_store %arg6[%c0_6, %c0_7], %5 {strides = array<i32>} : memref<9x128xf32, #tpu.memory_space<vmem>>, vector<9x128xf32>,
    %c0_8 = arith.constant 0 : index
    %c0_9 = arith.constant 0 : index
    %c1 = arith.constant 1 : index
    %c0_10 = arith.constant 0 : index
    %7 = vector.load %arg1[%c0_8, %c0_9, %c1, %c0_10] : memref<1x6x6x32xbf16, #tpu.memory_space<vmem>>, vector<1x3x3x32xbf16>
    %8 = vector.shape_cast %7 : vector<1x3x3x32xbf16> to vector<3x3x32xbf16>
    %9 = vector.shape_cast %8 : vector<3x3x32xbf16> to vector<9x32xbf16>
    %c1_11 = arith.constant 1 : index
    %c0_12 = arith.constant 0 : index
    %c0_13 = arith.constant 0 : index
    %10 = vector.load %arg2[%c1_11, %c0_12, %c0_13] : memref<16x32x128xbf16, #tpu.memory_space<vmem>>, vector<1x32x128xbf16>
    %11 = vector.shape_cast %10 : vector<1x32x128xbf16> to vector<32x128xbf16>
    %cst_14 = arith.constant dense<0.000000e+00> : vector<9x128xf32>
    %12 = tpu.matmul %9, %11, %cst_14 {dimension_numbers = #tpu.dot_dimension_numbers<[1], [0], [0], [1], [0, 0, 1, 1], [], []>} : vector<9x32xbf16>, vector<32x128xbf16>, vector<9x128xf32> -> vector<9x128xf32>
    %c0_15 = arith.constant 0 : index
    %c0_16 = arith.constant 0 : index
    %13 = vector.load %arg6[%c0_15, %c0_16] : memref<9x128xf32, #tpu.memory_space<vmem>>, vector<9x128xf32>
    %14 = arith.addf %13, %12 : vector<9x128xf32>
    %c0_17 = arith.constant 0 : index
    %c0_18 = arith.constant 0 : index
    %15 = vector.load %arg6[%c0_17, %c0_18] : memref<9x128xf32, #tpu.memory_space<vmem>>, vector<9x128xf32>
    tpu.vector_store %arg6[%c0_17, %c0_18], %14 {strides = array<i32>} : memref<9x128xf32, #tpu.memory_space<vmem>>, vector<9x128xf32>,
    %c0_19 = arith.constant 0 : index
    %c0_20 = arith.constant 0 : index
    %c2 = arith.constant 2 : index
    %c0_21 = arith.constant 0 : index
    %16 = vector.load %arg1[%c0_19, %c0_20, %c2, %c0_21] : memref<1x6x6x32xbf16, #tpu.memory_space<vmem>>, vector<1x3x3x32xbf16>
    %17 = vector.shape_cast %16 : vector<1x3x3x32xbf16> to vector<3x3x32xbf16>
    %18 = vector.shape_cast %17 : vector<3x3x32xbf16> to vector<9x32xbf16>
    %c2_22 = arith.constant 2 : index
    %c0_23 = arith.constant 0 : index
    %c0_24 = arith.constant 0 : index
    %19 = vector.load %arg2[%c2_22, %c0_23, %c0_24] : memref<16x32x128xbf16, #tpu.memory_space<vmem>>, vector<1x32x128xbf16>
    %20 = vector.shape_cast %19 : vector<1x32x128xbf16> to vector<32x128xbf16>
    %cst_25 = arith.constant dense<0.000000e+00> : vector<9x128xf32>
    %21 = tpu.matmul %18, %20, %cst_25 {dimension_numbers = #tpu.dot_dimension_numbers<[1], [0], [0], [1], [0, 0, 1, 1], [], []>} : vector<9x32xbf16>, vector<32x128xbf16>, vector<9x128xf32> -> vector<9x128xf32>
    %c0_26 = arith.constant 0 : index
    %c0_27 = arith.constant 0 : index
    %22 = vector.load %arg6[%c0_26, %c0_27] : memref<9x128xf32, #tpu.memory_space<vmem>>, vector<9x128xf32>
    %23 = arith.addf %22, %21 : vector<9x128xf32>
    %c0_28 = arith.constant 0 : index
    %c0_29 = arith.constant 0 : index
    %24 = vector.load %arg6[%c0_28, %c0_29] : memref<9x128xf32, #tpu.memory_space<vmem>>, vector<9x128xf32>
    tpu.vector_store %arg6[%c0_28, %c0_29], %23 {strides = array<i32>} : memref<9x128xf32, #tpu.memory_space<vmem>>, vector<9x128xf32>,
    %c0_30 = arith.constant 0 : index
    %c0_31 = arith.constant 0 : index
    %c3 = arith.constant 3 : index
    %c0_32 = arith.constant 0 : index
    %25 = vector.load %arg1[%c0_30, %c0_31, %c3, %c0_32] : memref<1x6x6x32xbf16, #tpu.memory_space<vmem>>, vector<1x3x3x32xbf16>
    %26 = vector.shape_cast %25 : vector<1x3x3x32xbf16> to vector<3x3x32xbf16>
    %27 = vector.shape_cast %26 : vector<3x3x32xbf16> to vector<9x32xbf16>
    %c3_33 = arith.constant 3 : index
    %c0_34 = arith.constant 0 : index
    %c0_35 = arith.constant 0 : index
    %28 = vector.load %arg2[%c3_33, %c0_34, %c0_35] : memref<16x32x128xbf16, #tpu.memory_space<vmem>>, vector<1x32x128xbf16>
    %29 = vector.shape_cast %28 : vector<1x32x128xbf16> to vector<32x128xbf16>
    %cst_36 = arith.constant dense<0.000000e+00> : vector<9x128xf32>
    %30 = tpu.matmul %27, %29, %cst_36 {dimension_numbers = #tpu.dot_dimension_numbers<[1], [0], [0], [1], [0, 0, 1, 1], [], []>} : vector<9x32xbf16>, vector<32x128xbf16>, vector<9x128xf32> -> vector<9x128xf32>
    %c0_37 = arith.constant 0 : index
    %c0_38 = arith.constant 0 : index
    %31 = vector.load %arg6[%c0_37, %c0_38] : memref<9x128xf32, #tpu.memory_space<vmem>>, vector<9x128xf32>
    %32 = arith.addf %31, %30 : vector<9x128xf32>
    %c0_39 = arith.constant 0 : index
    %c0_40 = arith.constant 0 : index
    %33 = vector.load %arg6[%c0_39, %c0_40] : memref<9x128xf32, #tpu.memory_space<vmem>>, vector<9x128xf32>
    tpu.vector_store %arg6[%c0_39, %c0_40], %32 {strides = array<i32>} : memref<9x128xf32, #tpu.memory_space<vmem>>, vector<9x128xf32>,
    %c0_41 = arith.constant 0 : index
    %c1_42 = arith.constant 1 : index
    %c0_43 = arith.constant 0 : index
    %c0_44 = arith.constant 0 : index
    %34 = vector.load %arg1[%c0_41, %c1_42, %c0_43, %c0_44] : memref<1x6x6x32xbf16, #tpu.memory_space<vmem>>, vector<1x3x3x32xbf16>
    %35 = vector.shape_cast %34 : vector<1x3x3x32xbf16> to vector<3x3x32xbf16>
    %36 = vector.shape_cast %35 : vector<3x3x32xbf16> to vector<9x32xbf16>
    %c4 = arith.constant 4 : index
    %c0_45 = arith.constant 0 : index
    %c0_46 = arith.constant 0 : index
    %37 = vector.load %arg2[%c4, %c0_45, %c0_46] : memref<16x32x128xbf16, #tpu.memory_space<vmem>>, vector<1x32x128xbf16>
    %38 = vector.shape_cast %37 : vector<1x32x128xbf16> to vector<32x128xbf16>
    %cst_47 = arith.constant dense<0.000000e+00> : vector<9x128xf32>
    %39 = tpu.matmul %36, %38, %cst_47 {dimension_numbers = #tpu.dot_dimension_numbers<[1], [0], [0], [1], [0, 0, 1, 1], [], []>} : vector<9x32xbf16>, vector<32x128xbf16>, vector<9x128xf32> -> vector<9x128xf32>
    %c0_48 = arith.constant 0 : index
    %c0_49 = arith.constant 0 : index
    %40 = vector.load %arg6[%c0_48, %c0_49] : memref<9x128xf32, #tpu.memory_space<vmem>>, vector<9x128xf32>
    %41 = arith.addf %40, %39 : vector<9x128xf32>
    %c0_50 = arith.constant 0 : index
    %c0_51 = arith.constant 0 : index
    %42 = vector.load %arg6[%c0_50, %c0_51] : memref<9x128xf32, #tpu.memory_space<vmem>>, vector<9x128xf32>
    tpu.vector_store %arg6[%c0_50, %c0_51], %41 {strides = array<i32>} : memref<9x128xf32, #tpu.memory_space<vmem>>, vector<9x128xf32>,
    %c0_52 = arith.constant 0 : index
    %c1_53 = arith.constant 1 : index
    %c1_54 = arith.constant 1 : index
    %c0_55 = arith.constant 0 : index
    %43 = vector.load %arg1[%c0_52, %c1_53, %c1_54, %c0_55] : memref<1x6x6x32xbf16, #tpu.memory_space<vmem>>, vector<1x3x3x32xbf16>
    %44 = vector.shape_cast %43 : vector<1x3x3x32xbf16> to vector<3x3x32xbf16>
    %45 = vector.shape_cast %44 : vector<3x3x32xbf16> to vector<9x32xbf16>
    %c5 = arith.constant 5 : index
    %c0_56 = arith.constant 0 : index
    %c0_57 = arith.constant 0 : index
    %46 = vector.load %arg2[%c5, %c0_56, %c0_57] : memref<16x32x128xbf16, #tpu.memory_space<vmem>>, vector<1x32x128xbf16>
    %47 = vector.shape_cast %46 : vector<1x32x128xbf16> to vector<32x128xbf16>
    %cst_58 = arith.constant dense<0.000000e+00> : vector<9x128xf32>
    %48 = tpu.matmul %45, %47, %cst_58 {dimension_numbers = #tpu.dot_dimension_numbers<[1], [0], [0], [1], [0, 0, 1, 1], [], []>} : vector<9x32xbf16>, vector<32x128xbf16>, vector<9x128xf32> -> vector<9x128xf32>
    %c0_59 = arith.constant 0 : index
    %c0_60 = arith.constant 0 : index
    %49 = vector.load %arg6[%c0_59, %c0_60] : memref<9x128xf32, #tpu.memory_space<vmem>>, vector<9x128xf32>
    %50 = arith.addf %49, %48 : vector<9x128xf32>
    %c0_61 = arith.constant 0 : index
    %c0_62 = arith.constant 0 : index
    %51 = vector.load %arg6[%c0_61, %c0_62] : memref<9x128xf32, #tpu.memory_space<vmem>>, vector<9x128xf32>
    tpu.vector_store %arg6[%c0_61, %c0_62], %50 {strides = array<i32>} : memref<9x128xf32, #tpu.memory_space<vmem>>, vector<9x128xf32>,
    %c0_63 = arith.constant 0 : index
    %c1_64 = arith.constant 1 : index
    %c2_65 = arith.constant 2 : index
    %c0_66 = arith.constant 0 : index
    %52 = vector.load %arg1[%c0_63, %c1_64, %c2_65, %c0_66] : memref<1x6x6x32xbf16, #tpu.memory_space<vmem>>, vector<1x3x3x32xbf16>
    %53 = vector.shape_cast %52 : vector<1x3x3x32xbf16> to vector<3x3x32xbf16>
    %54 = vector.shape_cast %53 : vector<3x3x32xbf16> to vector<9x32xbf16>
    %c6 = arith.constant 6 : index
    %c0_67 = arith.constant 0 : index
    %c0_68 = arith.constant 0 : index
    %55 = vector.load %arg2[%c6, %c0_67, %c0_68] : memref<16x32x128xbf16, #tpu.memory_space<vmem>>, vector<1x32x128xbf16>
    %56 = vector.shape_cast %55 : vector<1x32x128xbf16> to vector<32x128xbf16>
    %cst_69 = arith.constant dense<0.000000e+00> : vector<9x128xf32>
    %57 = tpu.matmul %54, %56, %cst_69 {dimension_numbers = #tpu.dot_dimension_numbers<[1], [0], [0], [1], [0, 0, 1, 1], [], []>} : vector<9x32xbf16>, vector<32x128xbf16>, vector<9x128xf32> -> vector<9x128xf32>
    %c0_70 = arith.constant 0 : index
    %c0_71 = arith.constant 0 : index
    %58 = vector.load %arg6[%c0_70, %c0_71] : memref<9x128xf32, #tpu.memory_space<vmem>>, vector<9x128xf32>
    %59 = arith.addf %58, %57 : vector<9x128xf32>
    %c0_72 = arith.constant 0 : index
    %c0_73 = arith.constant 0 : index
    %60 = vector.load %arg6[%c0_72, %c0_73] : memref<9x128xf32, #tpu.memory_space<vmem>>, vector<9x128xf32>
    tpu.vector_store %arg6[%c0_72, %c0_73], %59 {strides = array<i32>} : memref<9x128xf32, #tpu.memory_space<vmem>>, vector<9x128xf32>,
    %c0_74 = arith.constant 0 : index
    %c1_75 = arith.constant 1 : index
    %c3_76 = arith.constant 3 : index
    %c0_77 = arith.constant 0 : index
    %61 = vector.load %arg1[%c0_74, %c1_75, %c3_76, %c0_77] : memref<1x6x6x32xbf16, #tpu.memory_space<vmem>>, vector<1x3x3x32xbf16>
    %62 = vector.shape_cast %61 : vector<1x3x3x32xbf16> to vector<3x3x32xbf16>
    %63 = vector.shape_cast %62 : vector<3x3x32xbf16> to vector<9x32xbf16>
    %c7 = arith.constant 7 : index
    %c0_78 = arith.constant 0 : index
    %c0_79 = arith.constant 0 : index
    %64 = vector.load %arg2[%c7, %c0_78, %c0_79] : memref<16x32x128xbf16, #tpu.memory_space<vmem>>, vector<1x32x128xbf16>
    %65 = vector.shape_cast %64 : vector<1x32x128xbf16> to vector<32x128xbf16>
    %cst_80 = arith.constant dense<0.000000e+00> : vector<9x128xf32>
    %66 = tpu.matmul %63, %65, %cst_80 {dimension_numbers = #tpu.dot_dimension_numbers<[1], [0], [0], [1], [0, 0, 1, 1], [], []>} : vector<9x32xbf16>, vector<32x128xbf16>, vector<9x128xf32> -> vector<9x128xf32>
    %c0_81 = arith.constant 0 : index
    %c0_82 = arith.constant 0 : index
    %67 = vector.load %arg6[%c0_81, %c0_82] : memref<9x128xf32, #tpu.memory_space<vmem>>, vector<9x128xf32>
    %68 = arith.addf %67, %66 : vector<9x128xf32>
    %c0_83 = arith.constant 0 : index
    %c0_84 = arith.constant 0 : index
    %69 = vector.load %arg6[%c0_83, %c0_84] : memref<9x128xf32, #tpu.memory_space<vmem>>, vector<9x128xf32>
    tpu.vector_store %arg6[%c0_83, %c0_84], %68 {strides = array<i32>} : memref<9x128xf32, #tpu.memory_space<vmem>>, vector<9x128xf32>,
    %c0_85 = arith.constant 0 : index
    %c2_86 = arith.constant 2 : index
    %c0_87 = arith.constant 0 : index
    %c0_88 = arith.constant 0 : index
    %70 = vector.load %arg1[%c0_85, %c2_86, %c0_87, %c0_88] : memref<1x6x6x32xbf16, #tpu.memory_space<vmem>>, vector<1x3x3x32xbf16>
    %71 = vector.shape_cast %70 : vector<1x3x3x32xbf16> to vector<3x3x32xbf16>
    %72 = vector.shape_cast %71 : vector<3x3x32xbf16> to vector<9x32xbf16>
    %c8 = arith.constant 8 : index
    %c0_89 = arith.constant 0 : index
    %c0_90 = arith.constant 0 : index
    %73 = vector.load %arg2[%c8, %c0_89, %c0_90] : memref<16x32x128xbf16, #tpu.memory_space<vmem>>, vector<1x32x128xbf16>
    %74 = vector.shape_cast %73 : vector<1x32x128xbf16> to vector<32x128xbf16>
    %cst_91 = arith.constant dense<0.000000e+00> : vector<9x128xf32>
    %75 = tpu.matmul %72, %74, %cst_91 {dimension_numbers = #tpu.dot_dimension_numbers<[1], [0], [0], [1], [0, 0, 1, 1], [], []>} : vector<9x32xbf16>, vector<32x128xbf16>, vector<9x128xf32> -> vector<9x128xf32>
    %c0_92 = arith.constant 0 : index
    %c0_93 = arith.constant 0 : index
    %76 = vector.load %arg6[%c0_92, %c0_93] : memref<9x128xf32, #tpu.memory_space<vmem>>, vector<9x128xf32>
    %77 = arith.addf %76, %75 : vector<9x128xf32>
    %c0_94 = arith.constant 0 : index
    %c0_95 = arith.constant 0 : index
    %78 = vector.load %arg6[%c0_94, %c0_95] : memref<9x128xf32, #tpu.memory_space<vmem>>, vector<9x128xf32>
    tpu.vector_store %arg6[%c0_94, %c0_95], %77 {strides = array<i32>} : memref<9x128xf32, #tpu.memory_space<vmem>>, vector<9x128xf32>,
    %c0_96 = arith.constant 0 : index
    %c2_97 = arith.constant 2 : index
    %c1_98 = arith.constant 1 : index
    %c0_99 = arith.constant 0 : index
    %79 = vector.load %arg1[%c0_96, %c2_97, %c1_98, %c0_99] : memref<1x6x6x32xbf16, #tpu.memory_space<vmem>>, vector<1x3x3x32xbf16>
    %80 = vector.shape_cast %79 : vector<1x3x3x32xbf16> to vector<3x3x32xbf16>
    %81 = vector.shape_cast %80 : vector<3x3x32xbf16> to vector<9x32xbf16>
    %c9 = arith.constant 9 : index
    %c0_100 = arith.constant 0 : index
    %c0_101 = arith.constant 0 : index
    %82 = vector.load %arg2[%c9, %c0_100, %c0_101] : memref<16x32x128xbf16, #tpu.memory_space<vmem>>, vector<1x32x128xbf16>
    %83 = vector.shape_cast %82 : vector<1x32x128xbf16> to vector<32x128xbf16>
    %cst_102 = arith.constant dense<0.000000e+00> : vector<9x128xf32>
    %84 = tpu.matmul %81, %83, %cst_102 {dimension_numbers = #tpu.dot_dimension_numbers<[1], [0], [0], [1], [0, 0, 1, 1], [], []>} : vector<9x32xbf16>, vector<32x128xbf16>, vector<9x128xf32> -> vector<9x128xf32>
    %c0_103 = arith.constant 0 : index
    %c0_104 = arith.constant 0 : index
    %85 = vector.load %arg6[%c0_103, %c0_104] : memref<9x128xf32, #tpu.memory_space<vmem>>, vector<9x128xf32>
    %86 = arith.addf %85, %84 : vector<9x128xf32>
    %c0_105 = arith.constant 0 : index
    %c0_106 = arith.constant 0 : index
    %87 = vector.load %arg6[%c0_105, %c0_106] : memref<9x128xf32, #tpu.memory_space<vmem>>, vector<9x128xf32>
    tpu.vector_store %arg6[%c0_105, %c0_106], %86 {strides = array<i32>} : memref<9x128xf32, #tpu.memory_space<vmem>>, vector<9x128xf32>,
    %c0_107 = arith.constant 0 : index
    %c2_108 = arith.constant 2 : index
    %c2_109 = arith.constant 2 : index
    %c0_110 = arith.constant 0 : index
    %88 = vector.load %arg1[%c0_107, %c2_108, %c2_109, %c0_110] : memref<1x6x6x32xbf16, #tpu.memory_space<vmem>>, vector<1x3x3x32xbf16>
    %89 = vector.shape_cast %88 : vector<1x3x3x32xbf16> to vector<3x3x32xbf16>
    %90 = vector.shape_cast %89 : vector<3x3x32xbf16> to vector<9x32xbf16>
    %c10 = arith.constant 10 : index
    %c0_111 = arith.constant 0 : index
    %c0_112 = arith.constant 0 : index
    %91 = vector.load %arg2[%c10, %c0_111, %c0_112] : memref<16x32x128xbf16, #tpu.memory_space<vmem>>, vector<1x32x128xbf16>
    %92 = vector.shape_cast %91 : vector<1x32x128xbf16> to vector<32x128xbf16>
    %cst_113 = arith.constant dense<0.000000e+00> : vector<9x128xf32>
    %93 = tpu.matmul %90, %92, %cst_113 {dimension_numbers = #tpu.dot_dimension_numbers<[1], [0], [0], [1], [0, 0, 1, 1], [], []>} : vector<9x32xbf16>, vector<32x128xbf16>, vector<9x128xf32> -> vector<9x128xf32>
    %c0_114 = arith.constant 0 : index
    %c0_115 = arith.constant 0 : index
    %94 = vector.load %arg6[%c0_114, %c0_115] : memref<9x128xf32, #tpu.memory_space<vmem>>, vector<9x128xf32>
    %95 = arith.addf %94, %93 : vector<9x128xf32>
    %c0_116 = arith.constant 0 : index
    %c0_117 = arith.constant 0 : index
    %96 = vector.load %arg6[%c0_116, %c0_117] : memref<9x128xf32, #tpu.memory_space<vmem>>, vector<9x128xf32>
    tpu.vector_store %arg6[%c0_116, %c0_117], %95 {strides = array<i32>} : memref<9x128xf32, #tpu.memory_space<vmem>>, vector<9x128xf32>,
    %c0_118 = arith.constant 0 : index
    %c2_119 = arith.constant 2 : index
    %c3_120 = arith.constant 3 : index
    %c0_121 = arith.constant 0 : index
    %97 = vector.load %arg1[%c0_118, %c2_119, %c3_120, %c0_121] : memref<1x6x6x32xbf16, #tpu.memory_space<vmem>>, vector<1x3x3x32xbf16>
    %98 = vector.shape_cast %97 : vector<1x3x3x32xbf16> to vector<3x3x32xbf16>
    %99 = vector.shape_cast %98 : vector<3x3x32xbf16> to vector<9x32xbf16>
    %c11 = arith.constant 11 : index
    %c0_122 = arith.constant 0 : index
    %c0_123 = arith.constant 0 : index
    %100 = vector.load %arg2[%c11, %c0_122, %c0_123] : memref<16x32x128xbf16, #tpu.memory_space<vmem>>, vector<1x32x128xbf16>
    %101 = vector.shape_cast %100 : vector<1x32x128xbf16> to vector<32x128xbf16>
    %cst_124 = arith.constant dense<0.000000e+00> : vector<9x128xf32>
    %102 = tpu.matmul %99, %101, %cst_124 {dimension_numbers = #tpu.dot_dimension_numbers<[1], [0], [0], [1], [0, 0, 1, 1], [], []>} : vector<9x32xbf16>, vector<32x128xbf16>, vector<9x128xf32> -> vector<9x128xf32>
    %c0_125 = arith.constant 0 : index
    %c0_126 = arith.constant 0 : index
    %103 = vector.load %arg6[%c0_125, %c0_126] : memref<9x128xf32, #tpu.memory_space<vmem>>, vector<9x128xf32>
    %104 = arith.addf %103, %102 : vector<9x128xf32>
    %c0_127 = arith.constant 0 : index
    %c0_128 = arith.constant 0 : index
    %105 = vector.load %arg6[%c0_127, %c0_128] : memref<9x128xf32, #tpu.memory_space<vmem>>, vector<9x128xf32>
    tpu.vector_store %arg6[%c0_127, %c0_128], %104 {strides = array<i32>} : memref<9x128xf32, #tpu.memory_space<vmem>>, vector<9x128xf32>,
    %c0_129 = arith.constant 0 : index
    %c3_130 = arith.constant 3 : index
    %c0_131 = arith.constant 0 : index
    %c0_132 = arith.constant 0 : index
    %106 = vector.load %arg1[%c0_129, %c3_130, %c0_131, %c0_132] : memref<1x6x6x32xbf16, #tpu.memory_space<vmem>>, vector<1x3x3x32xbf16>
    %107 = vector.shape_cast %106 : vector<1x3x3x32xbf16> to vector<3x3x32xbf16>
    %108 = vector.shape_cast %107 : vector<3x3x32xbf16> to vector<9x32xbf16>
    %c12 = arith.constant 12 : index
    %c0_133 = arith.constant 0 : index
    %c0_134 = arith.constant 0 : index
    %109 = vector.load %arg2[%c12, %c0_133, %c0_134] : memref<16x32x128xbf16, #tpu.memory_space<vmem>>, vector<1x32x128xbf16>
    %110 = vector.shape_cast %109 : vector<1x32x128xbf16> to vector<32x128xbf16>
    %cst_135 = arith.constant dense<0.000000e+00> : vector<9x128xf32>
    %111 = tpu.matmul %108, %110, %cst_135 {dimension_numbers = #tpu.dot_dimension_numbers<[1], [0], [0], [1], [0, 0, 1, 1], [], []>} : vector<9x32xbf16>, vector<32x128xbf16>, vector<9x128xf32> -> vector<9x128xf32>
    %c0_136 = arith.constant 0 : index
    %c0_137 = arith.constant 0 : index
    %112 = vector.load %arg6[%c0_136, %c0_137] : memref<9x128xf32, #tpu.memory_space<vmem>>, vector<9x128xf32>
    %113 = arith.addf %112, %111 : vector<9x128xf32>
    %c0_138 = arith.constant 0 : index
    %c0_139 = arith.constant 0 : index
    %114 = vector.load %arg6[%c0_138, %c0_139] : memref<9x128xf32, #tpu.memory_space<vmem>>, vector<9x128xf32>
    tpu.vector_store %arg6[%c0_138, %c0_139], %113 {strides = array<i32>} : memref<9x128xf32, #tpu.memory_space<vmem>>, vector<9x128xf32>,
    %c0_140 = arith.constant 0 : index
    %c3_141 = arith.constant 3 : index
    %c1_142 = arith.constant 1 : index
    %c0_143 = arith.constant 0 : index
    %115 = vector.load %arg1[%c0_140, %c3_141, %c1_142, %c0_143] : memref<1x6x6x32xbf16, #tpu.memory_space<vmem>>, vector<1x3x3x32xbf16>
    %116 = vector.shape_cast %115 : vector<1x3x3x32xbf16> to vector<3x3x32xbf16>
    %117 = vector.shape_cast %116 : vector<3x3x32xbf16> to vector<9x32xbf16>
    %c13 = arith.constant 13 : index
    %c0_144 = arith.constant 0 : index
    %c0_145 = arith.constant 0 : index
    %118 = vector.load %arg2[%c13, %c0_144, %c0_145] : memref<16x32x128xbf16, #tpu.memory_space<vmem>>, vector<1x32x128xbf16>
    %119 = vector.shape_cast %118 : vector<1x32x128xbf16> to vector<32x128xbf16>
    %cst_146 = arith.constant dense<0.000000e+00> : vector<9x128xf32>
    %120 = tpu.matmul %117, %119, %cst_146 {dimension_numbers = #tpu.dot_dimension_numbers<[1], [0], [0], [1], [0, 0, 1, 1], [], []>} : vector<9x32xbf16>, vector<32x128xbf16>, vector<9x128xf32> -> vector<9x128xf32>
    %c0_147 = arith.constant 0 : index
    %c0_148 = arith.constant 0 : index
    %121 = vector.load %arg6[%c0_147, %c0_148] : memref<9x128xf32, #tpu.memory_space<vmem>>, vector<9x128xf32>
    %122 = arith.addf %121, %120 : vector<9x128xf32>
    %c0_149 = arith.constant 0 : index
    %c0_150 = arith.constant 0 : index
    %123 = vector.load %arg6[%c0_149, %c0_150] : memref<9x128xf32, #tpu.memory_space<vmem>>, vector<9x128xf32>
    tpu.vector_store %arg6[%c0_149, %c0_150], %122 {strides = array<i32>} : memref<9x128xf32, #tpu.memory_space<vmem>>, vector<9x128xf32>,
    %c0_151 = arith.constant 0 : index
    %c3_152 = arith.constant 3 : index
    %c2_153 = arith.constant 2 : index
    %c0_154 = arith.constant 0 : index
    %124 = vector.load %arg1[%c0_151, %c3_152, %c2_153, %c0_154] : memref<1x6x6x32xbf16, #tpu.memory_space<vmem>>, vector<1x3x3x32xbf16>
    %125 = vector.shape_cast %124 : vector<1x3x3x32xbf16> to vector<3x3x32xbf16>
    %126 = vector.shape_cast %125 : vector<3x3x32xbf16> to vector<9x32xbf16>
    %c14 = arith.constant 14 : index
    %c0_155 = arith.constant 0 : index
    %c0_156 = arith.constant 0 : index
    %127 = vector.load %arg2[%c14, %c0_155, %c0_156] : memref<16x32x128xbf16, #tpu.memory_space<vmem>>, vector<1x32x128xbf16>
    %128 = vector.shape_cast %127 : vector<1x32x128xbf16> to vector<32x128xbf16>
    %cst_157 = arith.constant dense<0.000000e+00> : vector<9x128xf32>
    %129 = tpu.matmul %126, %128, %cst_157 {dimension_numbers = #tpu.dot_dimension_numbers<[1], [0], [0], [1], [0, 0, 1, 1], [], []>} : vector<9x32xbf16>, vector<32x128xbf16>, vector<9x128xf32> -> vector<9x128xf32>
    %c0_158 = arith.constant 0 : index
    %c0_159 = arith.constant 0 : index
    %130 = vector.load %arg6[%c0_158, %c0_159] : memref<9x128xf32, #tpu.memory_space<vmem>>, vector<9x128xf32>
    %131 = arith.addf %130, %129 : vector<9x128xf32>
    %c0_160 = arith.constant 0 : index
    %c0_161 = arith.constant 0 : index
    %132 = vector.load %arg6[%c0_160, %c0_161] : memref<9x128xf32, #tpu.memory_space<vmem>>, vector<9x128xf32>
    tpu.vector_store %arg6[%c0_160, %c0_161], %131 {strides = array<i32>} : memref<9x128xf32, #tpu.memory_space<vmem>>, vector<9x128xf32>,
    %c0_162 = arith.constant 0 : index
    %c3_163 = arith.constant 3 : index
    %c3_164 = arith.constant 3 : index
    %c0_165 = arith.constant 0 : index
    %133 = vector.load %arg1[%c0_162, %c3_163, %c3_164, %c0_165] : memref<1x6x6x32xbf16, #tpu.memory_space<vmem>>, vector<1x3x3x32xbf16>
    %134 = vector.shape_cast %133 : vector<1x3x3x32xbf16> to vector<3x3x32xbf16>
    %135 = vector.shape_cast %134 : vector<3x3x32xbf16> to vector<9x32xbf16>
    %c15 = arith.constant 15 : index
    %c0_166 = arith.constant 0 : index
    %c0_167 = arith.constant 0 : index
    %136 = vector.load %arg2[%c15, %c0_166, %c0_167] : memref<16x32x128xbf16, #tpu.memory_space<vmem>>, vector<1x32x128xbf16>
    %137 = vector.shape_cast %136 : vector<1x32x128xbf16> to vector<32x128xbf16>
    %cst_168 = arith.constant dense<0.000000e+00> : vector<9x128xf32>
    %138 = tpu.matmul %135, %137, %cst_168 {dimension_numbers = #tpu.dot_dimension_numbers<[1], [0], [0], [1], [0, 0, 1, 1], [], []>} : vector<9x32xbf16>, vector<32x128xbf16>, vector<9x128xf32> -> vector<9x128xf32>
    %c0_169 = arith.constant 0 : index
    %c0_170 = arith.constant 0 : index
    %139 = vector.load %arg6[%c0_169, %c0_170] : memref<9x128xf32, #tpu.memory_space<vmem>>, vector<9x128xf32>
    %140 = arith.addf %139, %138 : vector<9x128xf32>
    %c0_171 = arith.constant 0 : index
    %c0_172 = arith.constant 0 : index
    %141 = vector.load %arg6[%c0_171, %c0_172] : memref<9x128xf32, #tpu.memory_space<vmem>>, vector<9x128xf32>
    tpu.vector_store %arg6[%c0_171, %c0_172], %140 {strides = array<i32>} : memref<9x128xf32, #tpu.memory_space<vmem>>, vector<9x128xf32>,
    %c0_173 = arith.constant 0 : index
    %c0_174 = arith.constant 0 : index
    %142 = vector.load %arg6[%c0_173, %c0_174] : memref<9x128xf32, #tpu.memory_space<vmem>>, vector<9x128xf32>
    %cst_175 = arith.constant dense<0.000000e+00> : vector<128xf32>
    %143 = vector.multi_reduction <add>, %142, %cst_175 [0] : vector<9x128xf32> to vector<128xf32>
    %144 = vector.shape_cast %143 : vector<128xf32> to vector<1x128xf32>
    %cst_176 = arith.constant 0.111111112 : f32
    %145 = vector.broadcast %cst_176 : f32 to vector<1x128xf32>
    %146 = arith.mulf %144, %145 : vector<1x128xf32>
    %147 = vector.broadcast %146 : vector<1x128xf32> to vector<9x128xf32>
    %148 = arith.subf %142, %147 : vector<9x128xf32>
    %149 = arith.mulf %148, %148 : vector<9x128xf32>
    %cst_177 = arith.constant dense<0.000000e+00> : vector<128xf32>
    %150 = vector.multi_reduction <add>, %149, %cst_177 [0] : vector<9x128xf32> to vector<128xf32>
    %151 = vector.shape_cast %150 : vector<128xf32> to vector<1x128xf32>
    %c0_178 = arith.constant 0 : index
    %c0_179 = arith.constant 0 : index
    %c0_180 = arith.constant 0 : index
    %152 = vector.load %arg4[%c0_178, %c0_179, %c0_180] : memref<1x1x128xf32, #tpu.memory_space<vmem>>, vector<1x1x128xf32>
    %153 = vector.shape_cast %152 : vector<1x1x128xf32> to vector<1x128xf32>
    %154 = vector.shape_cast %144 : vector<1x128xf32> to vector<1x1x128xf32>
    tpu.vector_store %arg4[%c0_178, %c0_179, %c0_180], %154 {strides = array<i32>} : memref<1x1x128xf32, #tpu.memory_space<vmem>>, vector<1x1x128xf32>,
    %c0_181 = arith.constant 0 : index
    %c0_182 = arith.constant 0 : index
    %c0_183 = arith.constant 0 : index
    %155 = vector.load %arg5[%c0_181, %c0_182, %c0_183] : memref<1x1x128xf32, #tpu.memory_space<vmem>>, vector<1x1x128xf32>
    %156 = vector.shape_cast %155 : vector<1x1x128xf32> to vector<1x128xf32>
    %157 = vector.shape_cast %151 : vector<1x128xf32> to vector<1x1x128xf32>
    tpu.vector_store %arg5[%c0_181, %c0_182, %c0_183], %157 {strides = array<i32>} : memref<1x1x128xf32, #tpu.memory_space<vmem>>, vector<1x1x128xf32>,
    %158 = arith.truncf %142 : vector<9x128xf32> to vector<9x128xbf16>
    %c0_184 = arith.constant 0 : index
    %c0_185 = arith.constant 0 : index
    %c0_186 = arith.constant 0 : index
    %159 = vector.load %arg3[%c0_184, %c0_185, %c0_186] : memref<1x9x128xbf16, #tpu.memory_space<vmem>>, vector<1x9x128xbf16>
    %160 = vector.shape_cast %159 : vector<1x9x128xbf16> to vector<9x128xbf16>
    %161 = vector.shape_cast %158 : vector<9x128xbf16> to vector<1x9x128xbf16>
    tpu.vector_store %arg3[%c0_184, %c0_185, %c0_186], %161 {strides = array<i32>} : memref<1x9x128xbf16, #tpu.memory_space<vmem>>, vector<1x9x128xbf16>,
    return
  }
  func.func @transform_0(%arg0: i32) -> (i32, i32, i32, i32) {
    %c0_i32 = arith.constant 0 : i32
    %c0_i32_0 = arith.constant 0 : i32
    %c0_i32_1 = arith.constant 0 : i32
    %c0_i32_2 = arith.constant 0 : i32
    return %arg0, %c0_i32, %c0_i32_0, %c0_i32_1 : i32, i32, i32, i32
  }
  func.func @transform_1(%arg0: i32) -> (i32, i32, i32) {
    %c0_i32 = arith.constant 0 : i32
    %c0_i32_0 = arith.constant 0 : i32
    %c0_i32_1 = arith.constant 0 : i32
    %c0_i32_2 = arith.constant 0 : i32
    return %c0_i32, %c0_i32_0, %c0_i32_1 : i32, i32, i32
  }
  func.func @transform_2(%arg0: i32) -> (i32, i32, i32) {
    %c0_i32 = arith.constant 0 : i32
    %c0_i32_0 = arith.constant 0 : i32
    %c0_i32_1 = arith.constant 0 : i32
    return %arg0, %c0_i32, %c0_i32_0 : i32, i32, i32
  }
  func.func @transform_3(%arg0: i32) -> (i32, i32, i32) {
    %c0_i32 = arith.constant 0 : i32
    %c0_i32_0 = arith.constant 0 : i32
    %c0_i32_1 = arith.constant 0 : i32
    return %arg0, %c0_i32, %c0_i32_0 : i32, i32, i32
  }
  func.func @transform_4(%arg0: i32) -> (i32, i32, i32) {
    %c0_i32 = arith.constant 0 : i32
    %c0_i32_0 = arith.constant 0 : i32
    %c0_i32_1 = arith.constant 0 : i32
    return %arg0, %c0_i32, %c0_i32_0 : i32, i32, i32
  }
}

module attributes {stable_mosaic.version = 11 : i64} {
  func.func @kernel(%arg0: i32, %arg1: memref<1x5x5x64xbf16, #tpu.memory_space<vmem>>, %arg2: memref<16x64x128xbf16, #tpu.memory_space<vmem>>, %arg3: memref<1x128xf32, #tpu.memory_space<vmem>>, %arg4: memref<1x4x128xf32, #tpu.memory_space<vmem>>, %arg5: memref<4x128xf32, #tpu.memory_space<vmem>>) attributes {dimension_semantics = [#tpu.dimension_semantics<parallel>], iteration_bounds = array<i64: 2>, scalar_prefetch = 0 : i64, scratch_operands = 1 : i64, tpu.core_type = #tpu.core_type<tc>, window_params = [{transform_indices = @transform_0, window_bounds = array<i64: 1, 5, 5, 64>}, {pipeline_mode = #tpu.pipeline_mode<synchronous>, transform_indices = @transform_1, window_bounds = array<i64: 16, 64, 128>}, {pipeline_mode = #tpu.pipeline_mode<synchronous>, transform_indices = @transform_2, window_bounds = array<i64: 1, 128>}, {transform_indices = @transform_3, window_bounds = array<i64: 1, 4, 128>}]} {
    %c0 = arith.constant 0 : index
    %c0_0 = arith.constant 0 : index
    %c0_1 = arith.constant 0 : index
    %c0_2 = arith.constant 0 : index
    %0 = vector.load %arg1[%c0, %c0_0, %c0_1, %c0_2] : memref<1x5x5x64xbf16, #tpu.memory_space<vmem>>, vector<1x2x2x64xbf16>
    %1 = vector.shape_cast %0 : vector<1x2x2x64xbf16> to vector<2x2x64xbf16>
    %2 = vector.shape_cast %1 : vector<2x2x64xbf16> to vector<4x64xbf16>
    %c0_3 = arith.constant 0 : index
    %c0_4 = arith.constant 0 : index
    %c0_5 = arith.constant 0 : index
    %3 = vector.load %arg2[%c0_3, %c0_4, %c0_5] : memref<16x64x128xbf16, #tpu.memory_space<vmem>>, vector<1x64x128xbf16>
    %4 = vector.shape_cast %3 : vector<1x64x128xbf16> to vector<64x128xbf16>
    %cst = arith.constant dense<0.000000e+00> : vector<4x128xf32>
    %5 = tpu.matmul %2, %4, %cst {dimension_numbers = #tpu.dot_dimension_numbers<[1], [0], [0], [1], [0, 0, 1, 1], [], []>} : vector<4x64xbf16>, vector<64x128xbf16>, vector<4x128xf32> -> vector<4x128xf32>
    %c0_6 = arith.constant 0 : index
    %c0_7 = arith.constant 0 : index
    %6 = vector.load %arg5[%c0_6, %c0_7] : memref<4x128xf32, #tpu.memory_space<vmem>>, vector<4x128xf32>
    tpu.vector_store %arg5[%c0_6, %c0_7], %5 {strides = array<i32>} : memref<4x128xf32, #tpu.memory_space<vmem>>, vector<4x128xf32>,
    %c0_8 = arith.constant 0 : index
    %c0_9 = arith.constant 0 : index
    %c1 = arith.constant 1 : index
    %c0_10 = arith.constant 0 : index
    %7 = vector.load %arg1[%c0_8, %c0_9, %c1, %c0_10] : memref<1x5x5x64xbf16, #tpu.memory_space<vmem>>, vector<1x2x2x64xbf16>
    %8 = vector.shape_cast %7 : vector<1x2x2x64xbf16> to vector<2x2x64xbf16>
    %9 = vector.shape_cast %8 : vector<2x2x64xbf16> to vector<4x64xbf16>
    %c1_11 = arith.constant 1 : index
    %c0_12 = arith.constant 0 : index
    %c0_13 = arith.constant 0 : index
    %10 = vector.load %arg2[%c1_11, %c0_12, %c0_13] : memref<16x64x128xbf16, #tpu.memory_space<vmem>>, vector<1x64x128xbf16>
    %11 = vector.shape_cast %10 : vector<1x64x128xbf16> to vector<64x128xbf16>
    %cst_14 = arith.constant dense<0.000000e+00> : vector<4x128xf32>
    %12 = tpu.matmul %9, %11, %cst_14 {dimension_numbers = #tpu.dot_dimension_numbers<[1], [0], [0], [1], [0, 0, 1, 1], [], []>} : vector<4x64xbf16>, vector<64x128xbf16>, vector<4x128xf32> -> vector<4x128xf32>
    %c0_15 = arith.constant 0 : index
    %c0_16 = arith.constant 0 : index
    %13 = vector.load %arg5[%c0_15, %c0_16] : memref<4x128xf32, #tpu.memory_space<vmem>>, vector<4x128xf32>
    %14 = arith.addf %13, %12 : vector<4x128xf32>
    %c0_17 = arith.constant 0 : index
    %c0_18 = arith.constant 0 : index
    %15 = vector.load %arg5[%c0_17, %c0_18] : memref<4x128xf32, #tpu.memory_space<vmem>>, vector<4x128xf32>
    tpu.vector_store %arg5[%c0_17, %c0_18], %14 {strides = array<i32>} : memref<4x128xf32, #tpu.memory_space<vmem>>, vector<4x128xf32>,
    %c0_19 = arith.constant 0 : index
    %c0_20 = arith.constant 0 : index
    %c2 = arith.constant 2 : index
    %c0_21 = arith.constant 0 : index
    %16 = vector.load %arg1[%c0_19, %c0_20, %c2, %c0_21] : memref<1x5x5x64xbf16, #tpu.memory_space<vmem>>, vector<1x2x2x64xbf16>
    %17 = vector.shape_cast %16 : vector<1x2x2x64xbf16> to vector<2x2x64xbf16>
    %18 = vector.shape_cast %17 : vector<2x2x64xbf16> to vector<4x64xbf16>
    %c2_22 = arith.constant 2 : index
    %c0_23 = arith.constant 0 : index
    %c0_24 = arith.constant 0 : index
    %19 = vector.load %arg2[%c2_22, %c0_23, %c0_24] : memref<16x64x128xbf16, #tpu.memory_space<vmem>>, vector<1x64x128xbf16>
    %20 = vector.shape_cast %19 : vector<1x64x128xbf16> to vector<64x128xbf16>
    %cst_25 = arith.constant dense<0.000000e+00> : vector<4x128xf32>
    %21 = tpu.matmul %18, %20, %cst_25 {dimension_numbers = #tpu.dot_dimension_numbers<[1], [0], [0], [1], [0, 0, 1, 1], [], []>} : vector<4x64xbf16>, vector<64x128xbf16>, vector<4x128xf32> -> vector<4x128xf32>
    %c0_26 = arith.constant 0 : index
    %c0_27 = arith.constant 0 : index
    %22 = vector.load %arg5[%c0_26, %c0_27] : memref<4x128xf32, #tpu.memory_space<vmem>>, vector<4x128xf32>
    %23 = arith.addf %22, %21 : vector<4x128xf32>
    %c0_28 = arith.constant 0 : index
    %c0_29 = arith.constant 0 : index
    %24 = vector.load %arg5[%c0_28, %c0_29] : memref<4x128xf32, #tpu.memory_space<vmem>>, vector<4x128xf32>
    tpu.vector_store %arg5[%c0_28, %c0_29], %23 {strides = array<i32>} : memref<4x128xf32, #tpu.memory_space<vmem>>, vector<4x128xf32>,
    %c0_30 = arith.constant 0 : index
    %c0_31 = arith.constant 0 : index
    %c3 = arith.constant 3 : index
    %c0_32 = arith.constant 0 : index
    %25 = vector.load %arg1[%c0_30, %c0_31, %c3, %c0_32] : memref<1x5x5x64xbf16, #tpu.memory_space<vmem>>, vector<1x2x2x64xbf16>
    %26 = vector.shape_cast %25 : vector<1x2x2x64xbf16> to vector<2x2x64xbf16>
    %27 = vector.shape_cast %26 : vector<2x2x64xbf16> to vector<4x64xbf16>
    %c3_33 = arith.constant 3 : index
    %c0_34 = arith.constant 0 : index
    %c0_35 = arith.constant 0 : index
    %28 = vector.load %arg2[%c3_33, %c0_34, %c0_35] : memref<16x64x128xbf16, #tpu.memory_space<vmem>>, vector<1x64x128xbf16>
    %29 = vector.shape_cast %28 : vector<1x64x128xbf16> to vector<64x128xbf16>
    %cst_36 = arith.constant dense<0.000000e+00> : vector<4x128xf32>
    %30 = tpu.matmul %27, %29, %cst_36 {dimension_numbers = #tpu.dot_dimension_numbers<[1], [0], [0], [1], [0, 0, 1, 1], [], []>} : vector<4x64xbf16>, vector<64x128xbf16>, vector<4x128xf32> -> vector<4x128xf32>
    %c0_37 = arith.constant 0 : index
    %c0_38 = arith.constant 0 : index
    %31 = vector.load %arg5[%c0_37, %c0_38] : memref<4x128xf32, #tpu.memory_space<vmem>>, vector<4x128xf32>
    %32 = arith.addf %31, %30 : vector<4x128xf32>
    %c0_39 = arith.constant 0 : index
    %c0_40 = arith.constant 0 : index
    %33 = vector.load %arg5[%c0_39, %c0_40] : memref<4x128xf32, #tpu.memory_space<vmem>>, vector<4x128xf32>
    tpu.vector_store %arg5[%c0_39, %c0_40], %32 {strides = array<i32>} : memref<4x128xf32, #tpu.memory_space<vmem>>, vector<4x128xf32>,
    %c0_41 = arith.constant 0 : index
    %c1_42 = arith.constant 1 : index
    %c0_43 = arith.constant 0 : index
    %c0_44 = arith.constant 0 : index
    %34 = vector.load %arg1[%c0_41, %c1_42, %c0_43, %c0_44] : memref<1x5x5x64xbf16, #tpu.memory_space<vmem>>, vector<1x2x2x64xbf16>
    %35 = vector.shape_cast %34 : vector<1x2x2x64xbf16> to vector<2x2x64xbf16>
    %36 = vector.shape_cast %35 : vector<2x2x64xbf16> to vector<4x64xbf16>
    %c4 = arith.constant 4 : index
    %c0_45 = arith.constant 0 : index
    %c0_46 = arith.constant 0 : index
    %37 = vector.load %arg2[%c4, %c0_45, %c0_46] : memref<16x64x128xbf16, #tpu.memory_space<vmem>>, vector<1x64x128xbf16>
    %38 = vector.shape_cast %37 : vector<1x64x128xbf16> to vector<64x128xbf16>
    %cst_47 = arith.constant dense<0.000000e+00> : vector<4x128xf32>
    %39 = tpu.matmul %36, %38, %cst_47 {dimension_numbers = #tpu.dot_dimension_numbers<[1], [0], [0], [1], [0, 0, 1, 1], [], []>} : vector<4x64xbf16>, vector<64x128xbf16>, vector<4x128xf32> -> vector<4x128xf32>
    %c0_48 = arith.constant 0 : index
    %c0_49 = arith.constant 0 : index
    %40 = vector.load %arg5[%c0_48, %c0_49] : memref<4x128xf32, #tpu.memory_space<vmem>>, vector<4x128xf32>
    %41 = arith.addf %40, %39 : vector<4x128xf32>
    %c0_50 = arith.constant 0 : index
    %c0_51 = arith.constant 0 : index
    %42 = vector.load %arg5[%c0_50, %c0_51] : memref<4x128xf32, #tpu.memory_space<vmem>>, vector<4x128xf32>
    tpu.vector_store %arg5[%c0_50, %c0_51], %41 {strides = array<i32>} : memref<4x128xf32, #tpu.memory_space<vmem>>, vector<4x128xf32>,
    %c0_52 = arith.constant 0 : index
    %c1_53 = arith.constant 1 : index
    %c1_54 = arith.constant 1 : index
    %c0_55 = arith.constant 0 : index
    %43 = vector.load %arg1[%c0_52, %c1_53, %c1_54, %c0_55] : memref<1x5x5x64xbf16, #tpu.memory_space<vmem>>, vector<1x2x2x64xbf16>
    %44 = vector.shape_cast %43 : vector<1x2x2x64xbf16> to vector<2x2x64xbf16>
    %45 = vector.shape_cast %44 : vector<2x2x64xbf16> to vector<4x64xbf16>
    %c5 = arith.constant 5 : index
    %c0_56 = arith.constant 0 : index
    %c0_57 = arith.constant 0 : index
    %46 = vector.load %arg2[%c5, %c0_56, %c0_57] : memref<16x64x128xbf16, #tpu.memory_space<vmem>>, vector<1x64x128xbf16>
    %47 = vector.shape_cast %46 : vector<1x64x128xbf16> to vector<64x128xbf16>
    %cst_58 = arith.constant dense<0.000000e+00> : vector<4x128xf32>
    %48 = tpu.matmul %45, %47, %cst_58 {dimension_numbers = #tpu.dot_dimension_numbers<[1], [0], [0], [1], [0, 0, 1, 1], [], []>} : vector<4x64xbf16>, vector<64x128xbf16>, vector<4x128xf32> -> vector<4x128xf32>
    %c0_59 = arith.constant 0 : index
    %c0_60 = arith.constant 0 : index
    %49 = vector.load %arg5[%c0_59, %c0_60] : memref<4x128xf32, #tpu.memory_space<vmem>>, vector<4x128xf32>
    %50 = arith.addf %49, %48 : vector<4x128xf32>
    %c0_61 = arith.constant 0 : index
    %c0_62 = arith.constant 0 : index
    %51 = vector.load %arg5[%c0_61, %c0_62] : memref<4x128xf32, #tpu.memory_space<vmem>>, vector<4x128xf32>
    tpu.vector_store %arg5[%c0_61, %c0_62], %50 {strides = array<i32>} : memref<4x128xf32, #tpu.memory_space<vmem>>, vector<4x128xf32>,
    %c0_63 = arith.constant 0 : index
    %c1_64 = arith.constant 1 : index
    %c2_65 = arith.constant 2 : index
    %c0_66 = arith.constant 0 : index
    %52 = vector.load %arg1[%c0_63, %c1_64, %c2_65, %c0_66] : memref<1x5x5x64xbf16, #tpu.memory_space<vmem>>, vector<1x2x2x64xbf16>
    %53 = vector.shape_cast %52 : vector<1x2x2x64xbf16> to vector<2x2x64xbf16>
    %54 = vector.shape_cast %53 : vector<2x2x64xbf16> to vector<4x64xbf16>
    %c6 = arith.constant 6 : index
    %c0_67 = arith.constant 0 : index
    %c0_68 = arith.constant 0 : index
    %55 = vector.load %arg2[%c6, %c0_67, %c0_68] : memref<16x64x128xbf16, #tpu.memory_space<vmem>>, vector<1x64x128xbf16>
    %56 = vector.shape_cast %55 : vector<1x64x128xbf16> to vector<64x128xbf16>
    %cst_69 = arith.constant dense<0.000000e+00> : vector<4x128xf32>
    %57 = tpu.matmul %54, %56, %cst_69 {dimension_numbers = #tpu.dot_dimension_numbers<[1], [0], [0], [1], [0, 0, 1, 1], [], []>} : vector<4x64xbf16>, vector<64x128xbf16>, vector<4x128xf32> -> vector<4x128xf32>
    %c0_70 = arith.constant 0 : index
    %c0_71 = arith.constant 0 : index
    %58 = vector.load %arg5[%c0_70, %c0_71] : memref<4x128xf32, #tpu.memory_space<vmem>>, vector<4x128xf32>
    %59 = arith.addf %58, %57 : vector<4x128xf32>
    %c0_72 = arith.constant 0 : index
    %c0_73 = arith.constant 0 : index
    %60 = vector.load %arg5[%c0_72, %c0_73] : memref<4x128xf32, #tpu.memory_space<vmem>>, vector<4x128xf32>
    tpu.vector_store %arg5[%c0_72, %c0_73], %59 {strides = array<i32>} : memref<4x128xf32, #tpu.memory_space<vmem>>, vector<4x128xf32>,
    %c0_74 = arith.constant 0 : index
    %c1_75 = arith.constant 1 : index
    %c3_76 = arith.constant 3 : index
    %c0_77 = arith.constant 0 : index
    %61 = vector.load %arg1[%c0_74, %c1_75, %c3_76, %c0_77] : memref<1x5x5x64xbf16, #tpu.memory_space<vmem>>, vector<1x2x2x64xbf16>
    %62 = vector.shape_cast %61 : vector<1x2x2x64xbf16> to vector<2x2x64xbf16>
    %63 = vector.shape_cast %62 : vector<2x2x64xbf16> to vector<4x64xbf16>
    %c7 = arith.constant 7 : index
    %c0_78 = arith.constant 0 : index
    %c0_79 = arith.constant 0 : index
    %64 = vector.load %arg2[%c7, %c0_78, %c0_79] : memref<16x64x128xbf16, #tpu.memory_space<vmem>>, vector<1x64x128xbf16>
    %65 = vector.shape_cast %64 : vector<1x64x128xbf16> to vector<64x128xbf16>
    %cst_80 = arith.constant dense<0.000000e+00> : vector<4x128xf32>
    %66 = tpu.matmul %63, %65, %cst_80 {dimension_numbers = #tpu.dot_dimension_numbers<[1], [0], [0], [1], [0, 0, 1, 1], [], []>} : vector<4x64xbf16>, vector<64x128xbf16>, vector<4x128xf32> -> vector<4x128xf32>
    %c0_81 = arith.constant 0 : index
    %c0_82 = arith.constant 0 : index
    %67 = vector.load %arg5[%c0_81, %c0_82] : memref<4x128xf32, #tpu.memory_space<vmem>>, vector<4x128xf32>
    %68 = arith.addf %67, %66 : vector<4x128xf32>
    %c0_83 = arith.constant 0 : index
    %c0_84 = arith.constant 0 : index
    %69 = vector.load %arg5[%c0_83, %c0_84] : memref<4x128xf32, #tpu.memory_space<vmem>>, vector<4x128xf32>
    tpu.vector_store %arg5[%c0_83, %c0_84], %68 {strides = array<i32>} : memref<4x128xf32, #tpu.memory_space<vmem>>, vector<4x128xf32>,
    %c0_85 = arith.constant 0 : index
    %c2_86 = arith.constant 2 : index
    %c0_87 = arith.constant 0 : index
    %c0_88 = arith.constant 0 : index
    %70 = vector.load %arg1[%c0_85, %c2_86, %c0_87, %c0_88] : memref<1x5x5x64xbf16, #tpu.memory_space<vmem>>, vector<1x2x2x64xbf16>
    %71 = vector.shape_cast %70 : vector<1x2x2x64xbf16> to vector<2x2x64xbf16>
    %72 = vector.shape_cast %71 : vector<2x2x64xbf16> to vector<4x64xbf16>
    %c8 = arith.constant 8 : index
    %c0_89 = arith.constant 0 : index
    %c0_90 = arith.constant 0 : index
    %73 = vector.load %arg2[%c8, %c0_89, %c0_90] : memref<16x64x128xbf16, #tpu.memory_space<vmem>>, vector<1x64x128xbf16>
    %74 = vector.shape_cast %73 : vector<1x64x128xbf16> to vector<64x128xbf16>
    %cst_91 = arith.constant dense<0.000000e+00> : vector<4x128xf32>
    %75 = tpu.matmul %72, %74, %cst_91 {dimension_numbers = #tpu.dot_dimension_numbers<[1], [0], [0], [1], [0, 0, 1, 1], [], []>} : vector<4x64xbf16>, vector<64x128xbf16>, vector<4x128xf32> -> vector<4x128xf32>
    %c0_92 = arith.constant 0 : index
    %c0_93 = arith.constant 0 : index
    %76 = vector.load %arg5[%c0_92, %c0_93] : memref<4x128xf32, #tpu.memory_space<vmem>>, vector<4x128xf32>
    %77 = arith.addf %76, %75 : vector<4x128xf32>
    %c0_94 = arith.constant 0 : index
    %c0_95 = arith.constant 0 : index
    %78 = vector.load %arg5[%c0_94, %c0_95] : memref<4x128xf32, #tpu.memory_space<vmem>>, vector<4x128xf32>
    tpu.vector_store %arg5[%c0_94, %c0_95], %77 {strides = array<i32>} : memref<4x128xf32, #tpu.memory_space<vmem>>, vector<4x128xf32>,
    %c0_96 = arith.constant 0 : index
    %c2_97 = arith.constant 2 : index
    %c1_98 = arith.constant 1 : index
    %c0_99 = arith.constant 0 : index
    %79 = vector.load %arg1[%c0_96, %c2_97, %c1_98, %c0_99] : memref<1x5x5x64xbf16, #tpu.memory_space<vmem>>, vector<1x2x2x64xbf16>
    %80 = vector.shape_cast %79 : vector<1x2x2x64xbf16> to vector<2x2x64xbf16>
    %81 = vector.shape_cast %80 : vector<2x2x64xbf16> to vector<4x64xbf16>
    %c9 = arith.constant 9 : index
    %c0_100 = arith.constant 0 : index
    %c0_101 = arith.constant 0 : index
    %82 = vector.load %arg2[%c9, %c0_100, %c0_101] : memref<16x64x128xbf16, #tpu.memory_space<vmem>>, vector<1x64x128xbf16>
    %83 = vector.shape_cast %82 : vector<1x64x128xbf16> to vector<64x128xbf16>
    %cst_102 = arith.constant dense<0.000000e+00> : vector<4x128xf32>
    %84 = tpu.matmul %81, %83, %cst_102 {dimension_numbers = #tpu.dot_dimension_numbers<[1], [0], [0], [1], [0, 0, 1, 1], [], []>} : vector<4x64xbf16>, vector<64x128xbf16>, vector<4x128xf32> -> vector<4x128xf32>
    %c0_103 = arith.constant 0 : index
    %c0_104 = arith.constant 0 : index
    %85 = vector.load %arg5[%c0_103, %c0_104] : memref<4x128xf32, #tpu.memory_space<vmem>>, vector<4x128xf32>
    %86 = arith.addf %85, %84 : vector<4x128xf32>
    %c0_105 = arith.constant 0 : index
    %c0_106 = arith.constant 0 : index
    %87 = vector.load %arg5[%c0_105, %c0_106] : memref<4x128xf32, #tpu.memory_space<vmem>>, vector<4x128xf32>
    tpu.vector_store %arg5[%c0_105, %c0_106], %86 {strides = array<i32>} : memref<4x128xf32, #tpu.memory_space<vmem>>, vector<4x128xf32>,
    %c0_107 = arith.constant 0 : index
    %c2_108 = arith.constant 2 : index
    %c2_109 = arith.constant 2 : index
    %c0_110 = arith.constant 0 : index
    %88 = vector.load %arg1[%c0_107, %c2_108, %c2_109, %c0_110] : memref<1x5x5x64xbf16, #tpu.memory_space<vmem>>, vector<1x2x2x64xbf16>
    %89 = vector.shape_cast %88 : vector<1x2x2x64xbf16> to vector<2x2x64xbf16>
    %90 = vector.shape_cast %89 : vector<2x2x64xbf16> to vector<4x64xbf16>
    %c10 = arith.constant 10 : index
    %c0_111 = arith.constant 0 : index
    %c0_112 = arith.constant 0 : index
    %91 = vector.load %arg2[%c10, %c0_111, %c0_112] : memref<16x64x128xbf16, #tpu.memory_space<vmem>>, vector<1x64x128xbf16>
    %92 = vector.shape_cast %91 : vector<1x64x128xbf16> to vector<64x128xbf16>
    %cst_113 = arith.constant dense<0.000000e+00> : vector<4x128xf32>
    %93 = tpu.matmul %90, %92, %cst_113 {dimension_numbers = #tpu.dot_dimension_numbers<[1], [0], [0], [1], [0, 0, 1, 1], [], []>} : vector<4x64xbf16>, vector<64x128xbf16>, vector<4x128xf32> -> vector<4x128xf32>
    %c0_114 = arith.constant 0 : index
    %c0_115 = arith.constant 0 : index
    %94 = vector.load %arg5[%c0_114, %c0_115] : memref<4x128xf32, #tpu.memory_space<vmem>>, vector<4x128xf32>
    %95 = arith.addf %94, %93 : vector<4x128xf32>
    %c0_116 = arith.constant 0 : index
    %c0_117 = arith.constant 0 : index
    %96 = vector.load %arg5[%c0_116, %c0_117] : memref<4x128xf32, #tpu.memory_space<vmem>>, vector<4x128xf32>
    tpu.vector_store %arg5[%c0_116, %c0_117], %95 {strides = array<i32>} : memref<4x128xf32, #tpu.memory_space<vmem>>, vector<4x128xf32>,
    %c0_118 = arith.constant 0 : index
    %c2_119 = arith.constant 2 : index
    %c3_120 = arith.constant 3 : index
    %c0_121 = arith.constant 0 : index
    %97 = vector.load %arg1[%c0_118, %c2_119, %c3_120, %c0_121] : memref<1x5x5x64xbf16, #tpu.memory_space<vmem>>, vector<1x2x2x64xbf16>
    %98 = vector.shape_cast %97 : vector<1x2x2x64xbf16> to vector<2x2x64xbf16>
    %99 = vector.shape_cast %98 : vector<2x2x64xbf16> to vector<4x64xbf16>
    %c11 = arith.constant 11 : index
    %c0_122 = arith.constant 0 : index
    %c0_123 = arith.constant 0 : index
    %100 = vector.load %arg2[%c11, %c0_122, %c0_123] : memref<16x64x128xbf16, #tpu.memory_space<vmem>>, vector<1x64x128xbf16>
    %101 = vector.shape_cast %100 : vector<1x64x128xbf16> to vector<64x128xbf16>
    %cst_124 = arith.constant dense<0.000000e+00> : vector<4x128xf32>
    %102 = tpu.matmul %99, %101, %cst_124 {dimension_numbers = #tpu.dot_dimension_numbers<[1], [0], [0], [1], [0, 0, 1, 1], [], []>} : vector<4x64xbf16>, vector<64x128xbf16>, vector<4x128xf32> -> vector<4x128xf32>
    %c0_125 = arith.constant 0 : index
    %c0_126 = arith.constant 0 : index
    %103 = vector.load %arg5[%c0_125, %c0_126] : memref<4x128xf32, #tpu.memory_space<vmem>>, vector<4x128xf32>
    %104 = arith.addf %103, %102 : vector<4x128xf32>
    %c0_127 = arith.constant 0 : index
    %c0_128 = arith.constant 0 : index
    %105 = vector.load %arg5[%c0_127, %c0_128] : memref<4x128xf32, #tpu.memory_space<vmem>>, vector<4x128xf32>
    tpu.vector_store %arg5[%c0_127, %c0_128], %104 {strides = array<i32>} : memref<4x128xf32, #tpu.memory_space<vmem>>, vector<4x128xf32>,
    %c0_129 = arith.constant 0 : index
    %c3_130 = arith.constant 3 : index
    %c0_131 = arith.constant 0 : index
    %c0_132 = arith.constant 0 : index
    %106 = vector.load %arg1[%c0_129, %c3_130, %c0_131, %c0_132] : memref<1x5x5x64xbf16, #tpu.memory_space<vmem>>, vector<1x2x2x64xbf16>
    %107 = vector.shape_cast %106 : vector<1x2x2x64xbf16> to vector<2x2x64xbf16>
    %108 = vector.shape_cast %107 : vector<2x2x64xbf16> to vector<4x64xbf16>
    %c12 = arith.constant 12 : index
    %c0_133 = arith.constant 0 : index
    %c0_134 = arith.constant 0 : index
    %109 = vector.load %arg2[%c12, %c0_133, %c0_134] : memref<16x64x128xbf16, #tpu.memory_space<vmem>>, vector<1x64x128xbf16>
    %110 = vector.shape_cast %109 : vector<1x64x128xbf16> to vector<64x128xbf16>
    %cst_135 = arith.constant dense<0.000000e+00> : vector<4x128xf32>
    %111 = tpu.matmul %108, %110, %cst_135 {dimension_numbers = #tpu.dot_dimension_numbers<[1], [0], [0], [1], [0, 0, 1, 1], [], []>} : vector<4x64xbf16>, vector<64x128xbf16>, vector<4x128xf32> -> vector<4x128xf32>
    %c0_136 = arith.constant 0 : index
    %c0_137 = arith.constant 0 : index
    %112 = vector.load %arg5[%c0_136, %c0_137] : memref<4x128xf32, #tpu.memory_space<vmem>>, vector<4x128xf32>
    %113 = arith.addf %112, %111 : vector<4x128xf32>
    %c0_138 = arith.constant 0 : index
    %c0_139 = arith.constant 0 : index
    %114 = vector.load %arg5[%c0_138, %c0_139] : memref<4x128xf32, #tpu.memory_space<vmem>>, vector<4x128xf32>
    tpu.vector_store %arg5[%c0_138, %c0_139], %113 {strides = array<i32>} : memref<4x128xf32, #tpu.memory_space<vmem>>, vector<4x128xf32>,
    %c0_140 = arith.constant 0 : index
    %c3_141 = arith.constant 3 : index
    %c1_142 = arith.constant 1 : index
    %c0_143 = arith.constant 0 : index
    %115 = vector.load %arg1[%c0_140, %c3_141, %c1_142, %c0_143] : memref<1x5x5x64xbf16, #tpu.memory_space<vmem>>, vector<1x2x2x64xbf16>
    %116 = vector.shape_cast %115 : vector<1x2x2x64xbf16> to vector<2x2x64xbf16>
    %117 = vector.shape_cast %116 : vector<2x2x64xbf16> to vector<4x64xbf16>
    %c13 = arith.constant 13 : index
    %c0_144 = arith.constant 0 : index
    %c0_145 = arith.constant 0 : index
    %118 = vector.load %arg2[%c13, %c0_144, %c0_145] : memref<16x64x128xbf16, #tpu.memory_space<vmem>>, vector<1x64x128xbf16>
    %119 = vector.shape_cast %118 : vector<1x64x128xbf16> to vector<64x128xbf16>
    %cst_146 = arith.constant dense<0.000000e+00> : vector<4x128xf32>
    %120 = tpu.matmul %117, %119, %cst_146 {dimension_numbers = #tpu.dot_dimension_numbers<[1], [0], [0], [1], [0, 0, 1, 1], [], []>} : vector<4x64xbf16>, vector<64x128xbf16>, vector<4x128xf32> -> vector<4x128xf32>
    %c0_147 = arith.constant 0 : index
    %c0_148 = arith.constant 0 : index
    %121 = vector.load %arg5[%c0_147, %c0_148] : memref<4x128xf32, #tpu.memory_space<vmem>>, vector<4x128xf32>
    %122 = arith.addf %121, %120 : vector<4x128xf32>
    %c0_149 = arith.constant 0 : index
    %c0_150 = arith.constant 0 : index
    %123 = vector.load %arg5[%c0_149, %c0_150] : memref<4x128xf32, #tpu.memory_space<vmem>>, vector<4x128xf32>
    tpu.vector_store %arg5[%c0_149, %c0_150], %122 {strides = array<i32>} : memref<4x128xf32, #tpu.memory_space<vmem>>, vector<4x128xf32>,
    %c0_151 = arith.constant 0 : index
    %c3_152 = arith.constant 3 : index
    %c2_153 = arith.constant 2 : index
    %c0_154 = arith.constant 0 : index
    %124 = vector.load %arg1[%c0_151, %c3_152, %c2_153, %c0_154] : memref<1x5x5x64xbf16, #tpu.memory_space<vmem>>, vector<1x2x2x64xbf16>
    %125 = vector.shape_cast %124 : vector<1x2x2x64xbf16> to vector<2x2x64xbf16>
    %126 = vector.shape_cast %125 : vector<2x2x64xbf16> to vector<4x64xbf16>
    %c14 = arith.constant 14 : index
    %c0_155 = arith.constant 0 : index
    %c0_156 = arith.constant 0 : index
    %127 = vector.load %arg2[%c14, %c0_155, %c0_156] : memref<16x64x128xbf16, #tpu.memory_space<vmem>>, vector<1x64x128xbf16>
    %128 = vector.shape_cast %127 : vector<1x64x128xbf16> to vector<64x128xbf16>
    %cst_157 = arith.constant dense<0.000000e+00> : vector<4x128xf32>
    %129 = tpu.matmul %126, %128, %cst_157 {dimension_numbers = #tpu.dot_dimension_numbers<[1], [0], [0], [1], [0, 0, 1, 1], [], []>} : vector<4x64xbf16>, vector<64x128xbf16>, vector<4x128xf32> -> vector<4x128xf32>
    %c0_158 = arith.constant 0 : index
    %c0_159 = arith.constant 0 : index
    %130 = vector.load %arg5[%c0_158, %c0_159] : memref<4x128xf32, #tpu.memory_space<vmem>>, vector<4x128xf32>
    %131 = arith.addf %130, %129 : vector<4x128xf32>
    %c0_160 = arith.constant 0 : index
    %c0_161 = arith.constant 0 : index
    %132 = vector.load %arg5[%c0_160, %c0_161] : memref<4x128xf32, #tpu.memory_space<vmem>>, vector<4x128xf32>
    tpu.vector_store %arg5[%c0_160, %c0_161], %131 {strides = array<i32>} : memref<4x128xf32, #tpu.memory_space<vmem>>, vector<4x128xf32>,
    %c0_162 = arith.constant 0 : index
    %c3_163 = arith.constant 3 : index
    %c3_164 = arith.constant 3 : index
    %c0_165 = arith.constant 0 : index
    %133 = vector.load %arg1[%c0_162, %c3_163, %c3_164, %c0_165] : memref<1x5x5x64xbf16, #tpu.memory_space<vmem>>, vector<1x2x2x64xbf16>
    %134 = vector.shape_cast %133 : vector<1x2x2x64xbf16> to vector<2x2x64xbf16>
    %135 = vector.shape_cast %134 : vector<2x2x64xbf16> to vector<4x64xbf16>
    %c15 = arith.constant 15 : index
    %c0_166 = arith.constant 0 : index
    %c0_167 = arith.constant 0 : index
    %136 = vector.load %arg2[%c15, %c0_166, %c0_167] : memref<16x64x128xbf16, #tpu.memory_space<vmem>>, vector<1x64x128xbf16>
    %137 = vector.shape_cast %136 : vector<1x64x128xbf16> to vector<64x128xbf16>
    %cst_168 = arith.constant dense<0.000000e+00> : vector<4x128xf32>
    %138 = tpu.matmul %135, %137, %cst_168 {dimension_numbers = #tpu.dot_dimension_numbers<[1], [0], [0], [1], [0, 0, 1, 1], [], []>} : vector<4x64xbf16>, vector<64x128xbf16>, vector<4x128xf32> -> vector<4x128xf32>
    %c0_169 = arith.constant 0 : index
    %c0_170 = arith.constant 0 : index
    %139 = vector.load %arg5[%c0_169, %c0_170] : memref<4x128xf32, #tpu.memory_space<vmem>>, vector<4x128xf32>
    %140 = arith.addf %139, %138 : vector<4x128xf32>
    %c0_171 = arith.constant 0 : index
    %c0_172 = arith.constant 0 : index
    %141 = vector.load %arg5[%c0_171, %c0_172] : memref<4x128xf32, #tpu.memory_space<vmem>>, vector<4x128xf32>
    tpu.vector_store %arg5[%c0_171, %c0_172], %140 {strides = array<i32>} : memref<4x128xf32, #tpu.memory_space<vmem>>, vector<4x128xf32>,
    %c0_173 = arith.constant 0 : index
    %c0_174 = arith.constant 0 : index
    %142 = vector.load %arg5[%c0_173, %c0_174] : memref<4x128xf32, #tpu.memory_space<vmem>>, vector<4x128xf32>
    %c0_175 = arith.constant 0 : index
    %c0_176 = arith.constant 0 : index
    %143 = vector.load %arg3[%c0_175, %c0_176] : memref<1x128xf32, #tpu.memory_space<vmem>>, vector<1x128xf32>
    %144 = vector.broadcast %143 : vector<1x128xf32> to vector<4x128xf32>
    %145 = arith.addf %142, %144 : vector<4x128xf32>
    %146 = math.absf %145 : vector<4x128xf32>
    %cst_177 = arith.constant 0.000000e+00 : f32
    %147 = vector.broadcast %cst_177 : f32 to vector<4x128xf32>
    %148 = arith.subf %147, %146 : vector<4x128xf32>
    %149 = math.exp %148 : vector<4x128xf32>
    %cst_178 = arith.constant 1.000000e+00 : f32
    %150 = vector.broadcast %cst_178 : f32 to vector<4x128xf32>
    %151 = arith.addf %150, %149 : vector<4x128xf32>
    %152 = tpu.reciprocal %151 : vector<4x128xf32> -> vector<4x128xf32>
    %cst_179 = arith.constant 0.000000e+00 : f32
    %153 = vector.broadcast %cst_179 : f32 to vector<4x128xf32>
    %154 = arith.cmpf oge, %145, %153 : vector<4x128xf32>
    %155 = arith.mulf %149, %152 : vector<4x128xf32>
    %156 = arith.select %154, %152, %155 : vector<4x128xi1>, vector<4x128xf32>
    %c0_180 = arith.constant 0 : index
    %c0_181 = arith.constant 0 : index
    %c0_182 = arith.constant 0 : index
    %157 = vector.load %arg4[%c0_180, %c0_181, %c0_182] : memref<1x4x128xf32, #tpu.memory_space<vmem>>, vector<1x4x128xf32>
    %158 = vector.shape_cast %157 : vector<1x4x128xf32> to vector<4x128xf32>
    %159 = vector.shape_cast %156 : vector<4x128xf32> to vector<1x4x128xf32>
    tpu.vector_store %arg4[%c0_180, %c0_181, %c0_182], %159 {strides = array<i32>} : memref<1x4x128xf32, #tpu.memory_space<vmem>>, vector<1x4x128xf32>,
    return
  }
  func.func @transform_0(%arg0: i32) -> (i32, i32, i32, i32) {
    %c0_i32 = arith.constant 0 : i32
    %c0_i32_0 = arith.constant 0 : i32
    %c0_i32_1 = arith.constant 0 : i32
    %c0_i32_2 = arith.constant 0 : i32
    return %arg0, %c0_i32, %c0_i32_0, %c0_i32_1 : i32, i32, i32, i32
  }
  func.func @transform_1(%arg0: i32) -> (i32, i32, i32) {
    %c0_i32 = arith.constant 0 : i32
    %c0_i32_0 = arith.constant 0 : i32
    %c0_i32_1 = arith.constant 0 : i32
    %c0_i32_2 = arith.constant 0 : i32
    return %c0_i32, %c0_i32_0, %c0_i32_1 : i32, i32, i32
  }
  func.func @transform_2(%arg0: i32) -> (i32, i32) {
    %c0_i32 = arith.constant 0 : i32
    %c0_i32_0 = arith.constant 0 : i32
    %c0_i32_1 = arith.constant 0 : i32
    return %c0_i32, %c0_i32_0 : i32, i32
  }
  func.func @transform_3(%arg0: i32) -> (i32, i32, i32) {
    %c0_i32 = arith.constant 0 : i32
    %c0_i32_0 = arith.constant 0 : i32
    %c0_i32_1 = arith.constant 0 : i32
    return %arg0, %c0_i32, %c0_i32_0 : i32, i32, i32
  }
}

</mosaic_0001>

<bundles_post_ra>
// kernel: discriminator_forward.5
= control target key start
LH: loop header
LB: loop body
LE: loop exit
PB: predicated region body
PF: predicated region fallthrough
CT: control target
= control target key end

     0   :  { %s3658_s12 = smov 0   ;;  %s4095_s0 = inlined_call_operand.vmem [shape: bf16[2,17,17,32], index: 0, kind: input, shape index: {}]   ;;  %s4096_s1 = inlined_call_operand.vmem [shape: bf16[4,32,128], index: 1, kind: input, shape index: {}]   ;;  %s4097_s2 = inlined_call_operand.vmem [shape: f32[1,128], index: 2, kind: input, shape index: {}]   ;;  %s4098_s3 = inlined_call_operand.vmem [shape: bf16[2,256,128], index: 3, kind: output, shape index: {}]  }
   0x1 LB: > { %s2870_s13 = sadd.s32 4294967295, %s3636_s12   ;;  %p2874_p0 = scmp.ge.s32.totalorder %s3636_s12, 1  ;;  %s3636_s12 = sphi %s3658_s12, %s13_s12  }
   0x2   : > { %p137_p1 = scmp.lt.s32.totalorder %s3636_s12, 3 }
   0x4   : > { %p138_p2 = pnand %p2874_p0, %p137_p1 }
   0x5   : > { %v3590_v0 = vld [vmem:[%s4096_s1] sm:$0xff] (!%p138_p2)   ;;  %p161_p3 = scmp.lt.s32.totalorder (!%p138_p2), %s2870_s13, 1  ;;  %v3592_v2 = vld [vmem:[%s4096_s1 + $0x8] sm:$0xff] (!%p138_p2)   ;;  %v3597_v4 = vld [vmem:[%s4096_s1 + $0x10] sm:$0xff] (!%p138_p2)   ;;  %vm300_vm0 = vcmask (!%p138_p2), 261120  }
   0x6   : > { %141 = sbr.rel (%p138_p2) target bundleno = 404 (0x194), region = 32  ;;  %v3591_v1 = vld [vmem:[%s4096_s1 + $0x20] sm:$0xff] (!%p138_p2)   ;;  %3341 = vmatprep.subr.bf16.mxu1 (!%p138_p2), %v3590_v0  ;;  %v3593_v3 = vld [vmem:[%s4096_s1 + $0x28] sm:$0xff] (!%p138_p2)   ;;  %v3599_v5 = vld [vmem:[%s4096_s1 + $0x30] sm:$0xff] (!%p138_p2)   ;;  %vm590_vm1 = vsmask.f32 (!%p138_p2), 3328 }
   0x7   : > { %3413 = vmatprep.subr.bf16.mxu0 (!%p138_p2), %v3591_v1  ;;  %3342 = vmatpush3.bf16.msra.mxu1 (!%p138_p2), %v3590_v0  ;;  %v3615_v8 = vld [vmem:[%s4096_s1 + $0x18] sm:$0xff] (!%p138_p2)   ;;  %vm591_vm2 = vsmask.f32 (!%p138_p2), 7440 }
   0x8   : > { %3414 = vmatpush3.bf16.msra.mxu0 (!%p138_p2), %v3591_v1  ;;  %3343 = vmatprep.subr.bf16.mxu1 (!%p138_p2), %v3592_v2  ;;  %v3617_v21 = vld [vmem:[%s4096_s1 + $0x38] sm:$0xff] (!%p138_p2)   ;;  %vm3752_vm3 = vmor (!%p138_p2), %vm590_vm1, %vm591_vm2 }
   0x9   : > { %3415 = vmatprep.subr.bf16.mxu0 (!%p138_p2), %v3593_v3 }
   0xb   : > { %3344 = vmatpush3.bf16.msra.mxu1 (!%p138_p2), %v3592_v2 }
   0xc   : > { %3416 = vmatpush3.bf16.msra.mxu0 (!%p138_p2), %v3593_v3  ;;  %3377 = vmatprep.subr.bf16.mxu1 (!%p138_p2), %v3597_v4 }
   0xd   : > { %s4102_s13 = smov (!%p161_p3, %s2870_s13), 1  ;;  %3449 = vmatprep.subr.bf16.mxu0 %v3599_v5 }
   0xe   : > { %s3581_s22 = smul.u32 204, %s4102_s13  ;;  %s3141_s9 = sshll.u32 %s4102_s13, 7 }
   0xf   : > { %s4045_s14 = scalar_lea.vmem %s4098_s3, %s3141_s9 }
  0x10   : > { %s3690_s29 = scalar_lea.vmem %s4095_s0, %s3581_s22 }
  0x11   : > { %v3594_v6 = vld [vmem:[%s3690_s29] sm:$0xff]   ;;  %v3595_v7 = vld [vmem:[%s3690_s29 + $0xc] sm:$0xff]   ;;  %v3598_v10 = vld [vmem:[%s3690_s29 + $0x18] sm:$0xff]  }
  0x12   : > { %3345 = vmatprep.mubr.msk.bf16.mxu1 %vm300_vm0, %v3594_v6  ;;  %v3596_v9 = vld [vmem:[%s3690_s29 + $0xc] sm:$0xff]   ;;  %3417 = vmatprep.mubr.msk.bf16.mxu0 %vm300_vm0, %v3595_v7  ;;  %v3600_v11 = vld [vmem:[%s3690_s29 + $0x18] sm:$0xff]   ;;  %v3601_v12 = vld [vmem:[%s3690_s29 + $0x24] sm:$0xff]  }
  0x13   : > { %3346 = vmatmul.mubr.msk.bf16.vlgmr.msra.gmra.mrb[0].mxu1 %vm300_vm0, %v3596_v9  ;;  %3418 = vmatmul.mubr.msk.bf16.vlgmr.msra.gmra.mrb[0].mxu0 %vm300_vm0, %v3598_v10  ;;  %v3602_v13 = vld [vmem:[%s3690_s29 + $0x24] sm:$0xff]   ;;  %v3603_v14 = vld [vmem:[%s3690_s29 + $0x30] sm:$0xff]   ;;  %v3605_v16 = vld [vmem:[%s3690_s29 + $0x3c] sm:$0xff]  }
  0x14   : > { %3378 = vmatpush3.bf16.msra.mxu1 %v3597_v4  ;;  %3450 = vmatpush3.bf16.msra.mxu0 %v3599_v5  ;;  %v3604_v15 = vld [vmem:[%s3690_s29 + $0x30] sm:$0xff]   ;;  %v3606_v17 = vld [vmem:[%s3690_s29 + $0x3c] sm:$0xff]   ;;  %v3607_v18 = vld [vmem:[%s3690_s29 + $0x48] sm:$0xff]  }
  0x15   : > { %3349 = vmatprep.mubr.msk.bf16.mxu1 %vm300_vm0, %v3600_v11  ;;  %3421 = vmatprep.mubr.msk.bf16.mxu0 %vm300_vm0, %v3601_v12  ;;  %v3608_v19 = vld [vmem:[%s3690_s29 + $0x48] sm:$0xff]   ;;  %v3609_v20 = vld [vmem:[%s3690_s29 + $0x54] sm:$0xff]   ;;  %v3611_v23 = vld [vmem:[%s3690_s29 + $0x60] sm:$0xff]  }
  0x16   : > { %3379 = vmatprep.subr.bf16.mxu1 %v3615_v8  ;;  %3451 = vmatprep.subr.bf16.mxu0 %v3617_v21  ;;  %v3610_v22 = vld [vmem:[%s3690_s29 + $0x54] sm:$0xff]   ;;  %v3612_v24 = vld [vmem:[%s3690_s29 + $0x60] sm:$0xff]   ;;  %v3613_v25 = vld [vmem:[%s3690_s29 + $0x6c] sm:$0xff]  }
  0x17   : > { %v3614_v26 = vld [vmem:[%s3690_s29 + $0x6c] sm:$0xff]   ;;  %v3616_v27 = vld [vmem:[%s3690_s29 + $0x78] sm:$0xff]   ;;  %v3619_v29 = vld [vmem:[%s3690_s29 + $0x84] sm:$0xff]  }
  0x18   : > { %3380 = vmatpush3.bf16.msra.mxu1 %v3615_v8  ;;  %3452 = vmatpush3.bf16.msra.mxu0 %v3617_v21  ;;  %v3618_v28 = vld [vmem:[%s3690_s29 + $0x78] sm:$0xff]   ;;  %v542_v30 = vld [vmem:[%s3690_s29] sm:$0xf]  ;;  %v543_v31 = vld [vmem:[%s3690_s29 + $0x4] sm:$0xf] }
  0x19   : > { %v544_v32 = vld [vmem:[%s3690_s29 + $0x8] sm:$0x1]  ;;  %v594_v33 = vshrl.u32 %v542_v30, 16  ;;  %v597_v34 = vshll.u32 %v542_v30, 16  ;;  %v603_v35 = vshll.u32 %v543_v31, 16  ;;  %v607_v36 = vshrl.u32 %v543_v31, 16 }
  0x1a   : > { %v613_v37 = vshll.u32 %v544_v32, 16  ;;  %v3020_v38 = vld [vmem:[%s3690_s29 + $0xc] sm:$0xf]  ;;  %v3021_v41 = vld [vmem:[%s3690_s29 + $0x10] sm:$0xf]  ;;  %v3620_v52 = vld [vmem:[%s3690_s29 + $0x84] sm:$0xff]  }
  0x1b   : > { %3350 = vmatmul.mubr.msk.bf16.gmra.mrb[4].mxu1 %vm300_vm0, %v3602_v13  ;;  %3422 = vmatmul.mubr.msk.bf16.gmra.mrb[4].mxu0 %vm300_vm0, %v3603_v14  ;;  %v596_v39 = vrot.slane %v594_v33, 4  ;;  %v599_v40 = vrot.slane %v597_v34, 5  ;;  %v3022_v42 = vld [vmem:[%s3690_s29 + $0x14] sm:$0x1]  ;;  %v605_v43 = vrot.slane %v603_v35, 5  ;;  %v609_v44 = vrot.slane %v607_v36, 4 }
  0x1c   : > { %3353 = vmatprep.mubr.msk.bf16.mxu1 %vm300_vm0, %v3604_v15  ;;  %3425 = vmatprep.mubr.msk.bf16.mxu0 %vm300_vm0, %v3605_v16  ;;  %v615_v45 = vrot.slane %v613_v37, 5  ;;  %v1831_v46 = vshrl.u32 %v3020_v38, 16  ;;  %v545_v47 = vld [vmem:[%s3690_s29 + $0xc] sm:$0xf]  ;;  %v1834_v49 = vshll.u32 %v3020_v38, 16  ;;  %v1840_v50 = vshll.u32 %v3021_v41, 16 }
  0x1d   : > { %v600_v48 = vor.u32 %v599_v40, %v596_v39  ;;  %v1844_v51 = vshrl.u32 %v3021_v41, 16  ;;  %v610_v54 = vor.u32 %v609_v44, %v605_v43  ;;  %v1850_v56 = vshll.u32 %v3022_v42, 16  ;;  %v546_v57 = vld [vmem:[%s3690_s29 + $0x10] sm:$0xf]  ;;  %v547_v63 = vld [vmem:[%s3690_s29 + $0x14] sm:$0x1] }
  0x1e   : > { %v1833_v55 = vrot.slane %v1831_v46, 4  ;;  %v618_v58 = vshrl.u32 %v545_v47, 16  ;;  %v1836_v60 = vrot.slane %v1834_v49, 5  ;;  %v1842_v61 = vrot.slane %v1840_v50, 5  ;;  %v3621_v0 = vld [vmem:[%s3690_s29 + $0x90] sm:$0xff]   ;;  %v3623_v6 = vld [vmem:[%s3690_s29 + $0x9c] sm:$0xff]  }
  0x1f   : > { %v601_v59 = vrot.slane %v600_v48, 4  ;;  %v1846_v62 = vrot.slane %v1844_v51, 4  ;;  %v3622_v1 = vld [vmem:[%s3690_s29 + $0x90] sm:$0xff]   ;;  %v611_v2 = vrot.slane %v610_v54, 4  ;;  %v1852_v3 = vrot.slane %v1850_v56, 5  ;;  %v3624_v36 = vld [vmem:[%s3690_s29 + $0x9c] sm:$0xff]  }
  0x20   : > { %v620_v4 = vrot.slane %v618_v58, 4  ;;  %v621_v5 = vshll.u32 %v545_v47, 16  ;;  %v1837_v8 = vor.u32 %v1836_v60, %v1833_v55  ;;  %v627_v10 = vshll.u32 %v546_v57, 16  ;;  %v3023_v11 = vld [vmem:[%s3690_s29 + $0x18] sm:$0xf]  ;;  %v3625_v37 = vld [vmem:[%s3690_s29 + $0xa8] sm:$0xff]  }
  0x21   : > { %v606_v7 = vsel %vm3752_vm3, %v601_v59, %v605_v43  ;;  %v1847_v9 = vor.u32 %v1846_v62, %v1842_v61  ;;  %v616_v12 = vsel %vm3752_vm3, %v611_v2, %v615_v45  ;;  %v631_v14 = vshrl.u32 %v546_v57, 16  ;;  %v3024_v16 = vld [vmem:[%s3690_s29 + $0x1c] sm:$0xf]  ;;  %v548_v30 = vld [vmem:[%s3690_s29 + $0x18] sm:$0xf]  ;;  %v3626_v42 = vld [vmem:[%s3690_s29 + $0xa8] sm:$0xff]  }
  0x22   : > { %v623_v13 = vrot.slane %v621_v5, 5  ;;  %v637_v15 = vshll.u32 %v547_v63, 16  ;;  %v549_v35 = vld [vmem:[%s3690_s29 + $0x1c] sm:$0xf]  ;;  %v1868_v40 = vshrl.u32 %v3024_v16, 16  ;;  %v642_v46 = vshrl.u32 %v548_v30, 16 }
  0x23   : > { %3354 = vmatmul.mubr.msk.bf16.gmra.mrb[8].mxu1 %vm300_vm0, %v3606_v17  ;;  %3426 = vmatmul.mubr.msk.bf16.gmra.mrb[8].mxu0 %vm300_vm0, %v3607_v18  ;;  %v3768_v17 = vcombine.low %v606_v7, %v616_v12  ;;  %v1838_v18 = vrot.slane %v1837_v8, 4  ;;  %v550_v45 = vld [vmem:[%s3690_s29 + $0x20] sm:$0x1]  ;;  %v645_v47 = vshll.u32 %v548_v30, 16  ;;  %v3627_v48 = vld [vmem:[%s3690_s29 + $0xb4] sm:$0xff]   ;;  %v655_v58 = vshrl.u32 %v549_v35, 16 }
  0x24   : > { %3357 = vmatprep.mubr.msk.bf16.mxu1 %vm300_vm0, %v3608_v19  ;;  %3429 = vmatprep.mubr.msk.bf16.mxu0 %vm300_vm0, %v3609_v20  ;;  %v1848_v19 = vrot.slane %v1847_v9, 4  ;;  %v629_v20 = vrot.slane %v627_v10, 5  ;;  %v624_v21 = vor.u32 %v623_v13, %v620_v4  ;;  %v1870_v50 = vrot.slane %v1868_v40, 4  ;;  %v3026_v54 = vld [vmem:[%s3690_s29 + $0x24] sm:$0xf] }
  0x25   : > { %v644_v56 = vrot.slane %v642_v46, 4  ;;  %v647_v57 = vrot.slane %v645_v47, 5  ;;  %v3027_v59 = vld [vmem:[%s3690_s29 + $0x28] sm:$0xf]  ;;  %v661_v2 = vshll.u32 %v550_v45, 16  ;;  %v1882_v7 = vshll.u32 %v3026_v54, 16 }
  0x26   : > { %v625_v32 = vrot.slane %v624_v21, 4  ;;  %v1888_v8 = vshll.u32 %v3027_v59, 16  ;;  %v551_v13 = vld [vmem:[%s3690_s29 + $0x24] sm:$0xf] }
  0x27   : > { %v3629_v21 = vld [vmem:[%s3690_s29 + $0xc0] sm:$0xff]   ;;  %v669_v30 = vshll.u32 %v551_v13, 16 }
  0x28   : > { %v630_v43 = vsel %vm3752_vm3, %v625_v32, %v629_v20 }
  0x2b   : > { %3358 = vmatmul.mubr.msk.bf16.gmra.mrb[12].mxu1 %vm300_vm0, %v3610_v22  ;;  %3430 = vmatmul.mubr.msk.bf16.gmra.mrb[12].mxu0 %vm300_vm0, %v3611_v23  ;;  %v633_v22 = vrot.slane %v631_v14, 4  ;;  %v639_v23 = vrot.slane %v637_v15, 5  ;;  %v3628_v14 = vld [vmem:[%s3690_s29 + $0xb4] sm:$0xff]  }
  0x2c   : > { %3361 = vmatprep.mubr.msk.bf16.mxu1 %vm300_vm0, %v3612_v24  ;;  %3433 = vmatprep.mubr.msk.bf16.mxu0 %vm300_vm0, %v3613_v25  ;;  %v3025_v24 = vld [vmem:[%s3690_s29 + $0x20] sm:$0x1]  ;;  %v1855_v25 = vshrl.u32 %v3023_v11, 16 }
  0x2d   : > { %v634_v33 = vor.u32 %v633_v22, %v629_v20  ;;  %v1874_v41 = vshll.u32 %v3025_v24, 16  ;;  %v552_v20 = vld [vmem:[%s3690_s29 + $0x28] sm:$0xf] }
  0x2e   : > { %v1857_v34 = vrot.slane %v1855_v25, 4 }
  0x2f   : > { %v635_v44 = vrot.slane %v634_v33, 4  ;;  %v1876_v51 = vrot.slane %v1874_v41, 5  ;;  %v3030_v41 = vld [vmem:[%s3690_s29 + $0x34] sm:$0xf] }
  0x31   : > { %v640_v55 = vsel %vm3752_vm3, %v635_v44, %v639_v23 }
  0x32   : > { %v3794_v60 = vcombine.low %v630_v43, %v640_v55  ;;  %v1912_v55 = vshll.u32 %v3030_v41, 16 }
  0x33   : > { %3362 = vmatmul.mubr.msk.bf16.gmra.mrb[16].mxu1 %vm300_vm0, %v3614_v26  ;;  %3434 = vmatmul.mubr.msk.bf16.gmra.mrb[16].mxu0 %vm300_vm0, %v3616_v27  ;;  %v1843_v26 = vsel %vm3752_vm3, %v1838_v18, %v1842_v61  ;;  %v1853_v27 = vsel %vm3752_vm3, %v1848_v19, %v1852_v3  ;;  %v1879_v3 = vshrl.u32 %v3026_v54, 16  ;;  %v1890_v18 = vrot.slane %v1888_v8, 5  ;;  %v3031_v54 = vld [vmem:[%s3690_s29 + $0x38] sm:$0x1] }
  0x34   : > { %3365 = vmatprep.mubr.msk.bf16.mxu1 %vm300_vm0, %v3618_v28  ;;  %3437 = vmatprep.mubr.msk.bf16.mxu0 %vm300_vm0, %v3619_v29  ;;  %v1858_v28 = vshll.u32 %v3023_v11, 16  ;;  %v1864_v29 = vshll.u32 %v3024_v16, 16  ;;  %v3779_v31 = vcombine.low %v1843_v26, %v1853_v27  ;;  %v663_v11 = vrot.slane %v661_v2, 5 }
  0x35   : > { %v1881_v12 = vrot.slane %v1879_v3, 4  ;;  %v1884_v16 = vrot.slane %v1882_v7, 5  ;;  %v1892_v19 = vshrl.u32 %v3027_v59, 16  ;;  %v555_v59 = vld [vmem:[%s3690_s29 + $0x34] sm:$0xf]  ;;  %v1922_v3 = vshll.u32 %v3031_v54, 16 }
  0x36   : > { %v1860_v38 = vrot.slane %v1858_v28, 5  ;;  %v1866_v39 = vrot.slane %v1864_v29, 5  ;;  %v553_v28 = vld [vmem:[%s3690_s29 + $0x2c] sm:$0x1]  ;;  %v666_v29 = vshrl.u32 %v551_v13, 16 }
  0x37   : > { %v1885_v26 = vor.u32 %v1884_v16, %v1881_v12  ;;  %v1894_v27 = vrot.slane %v1892_v19, 4  ;;  %v685_v45 = vshll.u32 %v553_v28, 16  ;;  %v556_v7 = vld [vmem:[%s3690_s29 + $0x38] sm:$0x1]  ;;  %v3035_v54 = vld [vmem:[%s3690_s29 + $0x48] sm:$0xf] }
  0x38   : > { %v1861_v49 = vor.u32 %v1860_v38, %v1857_v34  ;;  %v1871_v62 = vor.u32 %v1870_v50, %v1866_v39  ;;  %v675_v34 = vshll.u32 %v552_v20, 16  ;;  %v668_v40 = vrot.slane %v666_v29, 4  ;;  %v557_v29 = vld [vmem:[%s3690_s29 + $0x3c] sm:$0xf] }
  0x39   : > { %v1886_v38 = vrot.slane %v1885_v26, 4 }
  0x3a   : > { %v1862_v61 = vrot.slane %v1861_v49, 4  ;;  %v1872_v5 = vrot.slane %v1871_v62, 4  ;;  %v677_v43 = vrot.slane %v675_v34, 5 }
  0x3b   : > { %3366 = vmatmul.mubr.msk.bf16.gmra.mrb[20].mxu1 %vm300_vm0, %v3620_v52  ;;  %3438 = vmatmul.mubr.msk.bf16.gmra.mrb[20].mxu0 %vm300_vm0, %v3621_v0  ;;  %v651_v52 = vshll.u32 %v549_v35, 16  ;;  %v648_v0 = vor.u32 %v647_v57, %v644_v56  ;;  %v679_v35 = vshrl.u32 %v552_v20, 16  ;;  %v1891_v46 = vsel %vm3752_vm3, %v1886_v38, %v1890_v18 }
  0x3c   : > { %3369 = vmatprep.mubr.msk.bf16.mxu1 %vm300_vm0, %v3622_v1  ;;  %3441 = vmatprep.mubr.msk.bf16.mxu0 %vm300_vm0, %v3623_v6  ;;  %v657_v1 = vrot.slane %v655_v58, 4  ;;  %v1867_v4 = vsel %vm3752_vm3, %v1862_v61, %v1866_v39  ;;  %v3028_v6 = vld [vmem:[%s3690_s29 + $0x2c] sm:$0x1]  ;;  %v1877_v15 = vsel %vm3752_vm3, %v1872_v5, %v1876_v51  ;;  %v1895_v39 = vor.u32 %v1894_v27, %v1890_v18 }
  0x3d   : > { %v653_v63 = vrot.slane %v651_v52, 5  ;;  %v649_v9 = vrot.slane %v648_v0, 4  ;;  %v3073_v22 = vcombine.low %v1867_v4, %v1877_v15  ;;  %v1898_v25 = vshll.u32 %v3028_v6, 16  ;;  %v3033_v15 = vld [vmem:[%s3690_s29 + $0x40] sm:$0xf] }
  0x3e   : > { %v681_v44 = vrot.slane %v679_v35, 4  ;;  %v1896_v47 = vrot.slane %v1895_v39, 4  ;;  %v687_v52 = vrot.slane %v685_v45, 5  ;;  %v1914_v0 = vrot.slane %v1912_v55, 5  ;;  %v558_v39 = vld [vmem:[%s3690_s29 + $0x40] sm:$0xf] }
  0x3f   : > { %v658_v10 = vor.u32 %v657_v1, %v653_v63  ;;  %v654_v23 = vsel %vm3752_vm3, %v649_v9, %v653_v63  ;;  %v1900_v33 = vrot.slane %v1898_v25, 5  ;;  %v699_v9 = vshll.u32 %v555_v59, 16 }
  0x40   : > { %v682_v51 = vor.u32 %v681_v44, %v677_v43  ;;  %v703_v20 = vshrl.u32 %v555_v59, 16  ;;  %v1936_v28 = vshll.u32 %v3033_v15, 16  ;;  %v1940_v34 = vshrl.u32 %v3033_v15, 16 }
  0x41   : > { %v659_v24 = vrot.slane %v658_v10, 4  ;;  %v1901_v56 = vsel %vm3752_vm3, %v1896_v47, %v1900_v33  ;;  %v3032_v10 = vld [vmem:[%s3690_s29 + $0x3c] sm:$0xf]  ;;  %v701_v19 = vrot.slane %v699_v9, 5  ;;  %v559_v47 = vld [vmem:[%s3690_s29 + $0x44] sm:$0x1] }
  0x42   : > { %v3074_v61 = vcombine.low %v1891_v46, %v1901_v56  ;;  %v683_v63 = vrot.slane %v682_v51, 4  ;;  %v1927_v25 = vshrl.u32 %v3032_v10, 16  ;;  %v705_v27 = vrot.slane %v703_v20, 4 }
  0x43   : > { %3370 = vmatmul.mubr.msk.bf16.gmra.mrb[24].mxu1 %vm300_vm0, %v3624_v36  ;;  %3442 = vmatmul.mubr.msk.bf16.gmra.mrb[24].mxu0 %vm300_vm0, %v3625_v37  ;;  %v664_v32 = vsel %vm3752_vm3, %v659_v24, %v663_v11  ;;  %v3029_v36 = vld [vmem:[%s3690_s29 + $0x30] sm:$0xf]  ;;  %v3034_v24 = vld [vmem:[%s3690_s29 + $0x44] sm:$0x1] }
  0x44   : > { %3373 = vmatprep.mubr.msk.bf16.mxu1 %vm300_vm0, %v3626_v42  ;;  %3445 = vmatprep.mubr.msk.bf16.mxu0 %vm300_vm0, %v3627_v48  ;;  %v2918_v37 = vcombine.low %v654_v23, %v664_v32  ;;  %v671_v42 = vrot.slane %v669_v30, 5  ;;  %v1903_v48 = vshrl.u32 %v3029_v36, 16  ;;  %v1906_v49 = vshll.u32 %v3029_v36, 16 }
  0x45   : > { %v688_v6 = vsel %vm3752_vm3, %v683_v63, %v687_v52  ;;  %v709_v23 = vshll.u32 %v556_v7, 16  ;;  %v1929_v33 = vrot.slane %v1927_v25, 4  ;;  %v723_v52 = vshll.u32 %v558_v39, 16 }
  0x46   : > { %v672_v50 = vor.u32 %v671_v42, %v668_v40  ;;  %v1905_v57 = vrot.slane %v1903_v48, 4  ;;  %v1908_v58 = vrot.slane %v1906_v49, 5  ;;  %v1938_v40 = vrot.slane %v1936_v28, 5 }
  0x47   : > { %v711_v32 = vrot.slane %v709_v23, 5  ;;  %v1946_v42 = vshll.u32 %v3034_v24, 16  ;;  %v717_v48 = vshll.u32 %v557_v29, 16 }
  0x48   : > { %v673_v62 = vrot.slane %v672_v50, 4  ;;  %v1909_v1 = vor.u32 %v1908_v58, %v1905_v57  ;;  %v727_v57 = vshrl.u32 %v558_v39, 16  ;;  %v3036_v58 = vld [vmem:[%s3690_s29 + $0x4c] sm:$0xf] }
  0x49   : > { %v1948_v50 = vrot.slane %v1946_v42, 5  ;;  %v719_v56 = vrot.slane %v717_v48, 5  ;;  %v1960_v7 = vshll.u32 %v3036_v58, 16 }
  0x4a   : > { %v678_v5 = vsel %vm3752_vm3, %v673_v62, %v677_v43  ;;  %v1910_v12 = vrot.slane %v1909_v1, 4  ;;  %v714_v43 = vshrl.u32 %v557_v29, 16  ;;  %v733_v62 = vshll.u32 %v559_v47, 16 }
  0x4b   : > { %3374 = vmatmul.mubr.msk.bf16.gmra.mrb[28].mxu1 %vm300_vm0, %v3628_v14  ;;  %3446 = vmatmul.mubr.msk.bf16.gmra.mrb[28].mxu0 %vm300_vm0, %v3629_v21  ;;  %v2919_v11 = vcombine.low %v678_v5, %v688_v6  ;;  %v1924_v14 = vrot.slane %v1922_v3, 5  ;;  %v729_v1 = vrot.slane %v727_v57, 4  ;;  %v1951_v3 = vshrl.u32 %v3035_v54, 16 }
  0x4c   : > { %3381 = vmatprep.mubr.msk.bf16.mxu1 %vm300_vm0, %v3768_v17  ;;  %3453 = vmatprep.mubr.msk.bf16.mxu0 %vm300_vm0, %v3779_v31  ;;  %v554_v17 = vld [vmem:[%s3690_s29 + $0x30] sm:$0xf]  ;;  %v1916_v31 = vshrl.u32 %v3030_v41, 16  ;;  %v1942_v41 = vrot.slane %v1940_v34, 4  ;;  %v716_v51 = vrot.slane %v714_v43, 4  ;;  %v735_v5 = vrot.slane %v733_v62, 5 }
  0x4d   : > { %v690_v4 = vshrl.u32 %v554_v17, 16  ;;  %v693_v8 = vshll.u32 %v554_v17, 16  ;;  %v1954_v6 = vshll.u32 %v3035_v54, 16  ;;  %v1962_v15 = vrot.slane %v1960_v7, 5 }
  0x4e   : > { %v1918_v2 = vrot.slane %v1916_v31, 4  ;;  %v1943_v49 = vor.u32 %v1942_v41, %v1938_v40 }
  0x4f   : > { %v692_v16 = vrot.slane %v690_v4, 4  ;;  %v695_v18 = vrot.slane %v693_v8, 5  ;;  %v560_v8 = vld [vmem:[%s3690_s29 + $0x48] sm:$0xf] }
  0x50   : > { %v1919_v13 = vor.u32 %v1918_v2, %v1914_v0  ;;  %v1944_v59 = vrot.slane %v1943_v49, 4  ;;  %v3037_v2 = vld [vmem:[%s3690_s29 + $0x50] sm:$0x1]  ;;  %v741_v23 = vshll.u32 %v560_v8, 16 }
  0x51   : > { %v696_v26 = vor.u32 %v695_v18, %v692_v16  ;;  %v1964_v16 = vshrl.u32 %v3036_v58, 16  ;;  %v1970_v18 = vshll.u32 %v3037_v2, 16 }
  0x52   : > { %v1920_v21 = vrot.slane %v1919_v13, 4  ;;  %v1949_v4 = vsel %vm3752_vm3, %v1944_v59, %v1948_v50  ;;  %v561_v13 = vld [vmem:[%s3690_s29 + $0x4c] sm:$0xf] }
  0x53   : > { %3382 = vmatmul.mubr.msk.bf16.vlgmr.msra.gmra.mrb[0].mxu1 %vm300_vm0, %v3794_v60  ;;  %3454 = vmatmul.mubr.msk.bf16.vlgmr.msra.gmra.mrb[0].mxu0 %vm300_vm0, %v3073_v22  ;;  %v1915_v60 = vsel %vm3752_vm3, %v1910_v12, %v1914_v0  ;;  %v1930_v22 = vshll.u32 %v3032_v10, 16  ;;  %v697_v36 = vrot.slane %v696_v26, 4  ;;  %v720_v0 = vor.u32 %v719_v56, %v716_v51  ;;  %v563_v51 = vld [vmem:[%s3690_s29 + $0x54] sm:$0xf]  ;;  %v564_v56 = vld [vmem:[%s3690_s29 + $0x58] sm:$0xf] }
  0x54   : > { %3385 = vmatprep.mubr.msk.bf16.mxu1 %vm300_vm0, %v2918_v37  ;;  %3457 = vmatprep.mubr.msk.bf16.mxu0 %vm300_vm0, %v3074_v61  ;;  %v1925_v30 = vsel %vm3752_vm3, %v1920_v21, %v1924_v14  ;;  %v706_v37 = vor.u32 %v705_v27, %v701_v19  ;;  %v725_v61 = vrot.slane %v723_v52, 5  ;;  %v1953_v12 = vrot.slane %v1951_v3, 4 }
  0x55   : > { %v3075_v35 = vcombine.low %v1915_v60, %v1925_v30  ;;  %v1932_v38 = vrot.slane %v1930_v22, 5  ;;  %v702_v44 = vsel %vm3752_vm3, %v697_v36, %v701_v19  ;;  %v721_v10 = vrot.slane %v720_v0, 4  ;;  %v562_v60 = vld [vmem:[%s3690_s29 + $0x50] sm:$0x1]  ;;  %v3038_v22 = vld [vmem:[%s3690_s29 + $0x54] sm:$0xf] }
  0x56   : > { %v707_v45 = vrot.slane %v706_v37, 4  ;;  %v1956_v14 = vrot.slane %v1954_v6, 5  ;;  %v738_v21 = vshrl.u32 %v560_v8, 16  ;;  %v1966_v25 = vrot.slane %v1964_v16, 4  ;;  %v3041_v6 = vld [vmem:[%s3690_s29 + $0x60] sm:$0xf] }
  0x57   : > { %v1933_v46 = vor.u32 %v1932_v38, %v1929_v33  ;;  %v726_v19 = vsel %vm3752_vm3, %v721_v10, %v725_v61  ;;  %v1972_v26 = vrot.slane %v1970_v18, 5  ;;  %v747_v27 = vshll.u32 %v561_v13, 16  ;;  %v3039_v33 = vld [vmem:[%s3690_s29 + $0x58] sm:$0xf] }
  0x58   : > { %v712_v55 = vsel %vm3752_vm3, %v707_v45, %v711_v32  ;;  %v1957_v24 = vor.u32 %v1956_v14, %v1953_v12  ;;  %v740_v29 = vrot.slane %v738_v21, 4  ;;  %v743_v30 = vrot.slane %v741_v23, 5 }
  0x59   : > { %v1934_v17 = vrot.slane %v1933_v46, 4  ;;  %v2920_v31 = vcombine.low %v702_v44, %v712_v55  ;;  %v751_v32 = vshrl.u32 %v561_v13, 16  ;;  %v1967_v36 = vor.u32 %v1966_v25, %v1962_v15  ;;  %v3040_v44 = vld [vmem:[%s3690_s29 + $0x5c] sm:$0x1] }
  0x5a   : > { %v749_v37 = vrot.slane %v747_v27, 5  ;;  %v744_v38 = vor.u32 %v743_v30, %v740_v29  ;;  %v1975_v41 = vshrl.u32 %v3038_v22, 16  ;;  %v1978_v45 = vshll.u32 %v3038_v22, 16  ;;  %v567_v30 = vld [vmem:[%s3690_s29 + $0x64] sm:$0xf] }
  0x5b   : > { %3386 = vmatmul.mubr.msk.bf16.gmra.mrb[4].mxu1 %vm300_vm0, %v2919_v11  ;;  %3458 = vmatmul.mubr.msk.bf16.gmra.mrb[4].mxu0 %vm300_vm0, %v3075_v35  ;;  %v1939_v63 = vsel %vm3752_vm3, %v1934_v17, %v1938_v40  ;;  %v730_v11 = vor.u32 %v729_v1, %v725_v61  ;;  %v1958_v35 = vrot.slane %v1957_v24, 4  ;;  %v753_v39 = vrot.slane %v751_v32, 4  ;;  %v3043_v24 = vld [vmem:[%s3690_s29 + $0x68] sm:$0x1] }
  0x5c   : > { %3389 = vmatprep.mubr.msk.bf16.mxu1 %vm300_vm0, %v2920_v31  ;;  %v3076_v9 = vcombine.low %v1939_v63, %v1949_v4  ;;  %v757_v40 = vshll.u32 %v562_v60, 16  ;;  %v1968_v43 = vrot.slane %v1967_v36, 4  ;;  %v1984_v46 = vshll.u32 %v3039_v33, 16  ;;  %v565_v63 = vld [vmem:[%s3690_s29 + $0x5c] sm:$0x1] }
  0x5d   : > { %v731_v20 = vrot.slane %v730_v11, 4  ;;  %v1963_v42 = vsel %vm3752_vm3, %v1958_v35, %v1962_v15  ;;  %v745_v47 = vrot.slane %v744_v38, 4  ;;  %v754_v48 = vor.u32 %v753_v39, %v749_v37  ;;  %v3042_v11 = vld [vmem:[%s3690_s29 + $0x64] sm:$0xf] }
  0x5e   : > { %3461 = vmatprep.mubr.msk.bf16.mxu0 %vm300_vm0, %v3076_v9  ;;  %v759_v49 = vrot.slane %v757_v40, 5  ;;  %v1977_v50 = vrot.slane %v1975_v41, 4  ;;  %v1973_v52 = vsel %vm3752_vm3, %v1968_v43, %v1972_v26  ;;  %v1980_v54 = vrot.slane %v1978_v45, 5  ;;  %v566_v26 = vld [vmem:[%s3690_s29 + $0x60] sm:$0xf] }
  0x5f   : > { %v736_v28 = vsel %vm3752_vm3, %v731_v20, %v735_v5  ;;  %v1986_v55 = vrot.slane %v1984_v46, 5  ;;  %v1988_v17 = vshrl.u32 %v3039_v33, 16  ;;  %v3077_v57 = vcombine.low %v1963_v42, %v1973_v52  ;;  %v568_v42 = vld [vmem:[%s3690_s29 + $0x68] sm:$0x1]  ;;  %v3044_v45 = vld [vmem:[%s3690_s29 + $0x6c] sm:$0xf] }
  0x60   : > { %v2921_v34 = vcombine.low %v726_v19, %v736_v28  ;;  %v750_v58 = vsel %vm3752_vm3, %v745_v47, %v749_v37  ;;  %v755_v31 = vrot.slane %v754_v48, 4  ;;  %v1994_v59 = vshll.u32 %v3040_v44, 16 }
  0x61   : > { %v1981_v61 = vor.u32 %v1980_v54, %v1977_v50  ;;  %v1990_v62 = vrot.slane %v1988_v17, 4  ;;  %v762_v0 = vshrl.u32 %v563_v51, 16  ;;  %v765_v1 = vshll.u32 %v563_v51, 16  ;;  %v3045_v50 = vld [vmem:[%s3690_s29 + $0x70] sm:$0xf] }
  0x62   : > { %v760_v2 = vsel %vm3752_vm3, %v755_v31, %v759_v49  ;;  %v1996_v3 = vrot.slane %v1994_v59, 5  ;;  %v771_v4 = vshll.u32 %v564_v56, 16  ;;  %v775_v5 = vshrl.u32 %v564_v56, 16 }
  0x63   : > { %3390 = vmatmul.mubr.msk.bf16.gmra.mrb[8].mxu1 %vm300_vm0, %v2921_v34  ;;  %3462 = vmatmul.mubr.msk.bf16.gmra.mrb[8].mxu0 %vm300_vm0, %v3077_v57  ;;  %v2922_v7 = vcombine.low %v750_v58, %v760_v2  ;;  %v1982_v8 = vrot.slane %v1981_v61, 4  ;;  %v1991_v9 = vor.u32 %v1990_v62, %v1986_v55  ;;  %v764_v10 = vrot.slane %v762_v0, 4  ;;  %v3046_v58 = vld [vmem:[%s3690_s29 + $0x74] sm:$0x1]  ;;  %v569_v0 = vld [vmem:[%s3690_s29 + $0x6c] sm:$0xf] }
  0x64   : > { %v767_v12 = vrot.slane %v765_v1, 5  ;;  %v773_v13 = vrot.slane %v771_v4, 5  ;;  %v777_v14 = vrot.slane %v775_v5, 4  ;;  %v781_v15 = vshll.u32 %v565_v63, 16 }
  0x65   : > { %3393 = vmatprep.mubr.msk.bf16.mxu1 %vm300_vm0, %v2922_v7  ;;  %v1987_v16 = vsel %vm3752_vm3, %v1982_v8, %v1986_v55  ;;  %v1992_v18 = vrot.slane %v1991_v9, 4  ;;  %v1999_v19 = vshrl.u32 %v3041_v6, 16  ;;  %v2002_v20 = vshll.u32 %v3041_v6, 16  ;;  %v570_v9 = vld [vmem:[%s3690_s29 + $0x70] sm:$0xf] }
  0x66   : > { %v768_v60 = vor.u32 %v767_v12, %v764_v10  ;;  %v778_v21 = vor.u32 %v777_v14, %v773_v13  ;;  %v783_v23 = vrot.slane %v781_v15, 5  ;;  %v2008_v25 = vshll.u32 %v3042_v11, 16 }
  0x67   : > { %v1997_v27 = vsel %vm3752_vm3, %v1992_v18, %v1996_v3  ;;  %v2001_v22 = vrot.slane %v1999_v19, 4  ;;  %v2004_v28 = vrot.slane %v2002_v20, 5  ;;  %v2012_v29 = vshrl.u32 %v3042_v11, 16  ;;  %v571_v18 = vld [vmem:[%s3690_s29 + $0x74] sm:$0x1] }
  0x68   : > { %v3078_v32 = vcombine.low %v1987_v16, %v1997_v27  ;;  %v769_v33 = vrot.slane %v768_v60, 4  ;;  %v779_v34 = vrot.slane %v778_v21, 4  ;;  %v2010_v35 = vrot.slane %v2008_v25, 5 }
  0x69   : > { %v2005_v36 = vor.u32 %v2004_v28, %v2001_v22  ;;  %v2014_v37 = vrot.slane %v2012_v29, 4  ;;  %v2018_v38 = vshll.u32 %v3043_v24, 16  ;;  %v786_v39 = vshrl.u32 %v566_v26, 16  ;;  %v3047_v24 = vld [vmem:[%s3690_s29 + $0x78] sm:$0xf] }
  0x6a   : > { %3465 = vmatprep.mubr.msk.bf16.mxu0 %vm300_vm0, %v3078_v32  ;;  %v774_v40 = vsel %vm3752_vm3, %v769_v33, %v773_v13  ;;  %v784_v41 = vsel %vm3752_vm3, %v779_v34, %v783_v23  ;;  %v789_v43 = vshll.u32 %v566_v26, 16  ;;  %v795_v44 = vshll.u32 %v567_v30, 16  ;;  %v3048_v28 = vld [vmem:[%s3690_s29 + $0x7c] sm:$0xf] }
  0x6b   : > { %v2923_v46 = vcombine.low %v774_v40, %v784_v41  ;;  %v2006_v47 = vrot.slane %v2005_v36, 4  ;;  %v2015_v48 = vor.u32 %v2014_v37, %v2010_v35  ;;  %v2020_v49 = vrot.slane %v2018_v38, 5  ;;  %v3049_v37 = vld [vmem:[%s3690_s29 + $0x80] sm:$0x1] }
  0x6c   : > { %v788_v51 = vrot.slane %v786_v39, 4  ;;  %v791_v52 = vrot.slane %v789_v43, 5  ;;  %v797_v54 = vrot.slane %v795_v44, 5  ;;  %v799_v55 = vshrl.u32 %v567_v30, 16  ;;  %v572_v43 = vld [vmem:[%s3690_s29 + $0x78] sm:$0xf] }
  0x6d   : > { %3394 = vmatmul.mubr.msk.bf16.gmra.mrb[12].mxu1 %vm300_vm0, %v2923_v46  ;;  %v2011_v17 = vsel %vm3752_vm3, %v2006_v47, %v2010_v35  ;;  %v2016_v56 = vrot.slane %v2015_v48, 4  ;;  %v805_v57 = vshll.u32 %v568_v42, 16  ;;  %v2023_v31 = vshrl.u32 %v3044_v45, 16  ;;  %v573_v48 = vld [vmem:[%s3690_s29 + $0x7c] sm:$0xf] }
  0x6e   : > { %v792_v59 = vor.u32 %v791_v52, %v788_v51  ;;  %v801_v61 = vrot.slane %v799_v55, 4  ;;  %v2026_v62 = vshll.u32 %v3044_v45, 16  ;;  %v2032_v63 = vshll.u32 %v3045_v50, 16 }
  0x6f   : > { %v2021_v1 = vsel %vm3752_vm3, %v2016_v56, %v2020_v49  ;;  %v807_v2 = vrot.slane %v805_v57, 5  ;;  %v2025_v3 = vrot.slane %v2023_v31, 4  ;;  %v2036_v4 = vshrl.u32 %v3045_v50, 16 }
  0x70   : > { %v3079_v5 = vcombine.low %v2011_v17, %v2021_v1  ;;  %v793_v6 = vrot.slane %v792_v59, 4  ;;  %v802_v7 = vor.u32 %v801_v61, %v797_v54  ;;  %v2028_v8 = vrot.slane %v2026_v62, 5  ;;  %v574_v17 = vld [vmem:[%s3690_s29 + $0x80] sm:$0x1]  ;;  %v3050_v62 = vld [vmem:[%s3690_s29 + $0x84] sm:$0xf] }
  0x71   : > { %v2034_v10 = vrot.slane %v2032_v63, 5  ;;  %v2038_v11 = vrot.slane %v2036_v4, 4  ;;  %v2042_v12 = vshll.u32 %v3046_v58, 16  ;;  %v810_v13 = vshrl.u32 %v569_v0, 16 }
  0x72   : > { %3466 = vmatmul.mubr.msk.bf16.gmra.mrb[12].mxu0 %vm300_vm0, %v3079_v5  ;;  %v798_v14 = vsel %vm3752_vm3, %v793_v6, %v797_v54  ;;  %v803_v15 = vrot.slane %v802_v7, 4  ;;  %v2029_v16 = vor.u32 %v2028_v8, %v2025_v3  ;;  %v813_v19 = vshll.u32 %v569_v0, 16  ;;  %v3051_v3 = vld [vmem:[%s3690_s29 + $0x88] sm:$0xf] }
  0x73   : > { %v2039_v20 = vor.u32 %v2038_v11, %v2034_v10  ;;  %v2044_v60 = vrot.slane %v2042_v12, 5  ;;  %v812_v21 = vrot.slane %v810_v13, 4  ;;  %v819_v23 = vshll.u32 %v570_v9, 16 }
  0x74   : > { %v808_v25 = vsel %vm3752_vm3, %v803_v15, %v807_v2  ;;  %v2030_v26 = vrot.slane %v2029_v16, 4  ;;  %v815_v27 = vrot.slane %v813_v19, 5  ;;  %v823_v22 = vshrl.u32 %v570_v9, 16 }
  0x75   : > { %v2924_v29 = vcombine.low %v798_v14, %v808_v25  ;;  %v2040_v30 = vrot.slane %v2039_v20, 4  ;;  %v821_v32 = vrot.slane %v819_v23, 5  ;;  %v829_v33 = vshll.u32 %v571_v18, 16  ;;  %v3052_v14 = vld [vmem:[%s3690_s29 + $0x8c] sm:$0x1] }
  0x76   : > { %v2035_v34 = vsel %vm3752_vm3, %v2030_v26, %v2034_v10  ;;  %v816_v35 = vor.u32 %v815_v27, %v812_v21  ;;  %v825_v36 = vrot.slane %v823_v22, 4  ;;  %v2047_v38 = vshrl.u32 %v3047_v24, 16  ;;  %v575_v21 = vld [vmem:[%s3690_s29 + $0x84] sm:$0xf]  ;;  %v576_v27 = vld [vmem:[%s3690_s29 + $0x88] sm:$0xf] }
  0x77   : > { %3397 = vmatprep.mubr.msk.bf16.mxu1 %vm300_vm0, %v2924_v29  ;;  %v2045_v39 = vsel %vm3752_vm3, %v2040_v30, %v2044_v60  ;;  %v831_v40 = vrot.slane %v829_v33, 5  ;;  %v2050_v41 = vshll.u32 %v3047_v24, 16  ;;  %v2056_v42 = vshll.u32 %v3048_v28, 16 }
  0x78   : > { %v3080_v44 = vcombine.low %v2035_v34, %v2045_v39  ;;  %v817_v45 = vrot.slane %v816_v35, 4  ;;  %v826_v46 = vor.u32 %v825_v36, %v821_v32  ;;  %v2049_v47 = vrot.slane %v2047_v38, 4  ;;  %v577_v34 = vld [vmem:[%s3690_s29 + $0x8c] sm:$0x1] }
  0x79   : > { %v2052_v49 = vrot.slane %v2050_v41, 5  ;;  %v2058_v50 = vrot.slane %v2056_v42, 5  ;;  %v2060_v51 = vshrl.u32 %v3048_v28, 16  ;;  %v2066_v52 = vshll.u32 %v3049_v37, 16  ;;  %v3053_v41 = vld [vmem:[%s3690_s29 + $0x90] sm:$0xf] }
  0x7a   : > { %3469 = vmatprep.mubr.msk.bf16.mxu0 %vm300_vm0, %v3080_v44  ;;  %v822_v54 = vsel %vm3752_vm3, %v817_v45, %v821_v32  ;;  %v827_v55 = vrot.slane %v826_v46, 4  ;;  %v834_v56 = vshrl.u32 %v572_v43, 16  ;;  %v837_v57 = vshll.u32 %v572_v43, 16  ;;  %v3054_v46 = vld [vmem:[%s3690_s29 + $0x94] sm:$0xf] }
  0x7b   : > { %v2053_v58 = vor.u32 %v2052_v49, %v2049_v47  ;;  %v2062_v31 = vrot.slane %v2060_v51, 4  ;;  %v2068_v59 = vrot.slane %v2066_v52, 5  ;;  %v843_v61 = vshll.u32 %v573_v48, 16 }
  0x7c   : > { %v832_v63 = vsel %vm3752_vm3, %v827_v55, %v831_v40  ;;  %v836_v0 = vrot.slane %v834_v56, 4  ;;  %v839_v1 = vrot.slane %v837_v57, 5  ;;  %v847_v2 = vshrl.u32 %v573_v48, 16 }
  0x7d   : > { %v2925_v4 = vcombine.low %v822_v54, %v832_v63  ;;  %v2054_v5 = vrot.slane %v2053_v58, 4  ;;  %v2063_v6 = vor.u32 %v2062_v31, %v2058_v50  ;;  %v845_v7 = vrot.slane %v843_v61, 5  ;;  %v3055_v58 = vld [vmem:[%s3690_s29 + $0x98] sm:$0x1] }
  0x7e   : > { %v840_v8 = vor.u32 %v839_v1, %v836_v0  ;;  %v849_v9 = vrot.slane %v847_v2, 4  ;;  %v853_v10 = vshll.u32 %v574_v17, 16  ;;  %v2071_v11 = vshrl.u32 %v3050_v62, 16  ;;  %v579_v1 = vld [vmem:[%s3690_s29 + $0x94] sm:$0xf] }
  0x7f   : > { %3398 = vmatmul.mubr.msk.bf16.gmra.mrb[16].mxu1 %vm300_vm0, %v2925_v4  ;;  %v2059_v12 = vsel %vm3752_vm3, %v2054_v5, %v2058_v50  ;;  %v2064_v13 = vrot.slane %v2063_v6, 4  ;;  %v2074_v15 = vshll.u32 %v3050_v62, 16  ;;  %v2080_v16 = vshll.u32 %v3051_v3, 16 }
  0x80   : > { %v841_v18 = vrot.slane %v840_v8, 4  ;;  %v850_v19 = vor.u32 %v849_v9, %v845_v7  ;;  %v855_v20 = vrot.slane %v853_v10, 5  ;;  %v2073_v60 = vrot.slane %v2071_v11, 4 }
  0x81   : > { %v2069_v23 = vsel %vm3752_vm3, %v2064_v13, %v2068_v59  ;;  %v2076_v24 = vrot.slane %v2074_v15, 5  ;;  %v2082_v25 = vrot.slane %v2080_v16, 5  ;;  %v2084_v26 = vshrl.u32 %v3051_v3, 16  ;;  %v578_v59 = vld [vmem:[%s3690_s29 + $0x90] sm:$0xf] }
  0x82   : > { %v3081_v22 = vcombine.low %v2059_v12, %v2069_v23  ;;  %v846_v28 = vsel %vm3752_vm3, %v841_v18, %v845_v7  ;;  %v851_v29 = vrot.slane %v850_v19, 4  ;;  %v2090_v30 = vshll.u32 %v3052_v14, 16  ;;  %v580_v12 = vld [vmem:[%s3690_s29 + $0x98] sm:$0x1]  ;;  %v3056_v15 = vld [vmem:[%s3690_s29 + $0x9c] sm:$0xf] }
  0x83   : > { %v2077_v32 = vor.u32 %v2076_v24, %v2073_v60  ;;  %v2086_v33 = vrot.slane %v2084_v26, 4  ;;  %v858_v35 = vshrl.u32 %v575_v21, 16  ;;  %v861_v36 = vshll.u32 %v575_v21, 16  ;;  %v3057_v60 = vld [vmem:[%s3690_s29 + $0xa0] sm:$0xf] }
  0x84   : > { %3470 = vmatmul.mubr.msk.bf16.gmra.mrb[16].mxu0 %vm300_vm0, %v3081_v22  ;;  %v856_v37 = vsel %vm3752_vm3, %v851_v29, %v855_v20  ;;  %v2092_v38 = vrot.slane %v2090_v30, 5  ;;  %v867_v39 = vshll.u32 %v576_v27, 16  ;;  %v871_v40 = vshrl.u32 %v576_v27, 16 }
  0x85   : > { %v2926_v42 = vcombine.low %v846_v28, %v856_v37  ;;  %v2078_v43 = vrot.slane %v2077_v32, 4  ;;  %v2087_v44 = vor.u32 %v2086_v33, %v2082_v25  ;;  %v860_v45 = vrot.slane %v858_v35, 4  ;;  %v3058_v28 = vld [vmem:[%s3690_s29 + $0xa4] sm:$0x1]  ;;  %v581_v35 = vld [vmem:[%s3690_s29 + $0x9c] sm:$0xf] }
  0x86   : > { %v863_v47 = vrot.slane %v861_v36, 5  ;;  %v869_v48 = vrot.slane %v867_v39, 5  ;;  %v873_v49 = vrot.slane %v871_v40, 4  ;;  %v877_v50 = vshll.u32 %v577_v34, 16 }
  0x87   : > { %3401 = vmatprep.mubr.msk.bf16.mxu1 %vm300_vm0, %v2926_v42  ;;  %v2083_v51 = vsel %vm3752_vm3, %v2078_v43, %v2082_v25  ;;  %v2088_v52 = vrot.slane %v2087_v44, 4  ;;  %v2095_v54 = vshrl.u32 %v3053_v41, 16  ;;  %v2098_v55 = vshll.u32 %v3053_v41, 16  ;;  %v582_v44 = vld [vmem:[%s3690_s29 + $0xa0] sm:$0xf] }
  0x88   : > { %v864_v17 = vor.u32 %v863_v47, %v860_v45  ;;  %v874_v56 = vor.u32 %v873_v49, %v869_v48  ;;  %v879_v57 = vrot.slane %v877_v50, 5  ;;  %v2104_v31 = vshll.u32 %v3054_v46, 16 }
  0x89   : > { %v2093_v61 = vsel %vm3752_vm3, %v2088_v52, %v2092_v38  ;;  %v2097_v62 = vrot.slane %v2095_v54, 4  ;;  %v2100_v63 = vrot.slane %v2098_v55, 5  ;;  %v2108_v0 = vshrl.u32 %v3054_v46, 16  ;;  %v583_v52 = vld [vmem:[%s3690_s29 + $0xa4] sm:$0x1] }
  0x8a   : > { %v3082_v2 = vcombine.low %v2083_v51, %v2093_v61  ;;  %v865_v3 = vrot.slane %v864_v17, 4  ;;  %v875_v4 = vrot.slane %v874_v56, 4  ;;  %v2106_v5 = vrot.slane %v2104_v31, 5 }
  0x8b   : > { %v2101_v6 = vor.u32 %v2100_v63, %v2097_v62  ;;  %v2110_v7 = vrot.slane %v2108_v0, 4  ;;  %v2114_v8 = vshll.u32 %v3055_v58, 16  ;;  %v882_v9 = vshrl.u32 %v578_v59, 16  ;;  %v3059_v58 = vld [vmem:[%s3690_s29 + $0xa8] sm:$0xf] }
  0x8c   : > { %3473 = vmatprep.mubr.msk.bf16.mxu0 %vm300_vm0, %v3082_v2  ;;  %v870_v10 = vsel %vm3752_vm3, %v865_v3, %v869_v48  ;;  %v880_v11 = vsel %vm3752_vm3, %v875_v4, %v879_v57  ;;  %v885_v13 = vshll.u32 %v578_v59, 16  ;;  %v891_v14 = vshll.u32 %v579_v1, 16  ;;  %v3060_v63 = vld [vmem:[%s3690_s29 + $0xac] sm:$0xf] }
  0x8d   : > { %v2927_v16 = vcombine.low %v870_v10, %v880_v11  ;;  %v2102_v18 = vrot.slane %v2101_v6, 4  ;;  %v2111_v19 = vor.u32 %v2110_v7, %v2106_v5  ;;  %v2116_v20 = vrot.slane %v2114_v8, 5  ;;  %v3061_v7 = vld [vmem:[%s3690_s29 + $0xb0] sm:$0x1] }
  0x8e   : > { %v884_v21 = vrot.slane %v882_v9, 4  ;;  %v887_v23 = vrot.slane %v885_v13, 5  ;;  %v893_v24 = vrot.slane %v891_v14, 5  ;;  %v895_v25 = vshrl.u32 %v579_v1, 16  ;;  %v584_v13 = vld [vmem:[%s3690_s29 + $0xa8] sm:$0xf] }
  0x8f   : > { %3402 = vmatmul.mubr.msk.bf16.gmra.mrb[20].mxu1 %vm300_vm0, %v2927_v16  ;;  %v2107_v26 = vsel %vm3752_vm3, %v2102_v18, %v2106_v5  ;;  %v2112_v27 = vrot.slane %v2111_v19, 4  ;;  %v901_v22 = vshll.u32 %v580_v12, 16  ;;  %v2119_v29 = vshrl.u32 %v3056_v15, 16  ;;  %v585_v19 = vld [vmem:[%s3690_s29 + $0xac] sm:$0xf] }
  0x90   : > { %v888_v30 = vor.u32 %v887_v23, %v884_v21  ;;  %v897_v32 = vrot.slane %v895_v25, 4  ;;  %v2122_v33 = vshll.u32 %v3056_v15, 16  ;;  %v2128_v34 = vshll.u32 %v3057_v60, 16 }
  0x91   : > { %v2117_v36 = vsel %vm3752_vm3, %v2112_v27, %v2116_v20  ;;  %v903_v37 = vrot.slane %v901_v22, 5  ;;  %v2121_v38 = vrot.slane %v2119_v29, 4  ;;  %v2132_v39 = vshrl.u32 %v3057_v60, 16 }
  0x92   : > { %v3083_v40 = vcombine.low %v2107_v26, %v2117_v36  ;;  %v889_v41 = vrot.slane %v888_v30, 4  ;;  %v898_v42 = vor.u32 %v897_v32, %v893_v24  ;;  %v2124_v43 = vrot.slane %v2122_v33, 5  ;;  %v586_v26 = vld [vmem:[%s3690_s29 + $0xb0] sm:$0x1]  ;;  %v3062_v33 = vld [vmem:[%s3690_s29 + $0xb4] sm:$0xf] }
  0x93   : > { %v2130_v45 = vrot.slane %v2128_v34, 5  ;;  %v2134_v46 = vrot.slane %v2132_v39, 4  ;;  %v2138_v47 = vshll.u32 %v3058_v28, 16  ;;  %v906_v48 = vshrl.u32 %v581_v35, 16 }
  0x94   : > { %3474 = vmatmul.mubr.msk.bf16.gmra.mrb[20].mxu0 %vm300_vm0, %v3083_v40  ;;  %v894_v49 = vsel %vm3752_vm3, %v889_v41, %v893_v24  ;;  %v899_v50 = vrot.slane %v898_v42, 4  ;;  %v2125_v51 = vor.u32 %v2124_v43, %v2121_v38  ;;  %v909_v54 = vshll.u32 %v581_v35, 16  ;;  %v3063_v38 = vld [vmem:[%s3690_s29 + $0xb8] sm:$0xf] }
  0x95   : > { %v2135_v55 = vor.u32 %v2134_v46, %v2130_v45  ;;  %v2140_v17 = vrot.slane %v2138_v47, 5  ;;  %v908_v56 = vrot.slane %v906_v48, 4  ;;  %v915_v57 = vshll.u32 %v582_v44, 16 }
  0x96   : > { %v904_v31 = vsel %vm3752_vm3, %v899_v50, %v903_v37  ;;  %v2126_v59 = vrot.slane %v2125_v51, 4  ;;  %v911_v61 = vrot.slane %v909_v54, 5  ;;  %v919_v62 = vshrl.u32 %v582_v44, 16 }
  0x97   : > { %v2928_v0 = vcombine.low %v894_v49, %v904_v31  ;;  %v2136_v1 = vrot.slane %v2135_v55, 4  ;;  %v917_v2 = vrot.slane %v915_v57, 5  ;;  %v925_v3 = vshll.u32 %v583_v52, 16  ;;  %v3064_v49 = vld [vmem:[%s3690_s29 + $0xbc] sm:$0x1] }
  0x98   : > { %v2131_v4 = vsel %vm3752_vm3, %v2126_v59, %v2130_v45  ;;  %v912_v5 = vor.u32 %v911_v61, %v908_v56  ;;  %v921_v6 = vrot.slane %v919_v62, 4  ;;  %v2143_v8 = vshrl.u32 %v3059_v58, 16  ;;  %v587_v56 = vld [vmem:[%s3690_s29 + $0xb4] sm:$0xf]  ;;  %v588_v61 = vld [vmem:[%s3690_s29 + $0xb8] sm:$0xf] }
  0x99   : > { %3405 = vmatprep.mubr.msk.bf16.mxu1 %vm300_vm0, %v2928_v0  ;;  %v2141_v9 = vsel %vm3752_vm3, %v2136_v1, %v2140_v17  ;;  %v927_v10 = vrot.slane %v925_v3, 5  ;;  %v2146_v11 = vshll.u32 %v3059_v58, 16  ;;  %v2152_v12 = vshll.u32 %v3060_v63, 16 }
  0x9a   : > { %v3084_v14 = vcombine.low %v2131_v4, %v2141_v9  ;;  %v913_v15 = vrot.slane %v912_v5, 4  ;;  %v922_v16 = vor.u32 %v921_v6, %v917_v2  ;;  %v2145_v18 = vrot.slane %v2143_v8, 4  ;;  %v589_v4 = vld [vmem:[%s3690_s29 + $0xbc] sm:$0x1] }
  0x9b   : > { %v2148_v20 = vrot.slane %v2146_v11, 5  ;;  %v2154_v60 = vrot.slane %v2152_v12, 5  ;;  %v2156_v21 = vshrl.u32 %v3060_v63, 16  ;;  %v2162_v23 = vshll.u32 %v3061_v7, 16  ;;  %v3065_v11 = vld [vmem:[%s3690_s29 + $0xc0] sm:$0xf] }
  0x9c   : > { %3477 = vmatprep.mubr.msk.bf16.mxu0 %vm300_vm0, %v3084_v14  ;;  %v918_v24 = vsel %vm3752_vm3, %v913_v15, %v917_v2  ;;  %v923_v25 = vrot.slane %v922_v16, 4  ;;  %v930_v27 = vshrl.u32 %v584_v13, 16  ;;  %v933_v22 = vshll.u32 %v584_v13, 16  ;;  %v3066_v16 = vld [vmem:[%s3690_s29 + $0xc4] sm:$0xf] }
  0x9d   : > { %v2149_v28 = vor.u32 %v2148_v20, %v2145_v18  ;;  %v2158_v29 = vrot.slane %v2156_v21, 4  ;;  %v2164_v30 = vrot.slane %v2162_v23, 5  ;;  %v939_v32 = vshll.u32 %v585_v19, 16 }
  0x9e   : > { %v928_v34 = vsel %vm3752_vm3, %v923_v25, %v927_v10  ;;  %v932_v35 = vrot.slane %v930_v27, 4  ;;  %v935_v36 = vrot.slane %v933_v22, 5  ;;  %v943_v37 = vshrl.u32 %v585_v19, 16 }
  0x9f   : > { %v2929_v39 = vcombine.low %v918_v24, %v928_v34  ;;  %v2150_v40 = vrot.slane %v2149_v28, 4  ;;  %v2159_v41 = vor.u32 %v2158_v29, %v2154_v60  ;;  %v941_v42 = vrot.slane %v939_v32, 5  ;;  %v3067_v28 = vld [vmem:[%s3690_s29 + $0xc8] sm:$0x1] }
  0xa0   : > { %v936_v43 = vor.u32 %v935_v36, %v932_v35  ;;  %v945_v44 = vrot.slane %v943_v37, 4  ;;  %v949_v45 = vshll.u32 %v586_v26, 16  ;;  %v2167_v46 = vshrl.u32 %v3062_v33, 16 }
  0xa1   : > { %3406 = vmatmul.mubr.msk.bf16.gmra.mrb[24].mxu1 %vm300_vm0, %v2929_v39  ;;  %v2155_v47 = vsel %vm3752_vm3, %v2150_v40, %v2154_v60  ;;  %v2160_v48 = vrot.slane %v2159_v41, 4  ;;  %v2170_v50 = vshll.u32 %v3062_v33, 16  ;;  %v2176_v51 = vshll.u32 %v3063_v38, 16 }
  0xa2   : > { %v937_v52 = vrot.slane %v936_v43, 4  ;;  %v946_v54 = vor.u32 %v945_v44, %v941_v42  ;;  %v951_v55 = vrot.slane %v949_v45, 5  ;;  %v2169_v17 = vrot.slane %v2167_v46, 4 }
  0xa3   : > { %v2165_v57 = vsel %vm3752_vm3, %v2160_v48, %v2164_v30  ;;  %v2172_v58 = vrot.slane %v2170_v50, 5  ;;  %v2178_v31 = vrot.slane %v2176_v51, 5  ;;  %v2180_v59 = vshrl.u32 %v3063_v38, 16 }
  0xa4   : > { %v3085_v62 = vcombine.low %v2155_v47, %v2165_v57  ;;  %v942_v63 = vsel %vm3752_vm3, %v937_v52, %v941_v42  ;;  %v947_v0 = vrot.slane %v946_v54, 4  ;;  %v2186_v1 = vshll.u32 %v3064_v49, 16 }
  0xa5   : > { %v2173_v2 = vor.u32 %v2172_v58, %v2169_v17  ;;  %v2182_v3 = vrot.slane %v2180_v59, 4  ;;  %v954_v5 = vshrl.u32 %v587_v56, 16  ;;  %v957_v6 = vshll.u32 %v587_v56, 16  ;;  %v4036_v58 = vld [vmem:[%s4097_s2] ss:$0 sm:$0xff] }
  0xa6   : > { %3478 = vmatmul.mubr.msk.bf16.gmra.mrb[24].mxu0 %vm300_vm0, %v3085_v62  ;;  %v952_v7 = vsel %vm3752_vm3, %v947_v0, %v951_v55  ;;  %v2188_v8 = vrot.slane %v2186_v1, 5  ;;  %v963_v9 = vshll.u32 %v588_v61, 16  ;;  %v967_v10 = vshrl.u32 %v588_v61, 16 }
  0xa7   : > { %v2930_v12 = vcombine.low %v942_v63, %v952_v7  ;;  %v2174_v13 = vrot.slane %v2173_v2, 4  ;;  %v2183_v14 = vor.u32 %v2182_v3, %v2178_v31  ;;  %v956_v15 = vrot.slane %v954_v5, 4 }
  0xa8   : > { %v959_v18 = vrot.slane %v957_v6, 5  ;;  %v965_v19 = vrot.slane %v963_v9, 5  ;;  %v969_v20 = vrot.slane %v967_v10, 4  ;;  %v973_v60 = vshll.u32 %v589_v4, 16 }
  0xa9   : > { %3409 = vmatprep.mubr.msk.bf16.mxu1 %vm300_vm0, %v2930_v12  ;;  %v2179_v21 = vsel %vm3752_vm3, %v2174_v13, %v2178_v31  ;;  %v2184_v23 = vrot.slane %v2183_v14, 4  ;;  %v2191_v24 = vshrl.u32 %v3065_v11, 16  ;;  %v2194_v25 = vshll.u32 %v3065_v11, 16 }
  0xaa   : > { %v960_v26 = vor.u32 %v959_v18, %v956_v15  ;;  %v970_v27 = vor.u32 %v969_v20, %v965_v19  ;;  %v975_v22 = vrot.slane %v973_v60, 5  ;;  %v2200_v29 = vshll.u32 %v3066_v16, 16 }
  0xab   : > { %v2189_v30 = vsel %vm3752_vm3, %v2184_v23, %v2188_v8  ;;  %v2193_v32 = vrot.slane %v2191_v24, 4  ;;  %v2196_v33 = vrot.slane %v2194_v25, 5  ;;  %v2204_v34 = vshrl.u32 %v3066_v16, 16 }
  0xac   : > { %v3086_v35 = vcombine.low %v2179_v21, %v2189_v30  ;;  %v961_v36 = vrot.slane %v960_v26, 4  ;;  %v971_v37 = vrot.slane %v970_v27, 4  ;;  %v2202_v38 = vrot.slane %v2200_v29, 5 }
  0xad   : > { %v2197_v39 = vor.u32 %v2196_v33, %v2193_v32  ;;  %v2206_v40 = vrot.slane %v2204_v34, 4  ;;  %v2210_v41 = vshll.u32 %v3067_v28, 16 }
  0xae   : > { %3481 = vmatprep.mubr.msk.bf16.mxu0 %vm300_vm0, %v3086_v35  ;;  %v966_v42 = vsel %vm3752_vm3, %v961_v36, %v965_v19  ;;  %v976_v43 = vsel %vm3752_vm3, %v971_v37, %v975_v22 }
  0xaf   : > { %v2931_v44 = vcombine.low %v966_v42, %v976_v43  ;;  %v2198_v45 = vrot.slane %v2197_v39, 4  ;;  %v2207_v46 = vor.u32 %v2206_v40, %v2202_v38  ;;  %v2212_v47 = vrot.slane %v2210_v41, 5 }
  0xb1   : > { %3410 = vmatmul.mubr.msk.bf16.gmra.mrb[28].mxu1 %vm300_vm0, %v2931_v44  ;;  %v2203_v48 = vsel %vm3752_vm3, %v2198_v45, %v2202_v38  ;;  %v2208_v49 = vrot.slane %v2207_v46, 4 }
  0xb3   : > { %v2213_v50 = vsel %vm3752_vm3, %v2208_v49, %v2212_v47 }
  0xb4   : > { %v3087_v51 = vcombine.low %v2203_v48, %v2213_v50 }
  0xb6   : > { %3482 = vmatmul.mubr.msk.bf16.gmra.mrb[28].mxu0 %vm300_vm0, %v3087_v51 }
 0x126   : > { %v3383_v52 = vpop.f32.mrb[0].mxu1  ;;  %v3455_v54 = vpop.f32.mrb[0].mxu0 }
 0x127   : > { %v1124_v55 = vpop.f32.mrb[1].mxu1  ;;  %v3485_v17 = vadd.f32 %v3455_v54, %v3383_v52  ;;  %v2361_v56 = vpop.f32.mrb[1].mxu0 }
 0x128   : > { %v3384_v57 = vpop.f32.mrb[2].mxu1  ;;  %v3486_v31 = vadd.f32 %v2361_v56, %v1124_v55  ;;  %v3456_v59 = vpop.f32.mrb[2].mxu0 }
 0x129   : > { %v1127_v61 = vpop.f32.mrb[3].mxu1  ;;  %v3487_v53 = vadd.f32 %v3456_v59, %v3384_v57  ;;  %v2364_v62 = vpop.f32.mrb[3].mxu0  ;;  %v2625_v0 = vadd.f32 %v3485_v17, %v4036_v58 }
 0x12a   : > { %v3488_v63 = vadd.f32 %v2364_v62, %v1127_v61  ;;  %v2623_v2 = vadd.f32 %v3486_v31, %v4036_v58 }
 0x12b   : > { %v2626_v1 = vadd.f32 %v3487_v53, %v4036_v58 }
 0x12c   : > { %v2624_v3 = vadd.f32 %v3488_v63, %v4036_v58 }
 0x12d   : > { %v3182_v4 = vpack.c.bf16 %v2626_v1, %v2625_v0 }
 0x12e   : > { %v3387_v5 = vpop.f32.mrb[4].mxu1  ;;  %v3177_v6 = vpack.c.bf16 %v2624_v3, %v2623_v2  ;;  %v3459_v7 = vpop.f32.mrb[4].mxu0 }
 0x12f   : > { %v1140_v8 = vpop.f32.mrb[5].mxu1  ;;  %3254 = vst [vmem:[%s4045_s14 + $0x8] sm:$0xff] %v3182_v4   ;;  %v3489_v9 = vadd.f32 %v3459_v7, %v3387_v5  ;;  %v2377_v10 = vpop.f32.mrb[5].mxu0 }
 0x130   : > { %v3388_v11 = vpop.f32.mrb[6].mxu1  ;;  %3178 = vst [vmem:[%s4045_s14] sm:$0xff] %v3177_v6   ;;  %v3490_v12 = vadd.f32 %v2377_v10, %v1140_v8  ;;  %v3460_v13 = vpop.f32.mrb[6].mxu0 }
 0x131   : > { %v1143_v14 = vpop.f32.mrb[7].mxu1  ;;  %v3491_v15 = vadd.f32 %v3460_v13, %v3388_v11  ;;  %v2380_v16 = vpop.f32.mrb[7].mxu0  ;;  %v2629_v19 = vadd.f32 %v3489_v9, %v4036_v58 }
 0x132   : > { %v3492_v18 = vadd.f32 %v2380_v16, %v1143_v14  ;;  %v2627_v60 = vadd.f32 %v3490_v12, %v4036_v58 }
 0x133   : > { %v2630_v20 = vadd.f32 %v3491_v15, %v4036_v58 }
 0x134   : > { %v2628_v21 = vadd.f32 %v3492_v18, %v4036_v58 }
 0x135   : > { %v3192_v23 = vpack.c.bf16 %v2630_v20, %v2629_v19 }
 0x136   : > { %v3187_v24 = vpack.c.bf16 %v2628_v21, %v2627_v60  ;;  %v3391_v25 = vpop.f32.mrb[8].mxu1  ;;  %v3463_v28 = vpop.f32.mrb[8].mxu0 }
 0x137   : > { %3256 = vst [vmem:[%s4045_s14 + $0x18] sm:$0xff] %v3192_v23   ;;  %v1156_v26 = vpop.f32.mrb[9].mxu1  ;;  %v3493_v29 = vadd.f32 %v3463_v28, %v3391_v25  ;;  %v2393_v30 = vpop.f32.mrb[9].mxu0 }
 0x138   : > { %3255 = vst [vmem:[%s4045_s14 + $0x10] sm:$0xff] %v3187_v24   ;;  %v3392_v27 = vpop.f32.mrb[10].mxu1  ;;  %v3494_v32 = vadd.f32 %v2393_v30, %v1156_v26  ;;  %v3464_v33 = vpop.f32.mrb[10].mxu0 }
 0x139   : > { %v1159_v22 = vpop.f32.mrb[11].mxu1  ;;  %v3495_v34 = vadd.f32 %v3464_v33, %v3392_v27  ;;  %v2396_v35 = vpop.f32.mrb[11].mxu0  ;;  %v2633_v37 = vadd.f32 %v3493_v29, %v4036_v58 }
 0x13a   : > { %v3496_v36 = vadd.f32 %v2396_v35, %v1159_v22  ;;  %v2631_v39 = vadd.f32 %v3494_v32, %v4036_v58 }
 0x13b   : > { %v2634_v38 = vadd.f32 %v3495_v34, %v4036_v58 }
 0x13c   : > { %v2632_v40 = vadd.f32 %v3496_v36, %v4036_v58 }
 0x13d   : > { %v3202_v41 = vpack.c.bf16 %v2634_v38, %v2633_v37 }
 0x13e   : > { %v3197_v42 = vpack.c.bf16 %v2632_v40, %v2631_v39 }
 0x13f   : > { %3258 = vst [vmem:[%s4045_s14 + $0x28] sm:$0xff] %v3202_v41  }
 0x140   : > { %3257 = vst [vmem:[%s4045_s14 + $0x20] sm:$0xff] %v3197_v42   ;;  %v3395_v43 = vpop.f32.mrb[12].mxu1 }
 0x141   : > { %v1172_v44 = vpop.f32.mrb[13].mxu1 }
 0x142   : > { %v3396_v45 = vpop.f32.mrb[14].mxu1 }
 0x143   : > { %v1175_v46 = vpop.f32.mrb[15].mxu1 }
 0x145   : > { %v3467_v47 = vpop.f32.mrb[12].mxu0 }
 0x146   : > { %v3497_v48 = vadd.f32 %v3467_v47, %v3395_v43  ;;  %v2409_v49 = vpop.f32.mrb[13].mxu0 }
 0x147   : > { %v3498_v50 = vadd.f32 %v2409_v49, %v1172_v44  ;;  %v3468_v51 = vpop.f32.mrb[14].mxu0 }
 0x148   : > { %v3499_v52 = vadd.f32 %v3468_v51, %v3396_v45  ;;  %v2412_v54 = vpop.f32.mrb[15].mxu0  ;;  %v2637_v17 = vadd.f32 %v3497_v48, %v4036_v58 }
 0x149   : > { %v3500_v55 = vadd.f32 %v2412_v54, %v1175_v46  ;;  %v2635_v57 = vadd.f32 %v3498_v50, %v4036_v58 }
 0x14a   : > { %v2638_v56 = vadd.f32 %v3499_v52, %v4036_v58 }
 0x14b   : > { %v2636_v31 = vadd.f32 %v3500_v55, %v4036_v58 }
 0x14c   : > { %v3212_v59 = vpack.c.bf16 %v2638_v56, %v2637_v17 }
 0x14d   : > { %v3207_v61 = vpack.c.bf16 %v2636_v31, %v2635_v57 }
 0x14e   : > { %3260 = vst [vmem:[%s4045_s14 + $0x38] sm:$0xff] %v3212_v59  }
 0x14f   : > { %3259 = vst [vmem:[%s4045_s14 + $0x30] sm:$0xff] %v3207_v61  }
 0x152   : > { %v3399_v53 = vpop.f32.mrb[16].mxu1 }
 0x153   : > { %v1188_v62 = vpop.f32.mrb[17].mxu1 }
 0x154   : > { %v3400_v63 = vpop.f32.mrb[18].mxu1 }
 0x155   : > { %v1191_v0 = vpop.f32.mrb[19].mxu1 }
 0x157   : > { %v3471_v1 = vpop.f32.mrb[16].mxu0 }
 0x158   : > { %v3501_v2 = vadd.f32 %v3471_v1, %v3399_v53  ;;  %v2425_v3 = vpop.f32.mrb[17].mxu0 }
 0x159   : > { %v3502_v4 = vadd.f32 %v2425_v3, %v1188_v62  ;;  %v3472_v5 = vpop.f32.mrb[18].mxu0 }
 0x15a   : > { %v3503_v6 = vadd.f32 %v3472_v5, %v3400_v63  ;;  %v2428_v7 = vpop.f32.mrb[19].mxu0  ;;  %v2641_v9 = vadd.f32 %v3501_v2, %v4036_v58 }
 0x15b   : > { %v3504_v8 = vadd.f32 %v2428_v7, %v1191_v0  ;;  %v2639_v11 = vadd.f32 %v3502_v4, %v4036_v58 }
 0x15c   : > { %v2642_v10 = vadd.f32 %v3503_v6, %v4036_v58 }
 0x15d   : > { %v2640_v12 = vadd.f32 %v3504_v8, %v4036_v58 }
 0x15e   : > { %v3222_v13 = vpack.c.bf16 %v2642_v10, %v2641_v9 }
 0x15f   : > { %v3217_v14 = vpack.c.bf16 %v2640_v12, %v2639_v11 }
 0x160   : > { %3262 = vst [vmem:[%s4045_s14 + $0x48] sm:$0xff] %v3222_v13  }
 0x161   : > { %3261 = vst [vmem:[%s4045_s14 + $0x40] sm:$0xff] %v3217_v14  }
 0x162   : > { %v3403_v15 = vpop.f32.mrb[20].mxu1 }
 0x163   : > { %v1204_v16 = vpop.f32.mrb[21].mxu1 }
 0x164   : > { %v3404_v18 = vpop.f32.mrb[22].mxu1 }
 0x165   : > { %v1207_v19 = vpop.f32.mrb[23].mxu1 }
 0x167   : > { %v3475_v20 = vpop.f32.mrb[20].mxu0 }
 0x168   : > { %v3505_v60 = vadd.f32 %v3475_v20, %v3403_v15  ;;  %v2441_v21 = vpop.f32.mrb[21].mxu0 }
 0x169   : > { %v3506_v23 = vadd.f32 %v2441_v21, %v1204_v16  ;;  %v3476_v24 = vpop.f32.mrb[22].mxu0 }
 0x16a   : > { %v3507_v25 = vadd.f32 %v3476_v24, %v3404_v18  ;;  %v2444_v26 = vpop.f32.mrb[23].mxu0  ;;  %v2645_v22 = vadd.f32 %v3505_v60, %v4036_v58 }
 0x16b   : > { %v3508_v27 = vadd.f32 %v2444_v26, %v1207_v19  ;;  %v2643_v29 = vadd.f32 %v3506_v23, %v4036_v58 }
 0x16c   : > { %v2646_v28 = vadd.f32 %v3507_v25, %v4036_v58 }
 0x16d   : > { %v2644_v30 = vadd.f32 %v3508_v27, %v4036_v58 }
 0x16e   : > { %v3232_v32 = vpack.c.bf16 %v2646_v28, %v2645_v22 }
 0x16f   : > { %v3227_v33 = vpack.c.bf16 %v2644_v30, %v2643_v29 }
 0x170   : > { %3264 = vst [vmem:[%s4045_s14 + $0x58] sm:$0xff] %v3232_v32  }
 0x171   : > { %3263 = vst [vmem:[%s4045_s14 + $0x50] sm:$0xff] %v3227_v33  }
 0x174   : > { %v3407_v34 = vpop.f32.mrb[24].mxu1 }
 0x175   : > { %v1220_v35 = vpop.f32.mrb[25].mxu1 }
 0x176   : > { %v3408_v36 = vpop.f32.mrb[26].mxu1 }
 0x177   : > { %v1223_v37 = vpop.f32.mrb[27].mxu1 }
 0x179   : > { %v3479_v38 = vpop.f32.mrb[24].mxu0 }
 0x17a   : > { %v3509_v39 = vadd.f32 %v3479_v38, %v3407_v34  ;;  %v2457_v40 = vpop.f32.mrb[25].mxu0 }
 0x17b   : > { %v3510_v41 = vadd.f32 %v2457_v40, %v1220_v35  ;;  %v3480_v42 = vpop.f32.mrb[26].mxu0 }
 0x17c   : > { %v3511_v43 = vadd.f32 %v3480_v42, %v3408_v36  ;;  %v2460_v44 = vpop.f32.mrb[27].mxu0  ;;  %v2649_v46 = vadd.f32 %v3509_v39, %v4036_v58 }
 0x17d   : > { %v3512_v45 = vadd.f32 %v2460_v44, %v1223_v37  ;;  %v2647_v48 = vadd.f32 %v3510_v41, %v4036_v58 }
 0x17e   : > { %v2650_v47 = vadd.f32 %v3511_v43, %v4036_v58 }
 0x17f   : > { %v2648_v49 = vadd.f32 %v3512_v45, %v4036_v58 }
 0x180   : > { %v3242_v50 = vpack.c.bf16 %v2650_v47, %v2649_v46 }
 0x181   : > { %v3237_v51 = vpack.c.bf16 %v2648_v49, %v2647_v48 }
 0x182   : > { %3266 = vst [vmem:[%s4045_s14 + $0x68] sm:$0xff] %v3242_v50  }
 0x183   : > { %3265 = vst [vmem:[%s4045_s14 + $0x60] sm:$0xff] %v3237_v51  }
 0x184   : > { %v3411_v52 = vpop.f32.mrb[28].mxu1 }
 0x185   : > { %v1236_v54 = vpop.f32.mrb[29].mxu1 }
 0x186   : > { %v3412_v55 = vpop.f32.mrb[30].mxu1 }
 0x187   : > { %v1239_v17 = vpop.f32.mrb[31].mxu1 }
 0x189   : > { %v3483_v56 = vpop.f32.mrb[28].mxu0 }
 0x18a   : > { %v3513_v57 = vadd.f32 %v3483_v56, %v3411_v52  ;;  %v2473_v31 = vpop.f32.mrb[29].mxu0 }
 0x18b   : > { %v3514_v59 = vadd.f32 %v2473_v31, %v1236_v54  ;;  %v3484_v61 = vpop.f32.mrb[30].mxu0 }
 0x18c   : > { %v3515_v53 = vadd.f32 %v3484_v61, %v3412_v55  ;;  %v2476_v62 = vpop.f32.mrb[31].mxu0  ;;  %v2653_v0 = vadd.f32 %v3513_v57, %v4036_v58 }
 0x18d   : > { %v3516_v63 = vadd.f32 %v2476_v62, %v1239_v17  ;;  %v2651_v2 = vadd.f32 %v3514_v59, %v4036_v58 }
 0x18e   : > { %v2654_v1 = vadd.f32 %v3515_v53, %v4036_v58 }
 0x18f   : > { %v2652_v3 = vadd.f32 %v3516_v63, %v4036_v58 }
 0x190   : > { %v3252_v4 = vpack.c.bf16 %v2654_v1, %v2653_v0 }
 0x191   : > { %v3247_v5 = vpack.c.bf16 %v2652_v3, %v2651_v2 }
 0x192   : > { %3268 = vst [vmem:[%s4045_s14 + $0x78] sm:$0xff] %v3252_v4  }
 0x193   : > { %3267 = vst [vmem:[%s4045_s14 + $0x70] sm:$0xff] %v3247_v5  }
 0x194 PF: > { %s13_s12 = sadd.s32 1, %s3636_s12  }
 0x195   : > { %p10_p4 = scmp.ge.s32.totalorder %s13_s12, 4  }
 0x197   :  { %12 = sbr.rel (!%p10_p4) target bundleno = 1 (0x1), region = 66 }

// kernel: discriminator_forward.6
= control target key start
LH: loop header
LB: loop body
LE: loop exit
PB: predicated region body
PF: predicated region fallthrough
CT: control target
= control target key end

     0   :  { %s1490_s15 = smov 0   ;;  %s1639_s0 = inlined_call_operand.vmem [shape: bf16[2,9,9,32], index: 0, kind: input, shape index: {}]   ;;  %s1640_s1 = inlined_call_operand.vmem [shape: bf16[4,32,128], index: 1, kind: input, shape index: {}]   ;;  %s1641_s2 = inlined_call_operand.vmem [shape: bf16[2,64,128], index: 2, kind: output, shape index: {0}]   ;;  %s1642_s3 = inlined_call_operand.vmem [shape: f32[2,1,128], index: 3, kind: output, shape index: {1}]   ;;  %s1643_s4 = inlined_call_operand.vmem [shape: f32[2,1,128], index: 4, kind: output, shape index: {2}]  }
   0x1 LB: > { %s1210_s16 = sadd.s32 4294967295, %s1463_s15   ;;  %p1214_p0 = scmp.ge.s32.totalorder %s1463_s15, 1  ;;  %s1463_s15 = sphi %s1490_s15, %s15_s15  }
   0x2   : > { %p167_p1 = scmp.lt.s32.totalorder %s1463_s15, 3 }
   0x4   : > { %p168_p2 = pnand %p1214_p0, %p167_p1 }
   0x5   : > { %v1441_v0 = vld [vmem:[%s1640_s1] sm:$0xff] (!%p168_p2)   ;;  %p199_p3 = scmp.lt.s32.totalorder (!%p168_p2), %s1210_s16, 1  ;;  %v1443_v2 = vld [vmem:[%s1640_s1 + $0x8] sm:$0xff] (!%p168_p2)   ;;  %v1448_v4 = vld [vmem:[%s1640_s1 + $0x10] sm:$0xff] (!%p168_p2)   ;;  %vm260_vm0 = vcmask (!%p168_p2), 261120  }
   0x6   : > { %171 = sbr.rel (%p168_p2) target bundleno = 333 (0x14d), region = 28  ;;  %v1442_v1 = vld [vmem:[%s1640_s1 + $0x20] sm:$0xff] (!%p168_p2)   ;;  %1360 = vmatprep.subr.bf16.mxu1 (!%p168_p2), %v1441_v0  ;;  %v1444_v3 = vld [vmem:[%s1640_s1 + $0x28] sm:$0xff] (!%p168_p2)   ;;  %v1450_v5 = vld [vmem:[%s1640_s1 + $0x30] sm:$0xff] (!%p168_p2)   ;;  %vm362_vm1 = vsmask.f32 (!%p168_p2), 3328 }
   0x7   : > { %1384 = vmatprep.subr.bf16.mxu0 (!%p168_p2), %v1442_v1  ;;  %1361 = vmatpush3.bf16.msra.mxu1 (!%p168_p2), %v1441_v0  ;;  %v1454_v8 = vld [vmem:[%s1640_s1 + $0x18] sm:$0xff] (!%p168_p2)   ;;  %vm363_vm2 = vsmask.f32 (!%p168_p2), 7440 }
   0x8   : > { %1385 = vmatpush3.bf16.msra.mxu0 (!%p168_p2), %v1442_v1  ;;  %1362 = vmatprep.subr.bf16.mxu1 (!%p168_p2), %v1443_v2  ;;  %v1456_v15 = vld [vmem:[%s1640_s1 + $0x38] sm:$0xff] (!%p168_p2)   ;;  %vm1557_vm3 = vmor (!%p168_p2), %vm362_vm1, %vm363_vm2 }
   0x9   : > { %1386 = vmatprep.subr.bf16.mxu0 (!%p168_p2), %v1444_v3 }
   0xb   : > { %1363 = vmatpush3.bf16.msra.mxu1 (!%p168_p2), %v1443_v2 }
   0xc   : > { %1387 = vmatpush3.bf16.msra.mxu0 (!%p168_p2), %v1444_v3  ;;  %1372 = vmatprep.subr.bf16.mxu1 (!%p168_p2), %v1448_v4 }
   0xd   : > { %s1647_s16 = smov (!%p199_p3, %s1210_s16), 1  ;;  %1396 = vmatprep.subr.bf16.mxu0 %v1450_v5 }
   0xe   : > { %s1432_s25 = smul.u32 72, %s1647_s16  ;;  %s1304_s11 = sshll.u32 %s1647_s16, 5 }
   0xf   : > { %s208_s14 = scalar_lea.vmem %s1641_s2, %s1304_s11  ;;  %s211_s19 = scalar_lea.vmem %s1642_s3, %s1647_s16 }
  0x10   : > { %s1522_s6 = scalar_lea.vmem %s1639_s0, %s1432_s25  ;;  %s214_s22 = scalar_lea.vmem %s1643_s4, %s1647_s16 }
  0x11   : > { %v1445_v6 = vld [vmem:[%s1522_s6] ss:$8 sps:$4 sm:$0xff]   ;;  %v1447_v9 = vld [vmem:[%s1522_s6 + $0x10] ss:$8 sps:$4 sm:$0xff]   ;;  %v347_v17 = vld [vmem:[%s1522_s6 + $0x4] sm:$0x1] }
  0x12   : > { %v1446_v7 = vld [vmem:[%s1522_s6 + $0x8] ss:$8 sps:$4 sm:$0xff]   ;;  %1364 = vmatprep.mubr.msk.bf16.mxu1 %vm260_vm0, %v1445_v6  ;;  %v1449_v10 = vld [vmem:[%s1522_s6 + $0x18] ss:$8 sps:$4 sm:$0xff]   ;;  %v349_v19 = vld [vmem:[%s1522_s6 + $0xc] sm:$0x1] }
  0x13   : > { %1388 = vmatprep.mubr.msk.bf16.mxu0 %vm260_vm0, %v1446_v7  ;;  %1365 = vmatmul.mubr.msk.bf16.vlgmr.msra.gmra.mrb[0].mxu1 %vm260_vm0, %v1447_v9  ;;  %v1451_v11 = vld [vmem:[%s1522_s6 + $0x20] ss:$8 sps:$4 sm:$0xff]   ;;  %v1453_v13 = vld [vmem:[%s1522_s6 + $0x30] ss:$8 sps:$4 sm:$0xff]   ;;  %v375_v22 = vshll.u32 %v347_v17, 16  ;;  %v389_v26 = vshll.u32 %v349_v19, 16 }
  0x14   : > { %1389 = vmatmul.mubr.msk.bf16.vlgmr.msra.gmra.mrb[0].mxu0 %vm260_vm0, %v1449_v10  ;;  %1373 = vmatpush3.bf16.msra.mxu1 %v1448_v4  ;;  %v1452_v12 = vld [vmem:[%s1522_s6 + $0x28] ss:$8 sps:$4 sm:$0xff]   ;;  %v1455_v14 = vld [vmem:[%s1522_s6 + $0x38] ss:$8 sps:$4 sm:$0xff]   ;;  %v1265_v27 = vld [vmem:[%s1522_s6 + $0xc] sm:$0x1] }
  0x15   : > { %1397 = vmatpush3.bf16.msra.mxu0 %v1450_v5  ;;  %1368 = vmatprep.mubr.msk.bf16.mxu1 %vm260_vm0, %v1451_v11  ;;  %v346_v16 = vld [vmem:[%s1522_s6] sm:$0xf]  ;;  %v348_v18 = vld [vmem:[%s1522_s6 + $0x8] sm:$0xf]  ;;  %v1266_v28 = vld [vmem:[%s1522_s6 + $0x10] sm:$0xf] }
  0x16   : > { %1392 = vmatprep.mubr.msk.bf16.mxu0 %vm260_vm0, %v1452_v12  ;;  %1374 = vmatprep.subr.bf16.mxu1 %v1454_v8  ;;  %v366_v20 = vshrl.u32 %v346_v16, 16  ;;  %v369_v21 = vshll.u32 %v346_v16, 16  ;;  %v380_v23 = vshrl.u32 %v348_v18, 16  ;;  %v1264_v24 = vld [vmem:[%s1522_s6 + $0x8] sm:$0xf]  ;;  %v383_v25 = vshll.u32 %v348_v18, 16 }
  0x17   : > { %1398 = vmatprep.subr.bf16.mxu0 %v1456_v15  ;;  %v377_v31 = vrot.slane %v375_v22, 5  ;;  %v1267_v33 = vld [vmem:[%s1522_s6 + $0x14] sm:$0x1]  ;;  %v391_v35 = vrot.slane %v389_v26, 5  ;;  %v771_v36 = vshrl.u32 %v1264_v24, 16  ;;  %v774_v37 = vshll.u32 %v1264_v24, 16 }
  0x18   : > { %1375 = vmatpush3.bf16.msra.mxu1 %v1454_v8  ;;  %v368_v29 = vrot.slane %v366_v20, 4  ;;  %v371_v30 = vrot.slane %v369_v21, 5  ;;  %v382_v32 = vrot.slane %v380_v23, 4  ;;  %v385_v34 = vrot.slane %v383_v25, 5  ;;  %v350_v42 = vld [vmem:[%s1522_s6 + $0x10] sm:$0xf] }
  0x19   : > { %1399 = vmatpush3.bf16.msra.mxu0 %v1456_v15  ;;  %v780_v39 = vshll.u32 %v1265_v27, 16  ;;  %v785_v40 = vshrl.u32 %v1266_v28, 16  ;;  %v788_v41 = vshll.u32 %v1266_v28, 16  ;;  %v773_v45 = vrot.slane %v771_v36, 4  ;;  %v351_v48 = vld [vmem:[%s1522_s6 + $0x14] sm:$0x1] }
  0x1a   : > { %v372_v38 = vor.u32 %v371_v30, %v368_v29  ;;  %v386_v44 = vor.u32 %v385_v34, %v382_v32  ;;  %v776_v46 = vrot.slane %v774_v37, 5  ;;  %v794_v47 = vshll.u32 %v1267_v33, 16  ;;  %v352_v53 = vld [vmem:[%s1522_s6 + $0x18] sm:$0xf]  ;;  %v353_v60 = vld [vmem:[%s1522_s6 + $0x1c] sm:$0x1] }
  0x1b   : > { %1369 = vmatmul.mubr.msk.bf16.gmra.mrb[4].mxu1 %vm260_vm0, %v1453_v13  ;;  %v782_v50 = vrot.slane %v780_v39, 5  ;;  %v787_v51 = vrot.slane %v785_v40, 4  ;;  %v790_v52 = vrot.slane %v788_v41, 5  ;;  %v394_v57 = vshrl.u32 %v350_v42, 16  ;;  %v1268_v3 = vld [vmem:[%s1522_s6 + $0x18] sm:$0xf] }
  0x1c   : > { %1393 = vmatmul.mubr.msk.bf16.gmra.mrb[4].mxu0 %vm260_vm0, %v1455_v14  ;;  %v373_v49 = vrot.slane %v372_v38, 4  ;;  %v387_v54 = vrot.slane %v386_v44, 4  ;;  %v777_v55 = vor.u32 %v776_v46, %v773_v45  ;;  %v796_v56 = vrot.slane %v794_v47, 5  ;;  %v1269_v8 = vld [vmem:[%s1522_s6 + $0x1c] sm:$0x1] }
  0x1d   : > { %v791_v59 = vor.u32 %v790_v52, %v787_v51  ;;  %v397_v61 = vshll.u32 %v350_v42, 16  ;;  %v403_v62 = vshll.u32 %v351_v48, 16  ;;  %v396_v1 = vrot.slane %v394_v57, 4  ;;  %v1270_v13 = vld [vmem:[%s1522_s6 + $0x20] sm:$0xf] }
  0x1e   : > { %v378_v58 = vsel %vm1557_vm3, %v373_v49, %v377_v31  ;;  %v392_v63 = vsel %vm1557_vm3, %v387_v54, %v391_v35  ;;  %v778_v0 = vrot.slane %v777_v55, 4  ;;  %v408_v2 = vshrl.u32 %v352_v53, 16  ;;  %v1271_v16 = vld [vmem:[%s1522_s6 + $0x24] sm:$0x1]  ;;  %v354_v23 = vld [vmem:[%s1522_s6 + $0x20] sm:$0xf] }
  0x1f   : > { %v1232_v4 = vcombine.low %v378_v58, %v392_v63  ;;  %v792_v5 = vrot.slane %v791_v59, 4  ;;  %v399_v6 = vrot.slane %v397_v61, 5  ;;  %v405_v7 = vrot.slane %v403_v62, 5  ;;  %v355_v28 = vld [vmem:[%s1522_s6 + $0x24] sm:$0x1] }
  0x20   : > { %v783_v9 = vsel %vm1557_vm3, %v778_v0, %v782_v50  ;;  %v410_v10 = vrot.slane %v408_v2, 4  ;;  %v411_v11 = vshll.u32 %v352_v53, 16  ;;  %v417_v12 = vshll.u32 %v353_v60, 16  ;;  %v356_v33 = vld [vmem:[%s1522_s6 + $0x28] sm:$0xf] }
  0x21   : > { %1376 = vmatprep.mubr.msk.bf16.mxu1 %vm260_vm0, %v1232_v4  ;;  %v797_v14 = vsel %vm1557_vm3, %v792_v5, %v796_v56  ;;  %v400_v15 = vor.u32 %v399_v6, %v396_v1  ;;  %v799_v17 = vshrl.u32 %v1268_v3, 16  ;;  %v802_v18 = vshll.u32 %v1268_v3, 16  ;;  %v357_v41 = vld [vmem:[%s1522_s6 + $0x2c] sm:$0x1]  ;;  %v1272_v48 = vld [vmem:[%s1522_s6 + $0x28] sm:$0xf] }
  0x22   : > { %v1284_v19 = vcombine.low %v783_v9, %v797_v14  ;;  %v413_v20 = vrot.slane %v411_v11, 5  ;;  %v419_v21 = vrot.slane %v417_v12, 5  ;;  %v808_v22 = vshll.u32 %v1269_v8, 16  ;;  %v1273_v53 = vld [vmem:[%s1522_s6 + $0x2c] sm:$0x1] }
  0x23   : > { %v401_v24 = vrot.slane %v400_v15, 4  ;;  %v801_v25 = vrot.slane %v799_v17, 4  ;;  %v804_v26 = vrot.slane %v802_v18, 5  ;;  %v813_v27 = vshrl.u32 %v1270_v13, 16  ;;  %v1274_v54 = vld [vmem:[%s1522_s6 + $0x30] sm:$0xf] }
  0x24   : > { %1400 = vmatprep.mubr.msk.bf16.mxu0 %vm260_vm0, %v1284_v19  ;;  %v414_v29 = vor.u32 %v413_v20, %v410_v10  ;;  %v810_v30 = vrot.slane %v808_v22, 5  ;;  %v816_v31 = vshll.u32 %v1270_v13, 16  ;;  %v822_v32 = vshll.u32 %v1271_v16, 16  ;;  %v1275_v63 = vld [vmem:[%s1522_s6 + $0x34] sm:$0x1] }
  0x25   : > { %v406_v34 = vsel %vm1557_vm3, %v401_v24, %v405_v7  ;;  %v805_v35 = vor.u32 %v804_v26, %v801_v25  ;;  %v815_v36 = vrot.slane %v813_v27, 4  ;;  %v422_v37 = vshrl.u32 %v354_v23, 16  ;;  %v358_v8 = vld [vmem:[%s1522_s6 + $0x30] sm:$0xf]  ;;  %v359_v9 = vld [vmem:[%s1522_s6 + $0x34] sm:$0x1] }
  0x26   : > { %v415_v38 = vrot.slane %v414_v29, 4  ;;  %v818_v39 = vrot.slane %v816_v31, 5  ;;  %v824_v40 = vrot.slane %v822_v32, 5  ;;  %v425_v42 = vshll.u32 %v354_v23, 16  ;;  %v360_v14 = vld [vmem:[%s1522_s6 + $0x38] sm:$0xf] }
  0x27   : > { %v806_v44 = vrot.slane %v805_v35, 4  ;;  %v424_v45 = vrot.slane %v422_v37, 4  ;;  %v431_v46 = vshll.u32 %v355_v28, 16  ;;  %v436_v47 = vshrl.u32 %v356_v33, 16  ;;  %v1276_v28 = vld [vmem:[%s1522_s6 + $0x38] sm:$0xf] }
  0x28   : > { %v420_v49 = vsel %vm1557_vm3, %v415_v38, %v419_v21  ;;  %v819_v50 = vor.u32 %v818_v39, %v815_v36  ;;  %v427_v51 = vrot.slane %v425_v42, 5  ;;  %v439_v52 = vshll.u32 %v356_v33, 16  ;;  %v361_v21 = vld [vmem:[%s1522_s6 + $0x3c] sm:$0x1]  ;;  %v1278_v37 = vld [vmem:[%s1522_s6 + $0x40] sm:$0xf] }
  0x29   : > { %v1233_v55 = vcombine.low %v406_v34, %v420_v49  ;;  %v811_v56 = vsel %vm1557_vm3, %v806_v44, %v810_v30  ;;  %v433_v57 = vrot.slane %v431_v46, 5  ;;  %v438_v58 = vrot.slane %v436_v47, 4  ;;  %v1277_v32 = vld [vmem:[%s1522_s6 + $0x3c] sm:$0x1] }
  0x2a   : > { %v820_v59 = vrot.slane %v819_v50, 4  ;;  %v428_v60 = vor.u32 %v427_v51, %v424_v45  ;;  %v441_v61 = vrot.slane %v439_v52, 5  ;;  %v445_v62 = vshll.u32 %v357_v41, 16 }
  0x2b   : > { %1377 = vmatmul.mubr.msk.bf16.vlgmr.msra.gmra.mrb[0].mxu1 %vm260_vm0, %v1233_v55  ;;  %v827_v0 = vshrl.u32 %v1272_v48, 16  ;;  %v830_v1 = vshll.u32 %v1272_v48, 16  ;;  %v836_v2 = vshll.u32 %v1273_v53, 16  ;;  %v841_v3 = vshrl.u32 %v1274_v54, 16  ;;  %v1279_v48 = vld [vmem:[%s1522_s6 + $0x44] sm:$0x1] }
  0x2c   : > { %v825_v4 = vsel %vm1557_vm3, %v820_v59, %v824_v40  ;;  %v429_v5 = vrot.slane %v428_v60, 4  ;;  %v442_v6 = vor.u32 %v441_v61, %v438_v58  ;;  %v447_v7 = vrot.slane %v445_v62, 5 }
  0x2d   : > { %v1285_v10 = vcombine.low %v811_v56, %v825_v4  ;;  %v829_v11 = vrot.slane %v827_v0, 4  ;;  %v832_v12 = vrot.slane %v830_v1, 5  ;;  %v838_v13 = vrot.slane %v836_v2, 5 }
  0x2e   : > { %v434_v15 = vsel %vm1557_vm3, %v429_v5, %v433_v57  ;;  %v443_v16 = vrot.slane %v442_v6, 4  ;;  %v843_v17 = vrot.slane %v841_v3, 4  ;;  %v844_v18 = vshll.u32 %v1274_v54, 16 }
  0x2f   : > { %1401 = vmatmul.mubr.msk.bf16.vlgmr.msra.gmra.mrb[0].mxu0 %vm260_vm0, %v1285_v10  ;;  %v833_v19 = vor.u32 %v832_v12, %v829_v11  ;;  %v850_v20 = vshll.u32 %v1275_v63, 16  ;;  %v450_v22 = vshrl.u32 %v358_v8, 16  ;;  %v453_v23 = vshll.u32 %v358_v8, 16 }
  0x30   : > { %v448_v24 = vsel %vm1557_vm3, %v443_v16, %v447_v7  ;;  %v846_v25 = vrot.slane %v844_v18, 5  ;;  %v459_v26 = vshll.u32 %v359_v9, 16  ;;  %v464_v27 = vshrl.u32 %v360_v14, 16 }
  0x31   : > { %v1234_v29 = vcombine.low %v434_v15, %v448_v24  ;;  %v834_v30 = vrot.slane %v833_v19, 4  ;;  %v452_v31 = vrot.slane %v450_v22, 4  ;;  %v852_v34 = vrot.slane %v850_v20, 5 }
  0x32   : > { %v847_v33 = vor.u32 %v846_v25, %v843_v17  ;;  %v455_v35 = vrot.slane %v453_v23, 5  ;;  %v461_v36 = vrot.slane %v459_v26, 5  ;;  %v466_v38 = vrot.slane %v464_v27, 4 }
  0x33   : > { %1380 = vmatprep.mubr.msk.bf16.mxu1 %vm260_vm0, %v1234_v29  ;;  %v467_v39 = vshll.u32 %v360_v14, 16  ;;  %v473_v40 = vshll.u32 %v361_v21, 16  ;;  %v855_v41 = vshrl.u32 %v1276_v28, 16  ;;  %v839_v42 = vsel %vm1557_vm3, %v834_v30, %v838_v13 }
  0x34   : > { %v848_v44 = vrot.slane %v847_v33, 4  ;;  %v456_v45 = vor.u32 %v455_v35, %v452_v31  ;;  %v858_v46 = vshll.u32 %v1276_v28, 16  ;;  %v864_v50 = vshll.u32 %v1277_v32, 16 }
  0x35   : > { %v469_v47 = vrot.slane %v467_v39, 5  ;;  %v857_v49 = vrot.slane %v855_v41, 4  ;;  %v869_v51 = vshrl.u32 %v1278_v37, 16  ;;  %v475_v54 = vrot.slane %v473_v40, 5 }
  0x36   : > { %v853_v52 = vsel %vm1557_vm3, %v848_v44, %v852_v34  ;;  %v457_v53 = vrot.slane %v456_v45, 4  ;;  %v860_v55 = vrot.slane %v858_v46, 5  ;;  %v872_v59 = vshll.u32 %v1278_v37, 16 }
  0x37   : > { %v1286_v56 = vcombine.low %v839_v42, %v853_v52  ;;  %v470_v57 = vor.u32 %v469_v47, %v466_v38  ;;  %v871_v58 = vrot.slane %v869_v51, 4  ;;  %v878_v61 = vshll.u32 %v1279_v48, 16 }
  0x38   : > { %v861_v60 = vor.u32 %v860_v55, %v857_v49  ;;  %v462_v62 = vsel %vm1557_vm3, %v457_v53, %v461_v36  ;;  %v866_v0 = vrot.slane %v864_v50, 5  ;;  %v874_v1 = vrot.slane %v872_v59, 5 }
  0x39   : > { %1404 = vmatprep.mubr.msk.bf16.mxu0 %vm260_vm0, %v1286_v56  ;;  %v471_v63 = vrot.slane %v470_v57, 4  ;;  %v880_v5 = vrot.slane %v878_v61, 5 }
  0x3a   : > { %v862_v2 = vrot.slane %v861_v60, 4  ;;  %v875_v4 = vor.u32 %v874_v1, %v871_v58 }
  0x3b   : > { %v476_v3 = vsel %vm1557_vm3, %v471_v63, %v475_v54 }
  0x3c   : > { %v1235_v6 = vcombine.low %v462_v62, %v476_v3  ;;  %v867_v7 = vsel %vm1557_vm3, %v862_v2, %v866_v0  ;;  %v876_v8 = vrot.slane %v875_v4, 4 }
  0x3e   : > { %1381 = vmatmul.mubr.msk.bf16.gmra.mrb[4].mxu1 %vm260_vm0, %v1235_v6  ;;  %v881_v9 = vsel %vm1557_vm3, %v876_v8, %v880_v5 }
  0x3f   : > { %v1287_v10 = vcombine.low %v867_v7, %v881_v9 }
  0x41   : > { %1405 = vmatmul.mubr.msk.bf16.gmra.mrb[4].mxu0 %vm260_vm0, %v1287_v10 }
  0xfe   : > { %v1378_v11 = vpop.f32.mrb[0].mxu1 }
  0xff   : > { %v552_v12 = vpop.f32.mrb[1].mxu1 }
 0x100   : > { %v1379_v13 = vpop.f32.mrb[2].mxu1 }
 0x101   : > { %v555_v14 = vpop.f32.mrb[3].mxu1 }
 0x102   : > { %v1402_v15 = vpop.f32.mrb[0].mxu0 }
 0x103   : > { %v1408_v16 = vadd.f32 %v1402_v15, %v1378_v11  ;;  %v957_v17 = vpop.f32.mrb[1].mxu0 }
 0x104   : > { %v1409_v18 = vadd.f32 %v957_v17, %v552_v12  ;;  %v1403_v19 = vpop.f32.mrb[2].mxu0 }
 0x105   : > { %v1410_v20 = vadd.f32 %v1403_v19, %v1379_v13  ;;  %v960_v21 = vpop.f32.mrb[3].mxu0 }
 0x106   : > { %v1411_v43 = vadd.f32 %v960_v21, %v555_v14 }
 0x107   : > { %v1321_v22 = vpack.c.bf16 %v1410_v20, %v1408_v16 }
 0x108   : > { %v1020_v23 = vadd.f32 %v1411_v43, %v1409_v18  ;;  %v1316_v24 = vpack.c.bf16 %v1411_v43, %v1409_v18 }
 0x109   : > { %1333 = vst [vmem:[%s208_s14 + $0x8] sm:$0xff] %v1321_v22  }
 0x10a   : > { %v1021_v25 = vadd.f32 %v1408_v16, %v1020_v23  ;;  %1317 = vst [vmem:[%s208_s14] sm:$0xff] %v1316_v24  }
 0x10c   : > { %v1022_v26 = vadd.f32 %v1410_v20, %v1021_v25 }
 0x111   : > { %v1382_v27 = vpop.f32.mrb[4].mxu1 }
 0x112   : > { %v568_v28 = vpop.f32.mrb[5].mxu1 }
 0x113   : > { %v1383_v29 = vpop.f32.mrb[6].mxu1 }
 0x114   : > { %v571_v30 = vpop.f32.mrb[7].mxu1  ;;  %v1406_v31 = vpop.f32.mrb[4].mxu0 }
 0x115   : > { %v1412_v32 = vadd.f32 %v1406_v31, %v1382_v27  ;;  %v973_v33 = vpop.f32.mrb[5].mxu0 }
 0x116   : > { %v1413_v34 = vadd.f32 %v973_v33, %v568_v28  ;;  %v1407_v35 = vpop.f32.mrb[6].mxu0 }
 0x117   : > { %v1414_v36 = vadd.f32 %v1407_v35, %v1383_v29  ;;  %v976_v37 = vpop.f32.mrb[7].mxu0 }
 0x118   : > { %v1023_v38 = vadd.f32 %v1413_v34, %v1022_v26  ;;  %v1415_v39 = vadd.f32 %v976_v37, %v571_v30 }
 0x119   : > { %v1331_v40 = vpack.c.bf16 %v1414_v36, %v1412_v32 }
 0x11a   : > { %v1024_v41 = vadd.f32 %v1415_v39, %v1023_v38  ;;  %v1326_v42 = vpack.c.bf16 %v1415_v39, %v1413_v34 }
 0x11b   : > { %1335 = vst [vmem:[%s208_s14 + $0x18] sm:$0xff] %v1331_v40  }
 0x11c   : > { %v1025_v44 = vadd.f32 %v1412_v32, %v1024_v41  ;;  %1334 = vst [vmem:[%s208_s14 + $0x10] sm:$0xff] %v1326_v42  }
 0x11e   : > { %v1026_v45 = vadd.f32 %v1414_v36, %v1025_v44 }
 0x120   : > { %v1027_v46 = vrot.slane %v1026_v45, 4 }
 0x122   : > { %v1028_v47 = vadd.f32 %v1027_v46, %v1026_v45 }
 0x124   : > { %v1029_v48 = vrot.slane %v1028_v47, 2 }
 0x126   : > { %v1030_v49 = vadd.f32 %v1029_v48, %v1028_v47 }
 0x128   : > { %v1031_v50 = vrot.slane %v1030_v49, 1 }
 0x12a   : > { %v1032_v51 = vadd.f32 %v1031_v50, %v1030_v49 }
 0x12c   : > { %v1033_v52 = vmul.f32 0.015625, %v1032_v51  ;;  %1063 = vst [vmem:[%s211_s19] sm:$0x1] %v1032_v51 }
 0x12e   : > { %v1034_v53 = vsub.f32 %v1409_v18, %v1033_v52  ;;  %v1035_v54 = vsub.f32 %v1411_v43, %v1033_v52  ;;  %v1036_v55 = vsub.f32 %v1408_v16, %v1033_v52  ;;  %v1037_v56 = vsub.f32 %v1410_v20, %v1033_v52 }
 0x12f   : > { %v1038_v57 = vsub.f32 %v1413_v34, %v1033_v52  ;;  %v1039_v58 = vsub.f32 %v1415_v39, %v1033_v52  ;;  %v1040_v59 = vsub.f32 %v1412_v32, %v1033_v52  ;;  %v1041_v60 = vsub.f32 %v1414_v36, %v1033_v52 }
 0x130   : > { %v1042_v61 = vmul.f32 %v1034_v53, %v1034_v53  ;;  %v1043_v62 = vmul.f32 %v1035_v54, %v1035_v54  ;;  %v1044_v63 = vmul.f32 %v1036_v55, %v1036_v55  ;;  %v1045_v1 = vmul.f32 %v1037_v56, %v1037_v56 }
 0x131   : > { %v1046_v3 = vmul.f32 %v1038_v57, %v1038_v57  ;;  %v1047_v5 = vmul.f32 %v1039_v58, %v1039_v58  ;;  %v1048_v7 = vmul.f32 %v1040_v59, %v1040_v59  ;;  %v1049_v9 = vmul.f32 %v1041_v60, %v1041_v60 }
 0x132   : > { %v1050_v0 = vadd.f32 %v1043_v62, %v1042_v61 }
 0x134   : > { %v1051_v2 = vadd.f32 %v1050_v0, %v1044_v63 }
 0x136   : > { %v1052_v4 = vadd.f32 %v1051_v2, %v1045_v1 }
 0x138   : > { %v1053_v6 = vadd.f32 %v1052_v4, %v1046_v3 }
 0x13a   : > { %v1054_v8 = vadd.f32 %v1053_v6, %v1047_v5 }
 0x13c   : > { %v1055_v10 = vadd.f32 %v1054_v8, %v1048_v7 }
 0x13e   : > { %v1056_v11 = vadd.f32 %v1055_v10, %v1049_v9 }
 0x140   : > { %v1057_v12 = vrot.slane %v1056_v11, 4 }
 0x142   : > { %v1058_v13 = vadd.f32 %v1057_v12, %v1056_v11 }
 0x144   : > { %v1059_v14 = vrot.slane %v1058_v13, 2 }
 0x146   : > { %v1060_v15 = vadd.f32 %v1059_v14, %v1058_v13 }
 0x148   : > { %v1061_v16 = vrot.slane %v1060_v15, 1 }
 0x14a   : > { %v1062_v17 = vadd.f32 %v1061_v16, %v1060_v15 }
 0x14c   : > { %1064 = vst [vmem:[%s214_s22] sm:$0x1] %v1062_v17 }
 0x14d PF: > { %s15_s15 = sadd.s32 1, %s1463_s15  }
 0x14e   : > { %p12_p4 = scmp.ge.s32.totalorder %s15_s15, 4  }
 0x150   :  { %14 = sbr.rel (!%p12_p4) target bundleno = 1 (0x1), region = 86 }

// kernel: discriminator_forward.7
= control target key start
LH: loop header
LB: loop body
LE: loop exit
PB: predicated region body
PF: predicated region fallthrough
CT: control target
= control target key end

     0   :  { %s1196_s15 = smov 0   ;;  %s1346_s0 = inlined_call_operand.vmem [shape: bf16[2,5,5,64], index: 0, kind: input, shape index: {}]   ;;  %s1347_s1 = inlined_call_operand.vmem [shape: bf16[4,64,128], index: 1, kind: input, shape index: {}]   ;;  %s1348_s2 = inlined_call_operand.vmem [shape: bf16[2,16,128], index: 2, kind: output, shape index: {0}]   ;;  %s1349_s3 = inlined_call_operand.vmem [shape: f32[2,1,128], index: 3, kind: output, shape index: {1}]   ;;  %s1350_s4 = inlined_call_operand.vmem [shape: f32[2,1,128], index: 4, kind: output, shape index: {2}]  }
   0x1 LB: > { %s966_s16 = sadd.s32 4294967295, %s1166_s15   ;;  %p970_p0 = scmp.ge.s32.totalorder %s1166_s15, 1  ;;  %s1166_s15 = sphi %s1196_s15, %s15_s15  }
   0x2   : > { %p167_p1 = scmp.lt.s32.totalorder %s1166_s15, 3 }
   0x4   : > { %p168_p2 = pnand %p970_p0, %p167_p1 }
   0x5   : > { %v1136_v0 = vld [vmem:[%s1347_s1] sm:$0xff] (!%p168_p2)   ;;  %v1168_v1 = vmov (!%p168_p2), 0.0   ;;  %v1138_v3 = vld [vmem:[%s1347_s1 + $0x8] sm:$0xff] (!%p168_p2)   ;;  %vm1169_vm0 = vmmov (!%p168_p2), 0   ;;  %p199_p3 = scmp.lt.s32.totalorder (!%p168_p2), %s966_s16, 1  ;;  %v237_v5 = vlaneseq (!%p168_p2)  ;;  %v1140_v6 = vld [vmem:[%s1347_s1 + $0x10] sm:$0xff] (!%p168_p2)  }
   0x6   : > { %171 = sbr.rel (%p168_p2) target bundleno = 298 (0x12a), region = 28  ;;  %1066 = vmatprep.subr.bf16.mxu1 (!%p168_p2), %v1168_v1  ;;  %1090 = vmatprep.subr.bf16.mxu0 (!%p168_p2), %v1168_v1  ;;  %v1137_v2 = vld [vmem:[%s1347_s1 + $0x40] sm:$0xff] (!%p168_p2)   ;;  %v1139_v4 = vld [vmem:[%s1347_s1 + $0x48] sm:$0xff] (!%p168_p2)   ;;  %v1141_v7 = vld [vmem:[%s1347_s1 + $0x50] sm:$0xff] (!%p168_p2)   ;;  %v1170_v10 = vmov (!%p168_p2), 1983009808  }
   0x7   : > { %1067 = vmatpush3.bf16.msra.mxu1 (!%p168_p2), %v1136_v0  ;;  %1074 = vmatprep.mubr.msk.bf16.mxu1 (!%p168_p2), %vm1169_vm0, %v1168_v1  ;;  %v238_v8 = vshrl.u32 (!%p168_p2), %v237_v5, 7  ;;  %v1142_v9 = vld [vmem:[%s1347_s1 + $0x18] sm:$0xff] (!%p168_p2)   ;;  %v235_v11 = vunpack.c.l.s4 (!%p168_p2), %v1170_v10  ;;  %vm273_vm1 = vcmask (!%p168_p2), 523264   ;;  %v1146_v19 = vld [vmem:[%s1347_s1 + $0x20] sm:$0xff] (!%p168_p2)   ;;  %v1150_v23 = vld [vmem:[%s1347_s1 + $0x28] sm:$0xff] (!%p168_p2)  }
   0x8   : > { %1091 = vmatpush3.bf16.msra.mxu0 (!%p168_p2), %v1137_v2  ;;  %1068 = vmatprep.subr.bf16.mxu1 (!%p168_p2), %v1168_v1  ;;  %v1143_v12 = vld [vmem:[%s1347_s1 + $0x58] sm:$0xff] (!%p168_p2)   ;;  %v1149_v21 = vld [vmem:[%s1347_s1 + $0x60] sm:$0xff] (!%p168_p2)   ;;  %v1151_v24 = vld [vmem:[%s1347_s1 + $0x68] sm:$0xff] (!%p168_p2)   ;;  %vm360_vm2 = vsmask.f32 (!%p168_p2), 1280 }
   0x9   : > { %1092 = vmatprep.subr.bf16.mxu0 (!%p168_p2), %v1168_v1  ;;  %1098 = vmatprep.mubr.msk.bf16.mxu0 (!%p168_p2), %vm1169_vm0, %v1168_v1  ;;  %v236_v15 = vunpack.c.0.s8 (!%p168_p2), %v235_v11  ;;  %vm361_vm3 = vsmask.f32 (!%p168_p2), 3336  ;;  %vm363_vm5 = vsmask.f32 (!%p168_p2), 5392  ;;  %v1152_v33 = vld [vmem:[%s1347_s1 + $0x30] sm:$0xff] (!%p168_p2)   ;;  %v1154_v51 = vld [vmem:[%s1347_s1 + $0x38] sm:$0xff] (!%p168_p2)  }
   0xa   : > { %vm1280_vm4 = vmor (!%p168_p2), %vm360_vm2, %vm361_vm3  ;;  %vm365_vm6 = vsmask.f32 (!%p168_p2), 7448  ;;  %v1153_v37 = vld [vmem:[%s1347_s1 + $0x70] sm:$0xff] (!%p168_p2)   ;;  %v1155_v56 = vld [vmem:[%s1347_s1 + $0x78] sm:$0xff] (!%p168_p2)  }
   0xb   : > { %1069 = vmatpush3.bf16.msra.mxu1 (!%p168_p2), %v1138_v3  ;;  %v1251_v17 = vsub.s32 (!%p168_p2), %v236_v15, %v238_v8  ;;  %vm1295_vm7 = vmor (!%p168_p2), %vm1280_vm4, %vm363_vm5 }
   0xc   : > { %1093 = vmatpush3.bf16.msra.mxu0 (!%p168_p2), %v1139_v4  ;;  %1070 = vmatprep.subr.bf16.mxu1 (!%p168_p2), %v1168_v1  ;;  %vm1309_vm8 = vmor (!%p168_p2), %vm1295_vm7, %vm365_vm6 }
   0xd   : > { %s1358_s16 = smov (!%p199_p3, %s966_s16), 1  ;;  %1094 = vmatprep.subr.bf16.mxu0 %v1168_v1 }
   0xe   : > { %s1124_s27 = smul.u32 20, %s1358_s16  ;;  %s1038_s29 = sshll.u32 %s1358_s16, 3 }
   0xf   : > { %1071 = vmatpush3.bf16.msra.mxu1 %v1140_v6  ;;  %s208_s6 = scalar_lea.vmem %s1348_s2, %s1038_s29  ;;  %s211_s9 = scalar_lea.vmem %s1349_s3, %s1358_s16 }
  0x10   : > { %s1241_s8 = scalar_lea.vmem %s1346_s0, %s1124_s27  ;;  %1095 = vmatpush3.bf16.msra.mxu0 %v1141_v7  ;;  %1072 = vmatprep.subr.bf16.mxu1 %v1168_v1  ;;  %s214_s12 = scalar_lea.vmem %s1350_s4, %s1358_s16 }
  0x11   : > { %v1156_v13 = vld.sshfl [vmem:[%s1241_s8] sm:$0xf pattern:$0x76325410]  ;;  %1096 = vmatprep.subr.bf16.mxu0 %v1168_v1 }
  0x12   : > { %v1157_v14 = vld.sshfl [vmem:[%s1241_s8 + $0x8] sm:$0xf pattern:$0x76325410] }
  0x13   : > { %v1158_v16 = vld.sshfl [vmem:[%s1241_s8 + $0x4] sm:$0xf pattern:$0x76325410]  ;;  %1073 = vmatpush3.bf16.msra.mxu1 %v1142_v9  ;;  %v248_v20 = vcombine.low %v1156_v13, %v1157_v14 }
  0x14   : > { %v1159_v18 = vld.sshfl [vmem:[%s1241_s8 + $0xc] sm:$0xf pattern:$0x76325410]  ;;  %1097 = vmatpush3.bf16.msra.mxu0 %v1143_v12  ;;  %1078 = vmatprep.subr.bf16.mxu1 %v1168_v1 }
  0x15   : > { %1102 = vmatprep.subr.bf16.mxu0 %v1168_v1  ;;  %v557_v22 = vcombine.low %v1158_v16, %v1159_v18  ;;  %v979_v25 = vld.sshfl [vmem:[%s1241_s8] sm:$0x13 pattern:$0x76325410] }
  0x16   : > { %1075 = vmatmul.mubr.msk.bf16.vlgmr.msra.gmra.mrb[0].mxu1 %vm273_vm1, %v248_v20  ;;  %v980_v26 = vld.sshfl [vmem:[%s1241_s8 + $0x4] sm:$0x13 pattern:$0x76325410]  ;;  %v335_v27 = vcombine.high %v979_v25, %v979_v25  ;;  %v368_v35 = vshrl.u32 %v979_v25, 16  ;;  %v371_v36 = vshll.u32 %v979_v25, 16 }
  0x17   : > { %1079 = vmatpush3.bf16.msra.mxu1 %v1146_v19  ;;  %1099 = vmatmul.mubr.msk.bf16.vlgmr.msra.gmra.mrb[0].mxu0 %vm273_vm1, %v557_v22  ;;  %v981_v28 = vld.sshfl [vmem:[%s1241_s8 + $0x8] sm:$0x13 pattern:$0x76325410]  ;;  %v343_v29 = vcombine.high %v980_v26, %v980_v26  ;;  %v382_v39 = vshrl.u32 %v980_v26, 16  ;;  %v385_v40 = vshll.u32 %v980_v26, 16 }
  0x18   : > { %1103 = vmatpush3.bf16.msra.mxu0 %v1149_v21  ;;  %1080 = vmatprep.subr.bf16.mxu1 %v1168_v1  ;;  %v982_v30 = vld.sshfl [vmem:[%s1241_s8 + $0xc] sm:$0x13 pattern:$0x76325410]  ;;  %v351_v31 = vcombine.high %v981_v28, %v981_v28  ;;  %v377_v38 = vshll.u32 %v335_v27, 16  ;;  %v370_v43 = vrot.slane %v368_v35, 6 }
  0x19   : > { %1104 = vmatprep.subr.bf16.mxu0 %v1168_v1  ;;  %1086 = vmatprep.mubr.msk.bf16.mxu1 %vm1169_vm0, %v1168_v1  ;;  %v359_v34 = vcombine.high %v982_v30, %v982_v30  ;;  %v391_v41 = vshll.u32 %v343_v29, 16  ;;  %v373_v44 = vrot.slane %v371_v36, 7  ;;  %v396_v45 = vshrl.u32 %v981_v28, 16 }
  0x1a   : > { %1110 = vmatprep.mubr.msk.bf16.mxu0 %vm1169_vm0, %v1168_v1  ;;  %v399_v46 = vshll.u32 %v981_v28, 16  ;;  %v379_v47 = vrot.slane %v377_v38, 7  ;;  %v384_v48 = vrot.slane %v382_v39, 6  ;;  %v387_v49 = vrot.slane %v385_v40, 7 }
  0x1b   : > { %1081 = vmatpush3.bf16.msra.mxu1 %v1150_v23  ;;  %v393_v50 = vrot.slane %v391_v41, 7  ;;  %v374_v52 = vor.u32 %v373_v44, %v370_v43  ;;  %v398_v53 = vrot.slane %v396_v45, 6  ;;  %v405_v55 = vshll.u32 %v351_v31, 16 }
  0x1c   : > { %1105 = vmatpush3.bf16.msra.mxu0 %v1151_v24  ;;  %1082 = vmatprep.subr.bf16.mxu1 %v1168_v1  ;;  %v401_v54 = vrot.slane %v399_v46, 7  ;;  %v388_v58 = vor.u32 %v387_v49, %v384_v48  ;;  %v410_v59 = vshrl.u32 %v982_v30, 16  ;;  %v413_v60 = vshll.u32 %v982_v30, 16 }
  0x1d   : > { %1106 = vmatprep.subr.bf16.mxu0 %v1168_v1  ;;  %v419_v61 = vshll.u32 %v359_v34, 16  ;;  %v375_v62 = vrot.slane %v374_v52, 2  ;;  %v1020_v0 = vld.sshfl [vmem:[%s1241_s8 + $0x10] sm:$0x13 pattern:$0x76325410] }
  0x1e   : > { %v402_v63 = vor.u32 %v401_v54, %v398_v53  ;;  %v389_v2 = vrot.slane %v388_v58, 2  ;;  %v407_v3 = vrot.slane %v405_v55, 7  ;;  %v412_v4 = vrot.slane %v410_v59, 6 }
  0x1f   : > { %1083 = vmatpush3.bf16.msra.mxu1 %v1152_v33  ;;  %v415_v5 = vrot.slane %v413_v60, 7  ;;  %v380_v6 = vsel %vm1309_vm8, %v375_v62, %v379_v47  ;;  %v671_v8 = vcombine.high %v1020_v0, %v1020_v0  ;;  %v715_v9 = vshrl.u32 %v1020_v0, 16 }
  0x20   : > { %1107 = vmatpush3.bf16.msra.mxu0 %v1153_v37  ;;  %1084 = vmatprep.subr.bf16.mxu1 %v1168_v1  ;;  %v403_v7 = vrot.slane %v402_v63, 2  ;;  %v394_v10 = vsel %vm1309_vm8, %v389_v2, %v393_v50  ;;  %v718_v12 = vshll.u32 %v1020_v0, 16 }
  0x21   : > { %1108 = vmatprep.subr.bf16.mxu0 %v1168_v1  ;;  %v416_v11 = vor.u32 %v415_v5, %v412_v4  ;;  %v421_v1 = vrot.slane %v419_v61, 7  ;;  %v432_v13 = vcombine.low %v380_v6, %v394_v10  ;;  %v717_v14 = vrot.slane %v715_v9, 6 }
  0x22   : > { %v724_v15 = vshll.u32 %v671_v8, 16  ;;  %v408_v16 = vsel %vm1309_vm8, %v403_v7, %v407_v3  ;;  %v720_v19 = vrot.slane %v718_v12, 7 }
  0x23   : > { %1085 = vmatpush3.bf16.msra.mxu1 %v1154_v51  ;;  %v417_v18 = vrot.slane %v416_v11, 2  ;;  %v440_v24 = vrot.slane %v432_v13, %v1251_v17  ;;  %v737_v25 = vcombine.low %v394_v10, %v408_v16 }
  0x24   : > { %1109 = vmatpush3.bf16.msra.mxu0 %v1155_v56  ;;  %v721_v21 = vor.u32 %v720_v19, %v717_v14  ;;  %v726_v22 = vrot.slane %v724_v15, 7 }
  0x25   : > { %v422_v20 = vsel %vm1309_vm8, %v417_v18, %v421_v1  ;;  %v745_v31 = vrot.slane %v737_v25, %v1251_v17 }
  0x26   : > { %v433_v23 = vcombine.low %v408_v16, %v422_v20  ;;  %v722_v26 = vrot.slane %v721_v21, 2 }
  0x28   : > { %v447_v27 = vrot.slane %v433_v23, %v1251_v17  ;;  %v727_v28 = vsel %vm1309_vm8, %v722_v26, %v726_v22 }
  0x29   : > { %v738_v30 = vcombine.low %v422_v20, %v727_v28 }
  0x2a   : > { %v448_v29 = vcombine.low %v440_v24, %v447_v27 }
  0x2b   : > { %v752_v32 = vrot.slane %v738_v30, %v1251_v17 }
  0x2c   : > { %1087 = vmatmul.mubr.msk.bf16.vlgmr.msra.gmra.mrb[0].mxu1 %vm273_vm1, %v448_v29 }
  0x2d   : > { %v753_v33 = vcombine.low %v745_v31, %v752_v32 }
  0x2f   : > { %1111 = vmatmul.mubr.msk.bf16.vlgmr.msra.gmra.mrb[0].mxu0 %vm273_vm1, %v753_v33 }
  0xff   : > { %v510_v34 = vpop.f32.mrb[0].mxu1 }
 0x100   : > { %v1088_v35 = vpop.f32.mrb[1].mxu1 }
 0x101   : > { %v513_v36 = vpop.f32.mrb[2].mxu1 }
 0x102   : > { %v1089_v37 = vpop.f32.mrb[3].mxu1  ;;  %v815_v38 = vpop.f32.mrb[0].mxu0 }
 0x103   : > { %v1114_v39 = vadd.f32 %v815_v38, %v510_v34  ;;  %v1112_v40 = vpop.f32.mrb[1].mxu0 }
 0x104   : > { %v818_v41 = vpop.f32.mrb[2].mxu0 }
 0x105   : > { %v1115_v42 = vadd.f32 %v818_v41, %v513_v36  ;;  %v1113_v43 = vpop.f32.mrb[3].mxu0 }
 0x107   : > { %v830_v17 = vadd.f32 %v1115_v42, %v1114_v39  ;;  %v1044_v44 = vpack.c.bf16 %v1115_v42, %v1114_v39 }
 0x109   : > { %v831_v45 = vrot.slane %v830_v17, 4  ;;  %1045 = vst [vmem:[%s208_s6] sm:$0xff] %v1044_v44  }
 0x10b   : > { %v832_v46 = vadd.f32 %v831_v45, %v830_v17 }
 0x10d   : > { %v833_v47 = vrot.slane %v832_v46, 2 }
 0x10f   : > { %v834_v48 = vadd.f32 %v833_v47, %v832_v46 }
 0x111   : > { %v835_v49 = vrot.slane %v834_v48, 1 }
 0x113   : > { %v836_v50 = vadd.f32 %v835_v49, %v834_v48 }
 0x115   : > { %v837_v51 = vmul.f32 0.0625, %v836_v50  ;;  %849 = vst [vmem:[%s211_s9] sm:$0x1] %v836_v50 }
 0x117   : > { %v838_v52 = vsub.f32 %v1114_v39, %v837_v51  ;;  %v839_v53 = vsub.f32 %v1115_v42, %v837_v51 }
 0x119   : > { %v840_v54 = vmul.f32 %v838_v52, %v838_v52  ;;  %v841_v55 = vmul.f32 %v839_v53, %v839_v53 }
 0x11b   : > { %v842_v56 = vadd.f32 %v841_v55, %v840_v54 }
 0x11d   : > { %v843_v57 = vrot.slane %v842_v56, 4 }
 0x11f   : > { %v844_v58 = vadd.f32 %v843_v57, %v842_v56 }
 0x121   : > { %v845_v59 = vrot.slane %v844_v58, 2 }
 0x123   : > { %v846_v60 = vadd.f32 %v845_v59, %v844_v58 }
 0x125   : > { %v847_v61 = vrot.slane %v846_v60, 1 }
 0x127   : > { %v848_v62 = vadd.f32 %v847_v61, %v846_v60 }
 0x129   : > { %850 = vst [vmem:[%s214_s12] sm:$0x1] %v848_v62 }
 0x12a PF: > { %s15_s15 = sadd.s32 1, %s1166_s15  }
 0x12b   : > { %p12_p4 = scmp.ge.s32.totalorder %s15_s15, 4  }
 0x12d   :  { %14 = sbr.rel (!%p12_p4) target bundleno = 1 (0x1), region = 86 }

// kernel: discriminator_forward.8
= control target key start
LH: loop header
LB: loop body
LE: loop exit
PB: predicated region body
PF: predicated region fallthrough
CT: control target
= control target key end

     0   :  { %s3952_s15 = smov 0   ;;  %s4457_s0 = inlined_call_operand.vmem [shape: bf16[2,6,6,32], index: 0, kind: input, shape index: {}]   ;;  %s4458_s1 = inlined_call_operand.vmem [shape: bf16[16,32,128], index: 1, kind: input, shape index: {}]   ;;  %s4459_s2 = inlined_call_operand.vmem [shape: bf16[2,9,128], index: 2, kind: output, shape index: {0}]   ;;  %s4460_s3 = inlined_call_operand.vmem [shape: f32[2,1,128], index: 3, kind: output, shape index: {1}]   ;;  %s4461_s4 = inlined_call_operand.vmem [shape: f32[2,1,128], index: 4, kind: output, shape index: {2}]  }
   0x1 LB: > { %s3457_s16 = sadd.s32 4294967295, %s3922_s15   ;;  %p3461_p0 = scmp.ge.s32.totalorder %s3922_s15, 1  ;;  %s3922_s15 = sphi %s3952_s15, %s15_s15  }
   0x2   : > { %p167_p1 = scmp.lt.s32.totalorder %s3922_s15, 3 }
   0x4   : > { %p168_p2 = pnand %p3461_p0, %p167_p1 }
   0x5   : > { %v3884_v0 = vld [vmem:[%s4458_s1] sm:$0xff] (!%p168_p2)   ;;  %v233_v1 = vlaneseq (!%p168_p2)  ;;  %v3924_v2 = vmov (!%p168_p2), 0.0   ;;  %v3885_v3 = vld [vmem:[%s4458_s1 + $0x8] sm:$0xff] (!%p168_p2)   ;;  %v3886_v4 = vld [vmem:[%s4458_s1 + $0x10] sm:$0xff] (!%p168_p2)   ;;  %vm3925_vm0 = vmmov (!%p168_p2), 0   ;;  %p199_p3 = scmp.lt.s32.totalorder (!%p168_p2), %s3457_s16, 1 }
   0x6   : > { %171 = sbr.rel (%p168_p2) target bundleno = 444 (0x1bc), region = 28  ;;  %3744 = vmatprep.subr.bf16.mxu0 (!%p168_p2), %v3924_v2  ;;  %3752 = vmatprep.subr.bf16.mxu1 (!%p168_p2), %v3924_v2  ;;  %v3926_v6 = vmov (!%p168_p2), 1966171168   ;;  %v3887_v8 = vld [vmem:[%s4458_s1 + $0x18] sm:$0xff] (!%p168_p2)   ;;  %vm357_vm1 = vcmask (!%p168_p2), 261120   ;;  %vm3313_vm2 = vcmask (!%p168_p2), 1040384  }
   0x7   : > { %3745 = vmatpush3.bf16.msra.mxu0 (!%p168_p2), %v3884_v0  ;;  %3748 = vmatprep.mubr.msk.bf16.mxu0 (!%p168_p2), %vm3925_vm0, %v3924_v2  ;;  %v234_v5 = vshrl.u32 (!%p168_p2), %v233_v1, 7  ;;  %v231_v7 = vunpack.c.l.s4 (!%p168_p2), %v3926_v6  ;;  %vm3347_vm3 = vsmask.f32 (!%p168_p2), 256 }
   0x8   : > { %3746 = vmatprep.subr.bf16.mxu0 (!%p168_p2), %v3924_v2  ;;  %3756 = vmatprep.mubr.msk.bf16.mxu1 (!%p168_p2), %vm3925_vm0, %v3924_v2  ;;  %vm3348_vm4 = vmand (!%p168_p2), %vm3313_vm2, %vm3347_vm3 }
   0x9   : > { %3753 = vmatpush3.bf16.msra.mxu1 (!%p168_p2), %v3886_v4  ;;  %v232_v9 = vunpack.c.0.s8 (!%p168_p2), %v231_v7  ;;  %v3888_v4 = vld [vmem:[%s4458_s1 + $0x20] sm:$0xff] (!%p168_p2)  }
   0xa   : > { %3754 = vmatprep.subr.bf16.mxu1 (!%p168_p2), %v3924_v2 }
   0xb   : > { %3747 = vmatpush3.bf16.msra.mxu0 (!%p168_p2), %v3885_v3  ;;  %v3989_v10 = vsub.s32 (!%p168_p2), %v232_v9, %v234_v5 }
   0xc   : > { %3760 = vmatprep.subr.bf16.mxu0 (!%p168_p2), %v3924_v2 }
   0xd   : > { %s4463_s16 = smov (!%p199_p3, %s3457_s16), 1  ;;  %3755 = vmatpush3.bf16.msra.mxu1 %v3887_v8 }
   0xe   : > { %s3872_s25 = smul.u32 24, %s4463_s16  ;;  %3768 = vmatprep.subr.bf16.mxu1 %v3924_v2  ;;  %s3693_s12 = sshll.u32 %s4463_s16, 3 }
   0xf   : > { %s4438_s17 = scalar_lea.vmem %s4459_s2, %s3693_s12  ;;  %s211_s20 = scalar_lea.vmem %s4460_s3, %s4463_s16 }
  0x10   : > { %s3987_s28 = scalar_lea.vmem %s4457_s0, %s3872_s25  ;;  %s214_s23 = scalar_lea.vmem %s4461_s4, %s4463_s16 }
  0x11   : > { %v3465_v11 = vld.sshfl [vmem:[%s3987_s28] sm:$0x11 pattern:$0x75316420] }
  0x12   : > { %v3466_v12 = vld.sshfl [vmem:[%s3987_s28 + $0x4] sm:$0x11 pattern:$0x75316420]  ;;  %v229_v13 = vcombine.high %v3465_v11, %v3465_v11  ;;  %v236_v14 = vrot.slane %v3465_v11, %v3989_v10 }
  0x13   : > { %v3467_v15 = vld.sshfl [vmem:[%s3987_s28 + $0x8] sm:$0x11 pattern:$0x75316420]  ;;  %v251_v16 = vcombine.high %v3466_v12, %v3466_v12  ;;  %v3997_v17 = vrot.slane %v3466_v12, %v3989_v10 }
  0x14   : > { %v243_v18 = vrot.slane %v229_v13, %v3989_v10  ;;  %v273_v19 = vcombine.high %v3467_v15, %v3467_v15  ;;  %v4001_v20 = vrot.slane %v3467_v15, %v3989_v10  ;;  %v476_v21 = vunpack.i.h.s16 %v236_v14  ;;  %v3485_v22 = vld.sshfl [vmem:[%s3987_s28] sm:$0x12 pattern:$0x75316420] }
  0x15   : > { %v4005_v23 = vrot.slane %v251_v16, %v3989_v10  ;;  %v292_v24 = vunpack.i.h.s16 %v3997_v17  ;;  %v609_v25 = vcombine.high %v3485_v22, %v3485_v22  ;;  %v616_v26 = vrot.slane %v3485_v22, %v3989_v10  ;;  %v3486_v31 = vld.sshfl [vmem:[%s3987_s28 + $0x4] sm:$0x12 pattern:$0x75316420] }
  0x16   : > { %v4010_v27 = vrot.slane %v273_v19, %v3989_v10  ;;  %v3468_v28 = vpack.i.b16 %v3997_v17, %v243_v18  ;;  %v478_v29 = vunpack.i.h.s16 %v243_v18  ;;  %v482_v30 = vunpack.i.h.s16 %v4001_v20  ;;  %v3487_v34 = vld.sshfl [vmem:[%s3987_s28 + $0x8] sm:$0x12 pattern:$0x75316420]  ;;  %v3890_v19 = vld [vmem:[%s4458_s1 + $0x30] sm:$0xff]  }
  0x17   : > { %v4016_v32 = vpack.i.b16 %v4005_v23, %v292_v24  ;;  %v3480_v33 = vpack.i.b16 %v243_v18, %v476_v21  ;;  %v623_v35 = vrot.slane %v609_v25, %v3989_v10  ;;  %v624_v36 = vcombine.high %v616_v26, %v616_v26  ;;  %v3514_v7 = vld.sshfl [vmem:[%s3987_s28 + $0xc] sm:$0x11 pattern:$0x75316420] }
  0x18   : > { %v296_v37 = vunpack.i.l.s16 %v4010_v27  ;;  %v306_v38 = vcombine.low %v236_v14, %v3468_v28  ;;  %v484_v39 = vunpack.i.h.s16 %v4010_v27  ;;  %v491_v40 = vpack.i.b16 %v292_v24, %v478_v29 }
  0x19   : > { %v307_v41 = vcombine.low %v4016_v32, %v4001_v20  ;;  %v4027_v42 = vpack.i.b16 %v4010_v27, %v482_v30  ;;  %v632_v43 = vcombine.high %v3486_v31, %v3486_v31  ;;  %v639_v44 = vrot.slane %v3486_v31, %v3989_v10  ;;  %v3889_v31 = vld [vmem:[%s4458_s1 + $0x28] sm:$0xff]  }
  0x1a   : > { %v314_v45 = vrot.slane %v306_v38, %v3989_v10  ;;  %v328_v46 = vrot.slane %v296_v37, %v3989_v10  ;;  %v495_v47 = vcombine.low %v3480_v33, %v491_v40  ;;  %v517_v48 = vrot.slane %v484_v39, %v3989_v10 }
  0x1b   : > { %v321_v49 = vrot.slane %v307_v41, %v3989_v10  ;;  %v496_v50 = vcombine.low %v4005_v23, %v4027_v42  ;;  %v4039_v51 = vrot.slane %v632_v43, %v3989_v10  ;;  %v4041_v52 = vcombine.high %v639_v44, %v639_v44  ;;  %v3891_v41 = vld [vmem:[%s4458_s1 + $0x38] sm:$0xff]  }
  0x1c   : > { %v343_v53 = vrot.slane %v328_v46, %v3989_v10  ;;  %v503_v54 = vrot.slane %v495_v47, %v3989_v10  ;;  %v532_v55 = vrot.slane %v517_v48, %v3989_v10  ;;  %v655_v56 = vcombine.high %v3487_v34, %v3487_v34 }
  0x1d   : > { %v329_v57 = vcombine.low %v314_v45, %v321_v49  ;;  %v510_v58 = vrot.slane %v496_v50, %v3989_v10  ;;  %v662_v59 = vrot.slane %v3487_v34, %v3989_v10  ;;  %v675_v60 = vunpack.i.h.s16 %v4039_v51  ;;  %v3892_v50 = vld [vmem:[%s4458_s1 + $0x40] sm:$0xff]  }
  0x1e   : > { %v4050_v61 = vrot.slane %v655_v56, %v3989_v10  ;;  %v3492_v62 = vpack.i.b16 %v4039_v51, %v624_v36  ;;  %v866_v63 = vunpack.i.h.s16 %v623_v35  ;;  %v868_v0 = vunpack.i.h.s16 %v624_v36  ;;  %v3544_v56 = vld.sshfl [vmem:[%s3987_s28 + $0xc] sm:$0x12 pattern:$0x75316420] }
  0x1f   : > { %v336_v1 = vrot.slane %v329_v57, %v3989_v10  ;;  %v518_v3 = vcombine.low %v503_v54, %v510_v58  ;;  %v4057_v5 = vcombine.high %v662_v59, %v662_v59  ;;  %v4060_v6 = vpack.i.b16 %v4041_v52, %v675_v60 }
  0x20   : > { %v690_v8 = vcombine.low %v623_v35, %v3492_v62  ;;  %v872_v9 = vunpack.i.h.s16 %v4050_v61  ;;  %v3504_v11 = vpack.i.b16 %v624_v36, %v866_v63  ;;  %v881_v12 = vpack.i.b16 %v675_v60, %v868_v0 }
  0x21   : > { %v344_v13 = vcombine.low %v336_v1, %v343_v53  ;;  %v525_v14 = vrot.slane %v518_v3, %v3989_v10  ;;  %v679_v15 = vunpack.i.l.s16 %v4057_v5  ;;  %v691_v16 = vcombine.low %v4060_v6, %v4050_v61  ;;  %v3894_v1 = vld [vmem:[%s4458_s1 + $0x50] sm:$0xff]  }
  0x22   : > { %v698_v18 = vrot.slane %v690_v8, %v3989_v10  ;;  %v874_v21 = vunpack.i.h.s16 %v4057_v5  ;;  %v4076_v22 = vpack.i.b16 %v4057_v5, %v872_v9  ;;  %v885_v24 = vcombine.low %v3504_v11, %v881_v12 }
  0x23   : > { %3749 = vmatmul.mubr.msk.bf16.vlgmr.msra.gmra.mrb[0].mxu0 %vm357_vm1, %v344_v13  ;;  %v533_v25 = vcombine.low %v525_v14, %v532_v55  ;;  %v705_v26 = vrot.slane %v691_v16, %v3989_v10  ;;  %v712_v28 = vrot.slane %v679_v15, %v3989_v10  ;;  %v1044_v29 = vcombine.high %v3514_v7, %v3514_v7 }
  0x24   : > { %3761 = vmatpush3.bf16.msra.mxu0 %v3888_v4  ;;  %3764 = vmatprep.mubr.msk.bf16.mxu0 %vm3925_vm0, %v3924_v2  ;;  %v886_v33 = vcombine.low %v4041_v52, %v4076_v22  ;;  %v893_v34 = vrot.slane %v885_v24, %v3989_v10  ;;  %v907_v35 = vrot.slane %v874_v21, %v3989_v10  ;;  %v1253_v40 = vunpack.i.h.s16 %v4005_v23  ;;  %v3893_v4 = vld [vmem:[%s4458_s1 + $0x48] sm:$0xff]   ;;  %v3895_v24 = vld [vmem:[%s4458_s1 + $0x58] sm:$0xff]  }
  0x25   : > { %3757 = vmatmul.mubr.msk.bf16.vlgmr.msra.gmra.mrb[0].mxu1 %vm357_vm1, %v533_v25  ;;  %3762 = vmatprep.subr.bf16.mxu0 %v3924_v2  ;;  %v713_v36 = vcombine.low %v698_v18, %v705_v26  ;;  %v727_v37 = vrot.slane %v712_v28, %v3989_v10  ;;  %v4096_v38 = vrot.slane %v3514_v7, %v3989_v10  ;;  %v1643_v11 = vunpack.i.h.s16 %v4041_v52 }
  0x26   : > { %3769 = vmatpush3.bf16.msra.mxu1 %v3890_v19  ;;  %3772 = vmatprep.mubr.msk.bf16.mxu1 %vm3925_vm0, %v3924_v2  ;;  %v900_v43 = vrot.slane %v886_v33, %v3989_v10  ;;  %v922_v44 = vrot.slane %v907_v35, %v3989_v10  ;;  %v4107_v45 = vrot.slane %v1044_v29, %v3989_v10 }
  0x27   : > { %v720_v46 = vrot.slane %v713_v36, %v3989_v10  ;;  %3770 = vmatprep.subr.bf16.mxu1 %v3924_v2  ;;  %v3519_v47 = vpack.i.b16 %v4001_v20, %v4005_v23  ;;  %v1257_v48 = vunpack.i.h.s16 %v4096_v38  ;;  %v1266_v55 = vpack.i.b16 %v482_v30, %v1253_v40 }
  0x28   : > { %3763 = vmatpush3.bf16.msra.mxu0 %v3889_v31  ;;  %v908_v49 = vcombine.low %v893_v34, %v900_v43  ;;  %v1067_v53 = vunpack.i.l.s16 %v4107_v45  ;;  %v1259_v54 = vunpack.i.h.s16 %v4107_v45  ;;  %v1079_v58 = vcombine.low %v4027_v42, %v4096_v38  ;;  %v3574_v43 = vld.sshfl [vmem:[%s3987_s28 + $0x10] sm:$0x11 pattern:$0x75316420] }
  0x29   : > { %v728_v57 = vcombine.low %v720_v46, %v727_v37  ;;  %3776 = vmatprep.subr.bf16.mxu0 %v3924_v2  ;;  %v1078_v23 = vcombine.low %v3997_v17, %v3519_v47  ;;  %v4129_v59 = vpack.i.b16 %v4107_v45, %v1257_v48  ;;  %v1270_v30 = vcombine.low %v4016_v32, %v1266_v55  ;;  %v3898_v46 = vld [vmem:[%s4458_s1 + $0x70] sm:$0xff]  }
  0x2a   : > { %3771 = vmatpush3.bf16.msra.mxu1 %v3891_v41  ;;  %v915_v60 = vrot.slane %v908_v49, %v3989_v10  ;;  %v1100_v62 = vrot.slane %v1067_v53, %v3989_v10  ;;  %v1292_v63 = vrot.slane %v1259_v54, %v3989_v10  ;;  %v1093_v0 = vrot.slane %v1079_v58, %v3989_v10 }
  0x2b   : > { %3765 = vmatmul.mubr.msk.bf16.vlgmr.msra.gmra.mrb[4].mxu0 %vm357_vm1, %v728_v57  ;;  %v1086_v17 = vrot.slane %v1078_v23, %v3989_v10  ;;  %3784 = vmatprep.subr.bf16.mxu1 %v3924_v2  ;;  %v1271_v3 = vcombine.low %v4010_v27, %v4129_v59  ;;  %v1278_v8 = vrot.slane %v1270_v30, %v3989_v10 }
  0x2c   : > { %v923_v32 = vcombine.low %v915_v60, %v922_v44  ;;  %3777 = vmatpush3.bf16.msra.mxu0 %v3892_v50  ;;  %3780 = vmatprep.mubr.msk.bf16.mxu0 %vm3925_vm0, %v3924_v2  ;;  %v1115_v7 = vrot.slane %v1100_v62, %v3989_v10  ;;  %v1307_v14 = vrot.slane %v1292_v63, %v3989_v10  ;;  %v3899_v63 = vld [vmem:[%s4458_s1 + $0x78] sm:$0xff]  }
  0x2d   : > { %3778 = vmatprep.subr.bf16.mxu0 %v3924_v2  ;;  %v1101_v12 = vcombine.low %v1086_v17, %v1093_v0  ;;  %v1285_v13 = vrot.slane %v1271_v3, %v3989_v10  ;;  %v1430_v15 = vcombine.high %v3544_v56, %v3544_v56  ;;  %v1437_v16 = vrot.slane %v3544_v56, %v3989_v10 }
  0x2e   : > { %3773 = vmatmul.mubr.msk.bf16.vlgmr.msra.gmra.mrb[4].mxu1 %vm357_vm1, %v923_v32  ;;  %v3549_v18 = vpack.i.b16 %v4050_v61, %v4041_v52  ;;  %v3896_v52 = vld [vmem:[%s4458_s1 + $0x60] sm:$0xff]   ;;  %v1656_v31 = vpack.i.b16 %v872_v9, %v1643_v11  ;;  %v1819_v57 = vcombine.high %v3574_v43, %v3574_v43  ;;  %v4217_v60 = vrot.slane %v3574_v43, %v3989_v10  ;;  %v3903_v43 = vld [vmem:[%s4458_s1 + $0x98] sm:$0xff]  }
  0x2f   : > { %v1108_v19 = vrot.slane %v1101_v12, %v3989_v10  ;;  %3785 = vmatpush3.bf16.msra.mxu1 %v3894_v1  ;;  %3788 = vmatprep.mubr.msk.bf16.mxu1 %vm3925_vm0, %v3924_v2  ;;  %v1293_v25 = vcombine.low %v1278_v8, %v1285_v13  ;;  %v4168_v26 = vrot.slane %v1430_v15, %v3989_v10  ;;  %v3900_v1 = vld [vmem:[%s4458_s1 + $0x80] sm:$0xff]  }
  0x30   : > { %3779 = vmatpush3.bf16.msra.mxu0 %v3893_v4  ;;  %3786 = vmatprep.subr.bf16.mxu1 %v3924_v2  ;;  %v4174_v28 = vcombine.high %v1437_v16, %v1437_v16  ;;  %v1465_v29 = vcombine.low %v4039_v51, %v3549_v18  ;;  %v1660_v51 = vcombine.low %v4060_v6, %v1656_v31  ;;  %v3897_v6 = vld [vmem:[%s4458_s1 + $0x68] sm:$0xff]   ;;  %v2032_v32 = vunpack.i.h.s16 %v4217_v60 }
  0x31   : > { %v1116_v33 = vcombine.low %v1108_v19, %v1115_v7  ;;  %v1300_v34 = vrot.slane %v1293_v25, %v3989_v10  ;;  %3792 = vmatprep.subr.bf16.mxu0 %v3924_v2  ;;  %v1466_v35 = vcombine.low %v4076_v22, %v4168_v26  ;;  %v1647_v36 = vunpack.i.h.s16 %v4168_v26  ;;  %v3604_v19 = vld.sshfl [vmem:[%s3987_s28 + $0x10] sm:$0x12 pattern:$0x75316420] }
  0x32   : > { %v1454_v37 = vunpack.i.l.s16 %v4174_v28  ;;  %v1473_v40 = vrot.slane %v1465_v29, %v3989_v10  ;;  %v1649_v41 = vunpack.i.h.s16 %v4174_v28  ;;  %v1668_v50 = vrot.slane %v1660_v51, %v3989_v10 }
  0x33   : > { %3781 = vmatmul.mubr.msk.bf16.vlgmr.msra.gmra.mrb[8].mxu0 %vm357_vm1, %v1116_v33  ;;  %3787 = vmatpush3.bf16.msra.mxu1 %v3895_v24  ;;  %v1308_v9 = vcombine.low %v1300_v34, %v1307_v14  ;;  %v1480_v44 = vrot.slane %v1466_v35, %v3989_v10  ;;  %v4197_v47 = vpack.i.b16 %v4174_v28, %v1647_v36 }
  0x34   : > { %3793 = vmatpush3.bf16.msra.mxu0 %v3896_v52  ;;  %3796 = vmatprep.mubr.msk.bf16.mxu0 %vm3925_vm0, %v3924_v2  ;;  %v1487_v49 = vrot.slane %v1454_v37, %v3989_v10  ;;  %v1682_v53 = vrot.slane %v1649_v41, %v3989_v10  ;;  %v3579_v62 = vpack.i.b16 %v4096_v38, %v4010_v27  ;;  %v3901_v27 = vld [vmem:[%s4458_s1 + $0x88] sm:$0xff]  }
  0x35   : > { %3794 = vmatprep.subr.bf16.mxu0 %v3924_v2  ;;  %v1488_v55 = vcombine.low %v1473_v40, %v1480_v44  ;;  %3800 = vmatprep.subr.bf16.mxu1 %v3924_v2  ;;  %v1661_v56 = vcombine.low %v4057_v5, %v4197_v47  ;;  %v4229_v0 = vrot.slane %v1819_v57, %v3989_v10 }
  0x36   : > { %3789 = vmatmul.mubr.msk.bf16.vlgmr.msra.gmra.mrb[8].mxu1 %vm357_vm1, %v1308_v9  ;;  %v1502_v23 = vrot.slane %v1487_v49, %v3989_v10  ;;  %v1697_v58 = vrot.slane %v1682_v53, %v3989_v10  ;;  %v1853_v3 = vcombine.low %v4001_v20, %v3579_v62  ;;  %v1854_v12 = vcombine.low %v4129_v59, %v4217_v60  ;;  %v3634_v62 = vld.sshfl [vmem:[%s3987_s28 + $0x14] sm:$0x11 pattern:$0x75316420] }
  0x37   : > { %v1495_v30 = vrot.slane %v1488_v55, %v3989_v10  ;;  %3801 = vmatpush3.bf16.msra.mxu1 %v3898_v46  ;;  %3804 = vmatprep.mubr.msk.bf16.mxu1 %vm3925_vm0, %v3924_v2  ;;  %v1675_v17 = vrot.slane %v1661_v56, %v3989_v10  ;;  %v1842_v8 = vunpack.i.l.s16 %v4229_v0  ;;  %v2034_v11 = vunpack.i.h.s16 %v4229_v0  ;;  %v3904_v46 = vld [vmem:[%s4458_s1 + $0xa0] sm:$0xff]  }
  0x38   : > { %3795 = vmatpush3.bf16.msra.mxu0 %v3897_v6  ;;  %3802 = vmatprep.subr.bf16.mxu1 %v3924_v2  ;;  %v1861_v13 = vrot.slane %v1853_v3, %v3989_v10  ;;  %v2041_v20 = vpack.i.b16 %v1257_v48, %v484_v39  ;;  %v4250_v14 = vpack.i.b16 %v4229_v0, %v2032_v32  ;;  %v3902_v48 = vld [vmem:[%s4458_s1 + $0x90] sm:$0xff]  }
  0x39   : > { %v1503_v4 = vcombine.low %v1495_v30, %v1502_v23  ;;  %v1683_v7 = vcombine.low %v1668_v50, %v1675_v17  ;;  %3808 = vmatprep.subr.bf16.mxu0 %v3924_v2  ;;  %v1875_v16 = vrot.slane %v1842_v8, %v3989_v10  ;;  %v2067_v18 = vrot.slane %v2034_v11, %v3989_v10  ;;  %v3906_v30 = vld [vmem:[%s4458_s1 + $0xb0] sm:$0xff]  }
  0x3a   : > { %v1868_v39 = vrot.slane %v1854_v12, %v3989_v10  ;;  %v2045_v24 = vcombine.low %v4027_v42, %v2041_v20  ;;  %v2046_v25 = vcombine.low %v4107_v45, %v4250_v14  ;;  %v2205_v37 = vcombine.high %v3604_v19, %v3604_v19 }
  0x3b   : > { %3797 = vmatmul.mubr.msk.bf16.vlgmr.msra.gmra.mrb[12].mxu0 %vm357_vm1, %v1503_v4  ;;  %3803 = vmatpush3.bf16.msra.mxu1 %v3899_v63  ;;  %v1690_v15 = vrot.slane %v1683_v7, %v3989_v10  ;;  %v1890_v29 = vrot.slane %v1875_v16, %v3989_v10  ;;  %v2082_v31 = vrot.slane %v2067_v18, %v3989_v10  ;;  %v3907_v16 = vld [vmem:[%s4458_s1 + $0xb8] sm:$0xff]  }
  0x3c   : > { %3809 = vmatpush3.bf16.msra.mxu0 %v3900_v1  ;;  %3812 = vmatprep.mubr.msk.bf16.mxu0 %vm3925_vm0, %v3924_v2  ;;  %v1876_v33 = vcombine.low %v1861_v13, %v1868_v39  ;;  %v2053_v34 = vrot.slane %v2045_v24, %v3989_v10  ;;  %v2060_v35 = vrot.slane %v2046_v25, %v3989_v10 }
  0x3d   : > { %v1698_v52 = vcombine.low %v1690_v15, %v1697_v58  ;;  %3810 = vmatprep.subr.bf16.mxu0 %v3924_v2  ;;  %3816 = vmatprep.subr.bf16.mxu1 %v3924_v2  ;;  %v2212_v42 = vrot.slane %v3604_v19, %v3989_v10  ;;  %v3609_v40 = vpack.i.b16 %v4168_v26, %v4057_v5 }
  0x3e   : > { %v1883_v51 = vrot.slane %v1876_v33, %v3989_v10  ;;  %v2068_v9 = vcombine.low %v2053_v34, %v2060_v35  ;;  %v4284_v44 = vrot.slane %v2205_v37, %v3989_v10  ;;  %v2431_v50 = vpack.i.b16 %v1647_v36, %v874_v21 }
  0x3f   : > { %3805 = vmatmul.mubr.msk.bf16.vlgmr.msra.gmra.mrb[12].mxu1 %vm357_vm1, %v1698_v52  ;;  %v4292_v6 = vcombine.high %v2212_v42, %v2212_v42  ;;  %v2240_v49 = vcombine.low %v4050_v61, %v3609_v40  ;;  %v2594_v8 = vcombine.high %v3634_v62, %v3634_v62  ;;  %v2601_v13 = vrot.slane %v3634_v62, %v3989_v10  ;;  %v3664_v40 = vld.sshfl [vmem:[%s3987_s28 + $0x14] sm:$0x12 pattern:$0x75316420] }
  0x40   : > { %3811 = vmatpush3.bf16.msra.mxu0 %v3901_v27  ;;  %3817 = vmatpush3.bf16.msra.mxu1 %v3902_v48  ;;  %v1891_v53 = vcombine.low %v1883_v51, %v1890_v29  ;;  %v2075_v55 = vrot.slane %v2068_v9, %v3989_v10  ;;  %v2241_v56 = vcombine.low %v4197_v47, %v4284_v44  ;;  %v2422_v57 = vunpack.i.h.s16 %v4284_v44  ;;  %v3908_v27 = vld [vmem:[%s4458_s1 + $0xc0] sm:$0xff]  }
  0x41   : > { %3818 = vmatprep.subr.bf16.mxu1 %v3924_v2  ;;  %3820 = vmatprep.mubr.msk.bf16.mxu1 %vm3925_vm0, %v3924_v2  ;;  %v2229_v23 = vunpack.i.l.s16 %v4292_v6  ;;  %v2248_v58 = vrot.slane %v2240_v49, %v3989_v10  ;;  %v2424_v61 = vunpack.i.h.s16 %v4292_v6  ;;  %v2435_v5 = vcombine.low %v4076_v22, %v2431_v50  ;;  %v3905_v22 = vld [vmem:[%s4458_s1 + $0xa8] sm:$0xff]  }
  0x42   : > { %3824 = vmatprep.subr.bf16.mxu0 %v3924_v2  ;;  %v2083_v21 = vcombine.low %v2075_v55, %v2082_v31  ;;  %v2255_v36 = vrot.slane %v2241_v56, %v3989_v10  ;;  %v4317_v63 = vpack.i.b16 %v4292_v6, %v2422_v57  ;;  %v3639_v20 = vpack.i.b16 %v4217_v60, %v4107_v45  ;;  %v3911_v56 = vld [vmem:[%s4458_s1 + $0xd8] sm:$0xff]  }
  0x43   : > { %3813 = vmatmul.mubr.msk.bf16.vlgmr.msra.gmra.mrb[16].mxu0 %vm357_vm1, %v1891_v53  ;;  %v2262_v17 = vrot.slane %v2229_v23, %v3989_v10  ;;  %v2443_v1 = vrot.slane %v2435_v5, %v3989_v10  ;;  %v2457_v3 = vrot.slane %v2424_v61, %v3989_v10  ;;  %v2608_v19 = vrot.slane %v2594_v8, %v3989_v10  ;;  %v3912_v61 = vld [vmem:[%s4458_s1 + $0xe0] sm:$0xff]  }
  0x44   : > { %3819 = vmatpush3.bf16.msra.mxu1 %v3903_v43  ;;  %3825 = vmatpush3.bf16.msra.mxu0 %v3904_v46  ;;  %v2263_v4 = vcombine.low %v2248_v58, %v2255_v36  ;;  %v2436_v7 = vcombine.low %v4174_v28, %v4317_v63  ;;  %v2628_v39 = vcombine.low %v4096_v38, %v3639_v20  ;;  %v2807_v48 = vunpack.i.h.s16 %v2601_v13 }
  0x45   : > { %3828 = vmatprep.mubr.msk.bf16.mxu0 %vm3925_vm0, %v3924_v2  ;;  %3826 = vmatprep.subr.bf16.mxu0 %v3924_v2  ;;  %v2277_v11 = vrot.slane %v2262_v17, %v3989_v10  ;;  %v2472_v12 = vrot.slane %v2457_v3, %v3989_v10  ;;  %v2617_v52 = vunpack.i.l.s16 %v2608_v19  ;;  %v2809_v29 = vunpack.i.h.s16 %v2608_v19 }
  0x46   : > { %3832 = vmatprep.subr.bf16.mxu1 %v3924_v2  ;;  %v2270_v15 = vrot.slane %v2263_v4, %v3989_v10  ;;  %v2450_v18 = vrot.slane %v2436_v7, %v3989_v10  ;;  %v2629_v31 = vcombine.low %v4250_v14, %v2601_v13  ;;  %v2636_v33 = vrot.slane %v2628_v39, %v3989_v10  ;;  %v3909_v14 = vld [vmem:[%s4458_s1 + $0xc8] sm:$0xff]  }
  0x47   : > { %3821 = vmatmul.mubr.msk.bf16.vlgmr.msra.gmra.mrb[16].mxu1 %vm357_vm1, %v2083_v21  ;;  %v2816_v34 = vpack.i.b16 %v2032_v32, %v1259_v54  ;;  %v3655_v35 = vpack.i.b16 %v2608_v19, %v2807_v48  ;;  %v2650_v37 = vrot.slane %v2617_v52, %v3989_v10  ;;  %v2842_v42 = vrot.slane %v2809_v29, %v3989_v10  ;;  %v3910_v54 = vld [vmem:[%s4458_s1 + $0xd0] sm:$0xff]  }
  0x48   : > { %3833 = vmatpush3.bf16.msra.mxu1 %v3906_v30  ;;  %3836 = vmatprep.mubr.msk.bf16.mxu1 %vm3925_vm0, %v3924_v2  ;;  %v2278_v24 = vcombine.low %v2270_v15, %v2277_v11  ;;  %v2458_v25 = vcombine.low %v2443_v1, %v2450_v18  ;;  %v2643_v45 = vrot.slane %v2629_v31, %v3989_v10  ;;  %v3915_v15 = vld [vmem:[%s4458_s1 + $0xf8] sm:$0xff]  }
  0x49   : > { %3827 = vmatpush3.bf16.msra.mxu0 %v3905_v22  ;;  %3834 = vmatprep.subr.bf16.mxu1 %v3924_v2  ;;  %v2820_v60 = vcombine.low %v4129_v59, %v2816_v34  ;;  %v2821_v32 = vcombine.low %v4229_v0, %v3655_v35  ;;  %v2665_v43 = vrot.slane %v2650_v37, %v3989_v10 }
  0x4a   : > { %3840 = vmatprep.subr.bf16.mxu0 %v3924_v2  ;;  %v2465_v38 = vrot.slane %v2458_v25, %v3989_v10  ;;  %v2857_v9 = vrot.slane %v2842_v42, %v3989_v10  ;;  %v2651_v46 = vcombine.low %v2636_v33, %v2643_v45  ;;  %v2980_v53 = vcombine.high %v3664_v40, %v3664_v40 }
  0x4b   : > { %v2828_v49 = vrot.slane %v2820_v60, %v3989_v10  ;;  %v2835_v50 = vrot.slane %v2821_v32, %v3989_v10  ;;  %v2987_v59 = vrot.slane %v3664_v40, %v3989_v10  ;;  %v3669_v0 = vpack.i.b16 %v4284_v44, %v4174_v28 }
  0x4c   : > { %3829 = vmatmul.mubr.msk.bf16.vlgmr.msra.gmra.mrb[20].mxu0 %vm357_vm1, %v2278_v24  ;;  %3835 = vmatpush3.bf16.msra.mxu1 %v3907_v16  ;;  %v2473_v51 = vcombine.low %v2465_v38, %v2472_v12  ;;  %v2658_v55 = vrot.slane %v2651_v46, %v3989_v10  ;;  %v2994_v58 = vrot.slane %v2980_v53, %v3989_v10 }
  0x4d   : > { %3841 = vmatpush3.bf16.msra.mxu0 %v3908_v27  ;;  %3844 = vmatprep.mubr.msk.bf16.mxu0 %vm3925_vm0, %v3924_v2  ;;  %v2843_v23 = vcombine.low %v2828_v49, %v2835_v50  ;;  %v2995_v5 = vcombine.high %v2987_v59, %v2987_v59  ;;  %v3015_v62 = vcombine.low %v4168_v26, %v3669_v0 }
  0x4e   : > { %3842 = vmatprep.subr.bf16.mxu0 %v3924_v2  ;;  %3848 = vmatprep.subr.bf16.mxu1 %v3924_v2  ;;  %v3206_v21 = vpack.i.b16 %v2422_v57, %v1649_v41  ;;  %v2666_v36 = vcombine.low %v2658_v55, %v2665_v43  ;;  %v3016_v22 = vcombine.low %v4317_v63, %v2994_v58  ;;  %v3197_v17 = vunpack.i.h.s16 %v2994_v58  ;;  %v3914_v41 = vld [vmem:[%s4458_s1 + $0xf0] sm:$0xff]   ;;  %v3913_v57 = vld [vmem:[%s4458_s1 + $0xe8] sm:$0xff]  }
  0x4f   : > { %3837 = vmatmul.mubr.msk.bf16.vlgmr.msra.gmra.mrb[20].mxu1 %vm357_vm1, %v2473_v51  ;;  %v2850_v30 = vrot.slane %v2843_v23, %v3989_v10  ;;  %v3004_v1 = vunpack.i.l.s16 %v2995_v5  ;;  %v3023_v3 = vrot.slane %v3015_v62, %v3989_v10  ;;  %v3199_v4 = vunpack.i.h.s16 %v2995_v5 }
  0x50   : > { %3849 = vmatpush3.bf16.msra.mxu1 %v3910_v54  ;;  %3852 = vmatprep.mubr.msk.bf16.mxu1 %vm3925_vm0, %v3924_v2  ;;  %v3210_v7 = vcombine.low %v4197_v47, %v3206_v21  ;;  %v3030_v28 = vrot.slane %v3016_v22, %v3989_v10  ;;  %v3685_v44 = vpack.i.b16 %v2995_v5, %v3197_v17 }
  0x51   : > { %3843 = vmatpush3.bf16.msra.mxu0 %v3909_v14  ;;  %3850 = vmatprep.subr.bf16.mxu1 %v3924_v2  ;;  %v2858_v26 = vcombine.low %v2850_v30, %v2857_v9  ;;  %v3037_v47 = vrot.slane %v3004_v1, %v3989_v10  ;;  %v3232_v12 = vrot.slane %v3199_v4, %v3989_v10 }
  0x52   : > { %3856 = vmatprep.subr.bf16.mxu0 %v3924_v2  ;;  %v3218_v63 = vrot.slane %v3210_v7, %v3989_v10  ;;  %v3038_v8 = vcombine.low %v3023_v3, %v3030_v28  ;;  %v3211_v11 = vcombine.low %v4292_v6, %v3685_v44 }
  0x53   : > { %v3052_v13 = vrot.slane %v3037_v47, %v3989_v10  ;;  %v3247_v19 = vrot.slane %v3232_v12, %v3989_v10 }
  0x54   : > { %3845 = vmatmul.mubr.msk.bf16.vlgmr.msra.gmra.mrb[24].mxu0 %vm357_vm1, %v2666_v36  ;;  %3851 = vmatpush3.bf16.msra.mxu1 %v3911_v56  ;;  %v3045_v20 = vrot.slane %v3038_v8, %v3989_v10  ;;  %v3225_v16 = vrot.slane %v3211_v11, %v3989_v10 }
  0x55   : > { %3857 = vmatpush3.bf16.msra.mxu0 %v3912_v61  ;;  %3860 = vmatprep.mubr.msk.bf16.mxu0 %vm3925_vm0, %v3924_v2 }
  0x56   : > { %3858 = vmatprep.subr.bf16.mxu0 %v3924_v2  ;;  %3864 = vmatprep.subr.bf16.mxu1 %v3924_v2  ;;  %v3053_v6 = vcombine.low %v3045_v20, %v3052_v13  ;;  %v3233_v18 = vcombine.low %v3218_v63, %v3225_v16 }
  0x57   : > { %3853 = vmatmul.mubr.msk.bf16.vlgmr.msra.gmra.mrb[24].mxu1 %vm357_vm1, %v2858_v26 }
  0x58   : > { %3865 = vmatpush3.bf16.msra.mxu1 %v3914_v41  ;;  %3868 = vmatprep.mubr.msk.bf16.mxu1 %vm3925_vm0, %v3924_v2  ;;  %v3240_v27 = vrot.slane %v3233_v18, %v3989_v10 }
  0x59   : > { %3859 = vmatpush3.bf16.msra.mxu0 %v3913_v57  ;;  %3866 = vmatprep.subr.bf16.mxu1 %v3924_v2 }
  0x5a   : > { %v3248_v39 = vcombine.low %v3240_v27, %v3247_v19 }
  0x5c   : > { %3861 = vmatmul.mubr.msk.bf16.vlgmr.msra.gmra.mrb[28].mxu0 %vm357_vm1, %v3053_v6  ;;  %3867 = vmatpush3.bf16.msra.mxu1 %v3915_v15 }
  0x5f   : > { %3869 = vmatmul.mubr.msk.bf16.vlgmr.msra.gmra.mrb[28].mxu1 %vm357_vm1, %v3248_v39 }
  0xf6   : > { %v395_v48 = vpop.f32.mrb[0].mxu0 }
  0xf7   : > { %v3750_v24 = vpop.f32.mrb[1].mxu0 }
  0xf8   : > { %v398_v25 = vpop.f32.mrb[2].mxu0  ;;  %v583_v52 = vpop.f32.mrb[0].mxu1 }
  0xf9   : > { %403 = vst [vmem:[#allocation2 + $0x8] sm:$0x1] %v398_v25  ;;  %v3751_v29 = vpop.f32.mrb[3].mxu0  ;;  %v592_v31 = vadd.f32 %v583_v52, %v395_v48  ;;  %v3758_v2 = vpop.f32.mrb[1].mxu1 }
  0xfa   : > { %v586_v33 = vpop.f32.mrb[2].mxu1 }
  0xfb   : > { %v3759_v34 = vpop.f32.mrb[3].mxu1 }
  0xfe   : > { %v778_v35 = vpop.f32.mrb[4].mxu0 }
  0xff   : > { %v787_v38 = vadd.f32 %v778_v35, %v592_v31  ;;  %v3766_v37 = vpop.f32.mrb[5].mxu0 }
 0x100   : > { %v591_v42 = vld [vmem:[#allocation2 + $0x8] sm:$0x1]  ;;  %v781_v40 = vpop.f32.mrb[6].mxu0 }
 0x101   : > { %v593_v14 = vadd.f32 %v591_v42, %v586_v33  ;;  %v3767_v10 = vpop.f32.mrb[7].mxu0  ;;  %v973_v45 = vpop.f32.mrb[4].mxu1 }
 0x102   : > { %v982_v54 = vadd.f32 %v973_v45, %v787_v38  ;;  %v3774_v60 = vpop.f32.mrb[5].mxu1 }
 0x103   : > { %595 = vst [vmem:[#allocation2 + $0x8] sm:$0x1] %v593_v14  ;;  %v976_v32 = vpop.f32.mrb[6].mxu1 }
 0x104   : > { %v3775_v51 = vpop.f32.mrb[7].mxu1 }
 0x106   : > { %v1166_v43 = vpop.f32.mrb[8].mxu0 }
 0x107   : > { %v1175_v9 = vadd.f32 %v1166_v43, %v982_v54  ;;  %v3782_v46 = vpop.f32.mrb[9].mxu0 }
 0x108   : > { %v1169_v49 = vpop.f32.mrb[10].mxu0 }
 0x109   : > { %v3783_v50 = vpop.f32.mrb[11].mxu0  ;;  %v1358_v53 = vpop.f32.mrb[8].mxu1 }
 0x10a   : > { %v786_v59 = vld [vmem:[#allocation2 + $0x8] sm:$0x1]  ;;  %v1367_v0 = vadd.f32 %v1358_v53, %v1175_v9  ;;  %v3790_v55 = vpop.f32.mrb[9].mxu1 }
 0x10b   : > { %v788_v56 = vadd.f32 %v786_v59, %v781_v40  ;;  %v1361_v23 = vpop.f32.mrb[10].mxu1 }
 0x10c   : > { %v3791_v58 = vpop.f32.mrb[11].mxu1 }
 0x10d   : > { %790 = vst [vmem:[#allocation2 + $0x8] sm:$0x1] %v788_v56 }
 0x10e   : > { %v1553_v61 = vpop.f32.mrb[12].mxu0 }
 0x10f   : > { %v1562_v5 = vadd.f32 %v1553_v61, %v1367_v0  ;;  %v3798_v62 = vpop.f32.mrb[13].mxu0 }
 0x110   : > { %v1556_v21 = vpop.f32.mrb[14].mxu0 }
 0x111   : > { %v3799_v36 = vpop.f32.mrb[15].mxu0 }
 0x112   : > { %v1748_v30 = vpop.f32.mrb[12].mxu1 }
 0x113   : > { %v1757_v22 = vadd.f32 %v1748_v30, %v1562_v5  ;;  %v3806_v17 = vpop.f32.mrb[13].mxu1 }
 0x114   : > { %v981_v1 = vld [vmem:[#allocation2 + $0x8] sm:$0x1]  ;;  %v1751_v3 = vpop.f32.mrb[14].mxu1 }
 0x115   : > { %v983_v4 = vadd.f32 %v981_v1, %v976_v32  ;;  %v3807_v7 = vpop.f32.mrb[15].mxu1 }
 0x116   : > { %v1941_v26 = vpop.f32.mrb[16].mxu0 }
 0x117   : > { %985 = vst [vmem:[#allocation2 + $0x8] sm:$0x1] %v983_v4  ;;  %v1950_v28 = vadd.f32 %v1941_v26, %v1757_v22  ;;  %v3814_v41 = vpop.f32.mrb[17].mxu0 }
 0x118   : > { %v1944_v44 = vpop.f32.mrb[18].mxu0 }
 0x119   : > { %v3815_v57 = vpop.f32.mrb[19].mxu0 }
 0x11a   : > { %v2133_v47 = vpop.f32.mrb[16].mxu1 }
 0x11b   : > { %v2142_v63 = vadd.f32 %v2133_v47, %v1950_v28  ;;  %v3822_v8 = vpop.f32.mrb[17].mxu1  ;;  %v3349_v28 = vld [vmem:[%s4438_s17 + $0x4] sm:$0x1] }
 0x11c   : > { %v2136_v11 = vpop.f32.mrb[18].mxu1 }
 0x11d   : > { %v3823_v12 = vpop.f32.mrb[19].mxu1 }
 0x11e   : > { %v1174_v13 = vld [vmem:[#allocation2 + $0x8] sm:$0x1] }
 0x11f   : > { %v1176_v20 = vadd.f32 %v1174_v13, %v1169_v49  ;;  %v2328_v15 = vpop.f32.mrb[20].mxu0 }
 0x120   : > { %v2337_v16 = vadd.f32 %v2328_v15, %v2142_v63  ;;  %v3830_v6 = vpop.f32.mrb[21].mxu0 }
 0x121   : > { %1178 = vst [vmem:[#allocation2 + $0x8] sm:$0x1] %v1176_v20  ;;  %v2331_v18 = vpop.f32.mrb[22].mxu0 }
 0x122   : > { %v3831_v19 = vpop.f32.mrb[23].mxu0  ;;  %v2523_v27 = vpop.f32.mrb[20].mxu1 }
 0x123   : > { %v2532_v39 = vadd.f32 %v2523_v27, %v2337_v16  ;;  %v3838_v48 = vpop.f32.mrb[21].mxu1 }
 0x124   : > { %v2526_v24 = vpop.f32.mrb[22].mxu1 }
 0x125   : > { %v3839_v25 = vpop.f32.mrb[23].mxu1 }
 0x127   : > { %v2716_v29 = vpop.f32.mrb[24].mxu0 }
 0x128   : > { %v1366_v52 = vld [vmem:[#allocation2 + $0x8] sm:$0x1]  ;;  %v2725_v2 = vadd.f32 %v2716_v29, %v2532_v39  ;;  %v3846_v33 = vpop.f32.mrb[25].mxu0 }
 0x129   : > { %v1368_v31 = vadd.f32 %v1366_v52, %v1361_v23  ;;  %v2719_v34 = vpop.f32.mrb[26].mxu0 }
 0x12a   : > { %v3847_v35 = vpop.f32.mrb[27].mxu0  ;;  %v2908_v38 = vpop.f32.mrb[24].mxu1 }
 0x12b   : > { %1370 = vst [vmem:[#allocation2 + $0x8] sm:$0x1] %v1368_v31  ;;  %v2917_v37 = vadd.f32 %v2908_v38, %v2725_v2  ;;  %v3854_v42 = vpop.f32.mrb[25].mxu1 }
 0x12c   : > { %v2911_v40 = vpop.f32.mrb[26].mxu1 }
 0x12d   : > { %v3855_v14 = vpop.f32.mrb[27].mxu1 }
 0x12f   : > { %v3103_v10 = vpop.f32.mrb[28].mxu0 }
 0x130   : > { %v3112_v45 = vadd.f32 %v3103_v10, %v2917_v37  ;;  %v3862_v54 = vpop.f32.mrb[29].mxu0 }
 0x131   : > { %v3106_v32 = vpop.f32.mrb[30].mxu0 }
 0x132   : > { %v1561_v60 = vld [vmem:[#allocation2 + $0x8] sm:$0x1]  ;;  %v3863_v43 = vpop.f32.mrb[31].mxu0  ;;  %v3298_v9 = vpop.f32.mrb[28].mxu1 }
 0x133   : > { %v1563_v51 = vadd.f32 %v1561_v60, %v1556_v21  ;;  %v3307_v46 = vadd.f32 %v3298_v9, %v3112_v45  ;;  %v3870_v49 = vpop.f32.mrb[29].mxu1 }
 0x134   : > { %v3301_v50 = vpop.f32.mrb[30].mxu1 }
 0x135   : > { %1565 = vst [vmem:[#allocation2 + $0x8] sm:$0x1] %v1563_v51  ;;  %v3694_v53 = vpack.c.bf16 %v3307_v46, %v3307_v46  ;;  %v3871_v59 = vpop.f32.mrb[31].mxu1 }
 0x137   : > { %3345 = vst [vmem:[%s4438_s17] sm:$0xf] %v3694_v53 }
 0x13c   : > { %v1756_v0 = vld [vmem:[#allocation2 + $0x8] sm:$0x1] }
 0x13d   : > { %v1758_v55 = vadd.f32 %v1756_v0, %v1751_v3 }
 0x13f   : > { %1760 = vst [vmem:[#allocation2 + $0x8] sm:$0x1] %v1758_v55 }
 0x146   : > { %v1949_v56 = vld [vmem:[#allocation2 + $0x8] sm:$0x1] }
 0x147   : > { %v1951_v23 = vadd.f32 %v1949_v56, %v1944_v44 }
 0x149   : > { %1953 = vst [vmem:[#allocation2 + $0x8] sm:$0x1] %v1951_v23 }
 0x150   : > { %v2141_v58 = vld [vmem:[#allocation2 + $0x8] sm:$0x1] }
 0x151   : > { %v2143_v61 = vadd.f32 %v2141_v58, %v2136_v11 }
 0x153   : > { %2145 = vst [vmem:[#allocation2 + $0x8] sm:$0x1] %v2143_v61 }
 0x15a   : > { %v2336_v5 = vld [vmem:[#allocation2 + $0x8] sm:$0x1] }
 0x15b   : > { %v2338_v62 = vadd.f32 %v2336_v5, %v2331_v18 }
 0x15d   : > { %2340 = vst [vmem:[#allocation2 + $0x8] sm:$0x1] %v2338_v62 }
 0x164   : > { %v2531_v21 = vld [vmem:[#allocation2 + $0x8] sm:$0x1] }
 0x165   : > { %v2533_v36 = vadd.f32 %v2531_v21, %v2526_v24 }
 0x167   : > { %2535 = vst [vmem:[#allocation2 + $0x8] sm:$0x1] %v2533_v36 }
 0x16e   : > { %v2724_v30 = vld [vmem:[#allocation2 + $0x8] sm:$0x1] }
 0x16f   : > { %v2726_v22 = vadd.f32 %v2724_v30, %v2719_v34 }
 0x171   : > { %2728 = vst [vmem:[#allocation2 + $0x8] sm:$0x1] %v2726_v22 }
 0x178   : > { %v2916_v17 = vld [vmem:[#allocation2 + $0x8] sm:$0x1] }
 0x179   : > { %v2918_v1 = vadd.f32 %v2916_v17, %v2911_v40 }
 0x17b   : > { %2920 = vst [vmem:[#allocation2 + $0x8] sm:$0x1] %v2918_v1 }
 0x182   : > { %v3111_v3 = vld [vmem:[#allocation2 + $0x8] sm:$0x1] }
 0x183   : > { %v3113_v4 = vadd.f32 %v3111_v3, %v3106_v32 }
 0x185   : > { %3115 = vst [vmem:[#allocation2 + $0x8] sm:$0x1] %v3113_v4 }
 0x18c   : > { %v3306_v7 = vld [vmem:[#allocation2 + $0x8] sm:$0x1] }
 0x18d   : > { %v3308_v26 = vadd.f32 %v3306_v7, %v3301_v50 }
 0x18f   : > { %3310 = vst [vmem:[#allocation2 + $0x8] sm:$0x1] %v3308_v26 }
 0x196   : > { %v3312_v41 = vld [vmem:[#allocation2 + $0x8] sm:$0x1] }
 0x197   : > { %v3314_v44 = vsel %vm3313_vm2, %v3312_v41, 0.0  ;;  %v3695_v57 = vpack.c.bf16 %v3312_v41, %v3312_v41 }
 0x198   : > { %v3315_v47 = vadd.f32 %v3314_v44, %v3307_v46 }
 0x199   : > { %v3350_v63 = vsel %vm3348_vm4, %v3695_v57, %v3349_v28 }
 0x19a   : > { %v3316_v8 = vrot.slane %v3315_v47, 4  ;;  %3351 = vst [vmem:[%s4438_s17 + $0x4] sm:$0x1] %v3350_v63 }
 0x19c   : > { %v3317_v11 = vadd.f32 %v3316_v8, %v3315_v47 }
 0x19e   : > { %v3318_v12 = vrot.slane %v3317_v11, 2 }
 0x1a0   : > { %v3319_v13 = vadd.f32 %v3318_v12, %v3317_v11 }
 0x1a2   : > { %v3320_v20 = vrot.slane %v3319_v13, 1 }
 0x1a4   : > { %v3321_v15 = vadd.f32 %v3320_v20, %v3319_v13 }
 0x1a6   : > { %v3322_v16 = vmul.f32 0.11111111, %v3321_v15  ;;  %3335 = vst [vmem:[%s211_s20] sm:$0x1] %v3321_v15 }
 0x1a8   : > { %v3323_v6 = vsub.f32 %v3307_v46, %v3322_v16  ;;  %v3324_v18 = vsub.f32 %v3312_v41, %v3322_v16 }
 0x1aa   : > { %v3325_v19 = vmul.f32 %v3323_v6, %v3323_v6  ;;  %v3326_v27 = vmul.f32 %v3324_v18, %v3324_v18 }
 0x1ac   : > { %v3327_v39 = vsel %vm3313_vm2, %v3326_v27, 0.0 }
 0x1ad   : > { %v3328_v48 = vadd.f32 %v3327_v39, %v3325_v19 }
 0x1af   : > { %v3329_v24 = vrot.slane %v3328_v48, 4 }
 0x1b1   : > { %v3330_v25 = vadd.f32 %v3329_v24, %v3328_v48 }
 0x1b3   : > { %v3331_v52 = vrot.slane %v3330_v25, 2 }
 0x1b5   : > { %v3332_v29 = vadd.f32 %v3331_v52, %v3330_v25 }
 0x1b7   : > { %v3333_v31 = vrot.slane %v3332_v29, 1 }
 0x1b9   : > { %v3334_v2 = vadd.f32 %v3333_v31, %v3332_v29 }
 0x1bb   : > { %3336 = vst [vmem:[%s214_s23] sm:$0x1] %v3334_v2 }
 0x1bc PF: > { %s15_s15 = sadd.s32 1, %s3922_s15  }
 0x1bd   : > { %p12_p4 = scmp.ge.s32.totalorder %s15_s15, 4  }
 0x1bf   :  { %14 = sbr.rel (!%p12_p4) target bundleno = 1 (0x1), region = 100 }

// kernel: discriminator_forward.9
= control target key start
LH: loop header
LB: loop body
LE: loop exit
PB: predicated region body
PF: predicated region fallthrough
CT: control target
= control target key end

     0   :  { %s3115_s12 = smov 0   ;;  %s3580_s0 = inlined_call_operand.vmem [shape: bf16[2,5,5,64], index: 0, kind: input, shape index: {}]   ;;  %s3581_s1 = inlined_call_operand.vmem [shape: bf16[16,64,128], index: 1, kind: input, shape index: {}]   ;;  %s3582_s2 = inlined_call_operand.vmem [shape: f32[1,128], index: 2, kind: input, shape index: {}]   ;;  %s3583_s3 = inlined_call_operand.vmem [shape: f32[2,4,128], index: 3, kind: output, shape index: {}]  }
   0x1 LB: > { %s2450_s13 = sadd.s32 4294967295, %s3090_s12   ;;  %p2454_p0 = scmp.ge.s32.totalorder %s3090_s12, 1  ;;  %s3090_s12 = sphi %s3115_s12, %s13_s12  }
   0x2   : > { %p137_p1 = scmp.lt.s32.totalorder %s3090_s12, 3 }
   0x4   : > { %p138_p2 = pnand %p2454_p0, %p137_p1 }
   0x5   : > { %v3008_v0 = vld [vmem:[%s3581_s1] sm:$0xff] (!%p138_p2)   ;;  %v3092_v1 = vmov (!%p138_p2), 0.0   ;;  %v3009_v2 = vld [vmem:[%s3581_s1 + $0x8] sm:$0xff] (!%p138_p2)   ;;  %vm3093_vm0 = vmmov (!%p138_p2), 0   ;;  %p160_p3 = scmp.lt.s32.totalorder (!%p138_p2), %s2450_s13, 1  ;;  %v186_v5 = vlaneseq (!%p138_p2)  ;;  %v3011_v6 = vld [vmem:[%s3581_s1 + $0x10] sm:$0xff] (!%p138_p2)  }
   0x6   : > { %141 = sbr.rel (%p138_p2) target bundleno = 431 (0x1af), region = 32  ;;  %2804 = vmatprep.subr.bf16.mxu0 (!%p138_p2), %v3092_v1  ;;  %2816 = vmatprep.subr.bf16.mxu1 (!%p138_p2), %v3092_v1  ;;  %v3010_v3 = vld [vmem:[%s3581_s1 + $0x20] sm:$0xff] (!%p138_p2)   ;;  %v3012_v4 = vld [vmem:[%s3581_s1 + $0x28] sm:$0xff] (!%p138_p2)   ;;  %v3013_v7 = vld [vmem:[%s3581_s1 + $0x18] sm:$0xff] (!%p138_p2)   ;;  %v3094_v9 = vmov (!%p138_p2), 1966171168  }
   0x7   : > { %2805 = vmatpush3.bf16.msra.mxu0 (!%p138_p2), %v3008_v0  ;;  %2812 = vmatprep.mubr.msk.bf16.mxu0 (!%p138_p2), %vm3093_vm0, %v3092_v1  ;;  %v3014_v8 = vld [vmem:[%s3581_s1 + $0x30] sm:$0xff] (!%p138_p2)   ;;  %v184_v10 = vunpack.c.l.s4 (!%p138_p2), %v3094_v9  ;;  %v187_v11 = vshrl.u32 (!%p138_p2), %v186_v5, 7  ;;  %vm221_vm1 = vcmask (!%p138_p2), 523264   ;;  %v3017_v14 = vld [vmem:[%s3581_s1 + $0x38] sm:$0xff] (!%p138_p2)   ;;  %vm314_vm2 = vsmask.f32 (!%p138_p2), 256 }
   0x8   : > { %2806 = vmatprep.subr.bf16.mxu0 (!%p138_p2), %v3092_v1  ;;  %2824 = vmatprep.mubr.msk.bf16.mxu1 (!%p138_p2), %vm3093_vm0, %v3092_v1  ;;  %vm315_vm3 = vsmask.f32 (!%p138_p2), 1284  ;;  %vm317_vm4 = vsmask.f32 (!%p138_p2), 2312  ;;  %v3016_v20 = vld [vmem:[%s3581_s1 + $0x40] sm:$0xff] (!%p138_p2)   ;;  %v3018_v31 = vld [vmem:[%s3581_s1 + $0x48] sm:$0xff] (!%p138_p2)  }
   0x9   : > { %2817 = vmatpush3.bf16.msra.mxu1 (!%p138_p2), %v3010_v3  ;;  %v185_v13 = vunpack.c.0.s8 (!%p138_p2), %v184_v10  ;;  %vm316_vm5 = vmor (!%p138_p2), %vm314_vm2, %vm315_vm3  ;;  %vm319_vm6 = vsmask.f32 (!%p138_p2), 3340  ;;  %vm321_vm7 = vsmask.f32 (!%p138_p2), 4368  ;;  %vm323_vm8 = vsmask.f32 (!%p138_p2), 5396 }
   0xa   : > { %2818 = vmatprep.subr.bf16.mxu1 (!%p138_p2), %v3092_v1  ;;  %vm318_vm9 = vmor (!%p138_p2), %vm316_vm5, %vm317_vm4  ;;  %vm325_vm11 = vsmask.f32 (!%p138_p2), 6424  ;;  %vm327_vm12 = vsmask.f32 (!%p138_p2), 7452  ;;  %v3019_v36 = vld [vmem:[%s3581_s1 + $0x50] sm:$0xff] (!%p138_p2)   ;;  %v3020_v41 = vld [vmem:[%s3581_s1 + $0x60] sm:$0xff] (!%p138_p2)  }
   0xb   : > { %2807 = vmatpush3.bf16.msra.mxu0 (!%p138_p2), %v3009_v2  ;;  %v3169_v18 = vsub.s32 (!%p138_p2), %v185_v13, %v187_v11  ;;  %vm320_vm10 = vmor (!%p138_p2), %vm318_vm9, %vm319_vm6  ;;  %v3021_v46 = vld [vmem:[%s3581_s1 + $0x58] sm:$0xff] (!%p138_p2)   ;;  %v3022_v47 = vld [vmem:[%s3581_s1 + $0x68] sm:$0xff] (!%p138_p2)  }
   0xc   : > { %2808 = vmatprep.subr.bf16.mxu0 (!%p138_p2), %v3092_v1  ;;  %vm322_vm13 = vmor (!%p138_p2), %vm320_vm10, %vm321_vm7  ;;  %v3023_v60 = vld [vmem:[%s3581_s1 + $0x70] sm:$0xff] (!%p138_p2)   ;;  %v3024_v61 = vld [vmem:[%s3581_s1 + $0x80] sm:$0xff] (!%p138_p2)  }
   0xd   : > { %s3587_s13 = smov (!%p160_p3, %s2450_s13), 1  ;;  %2819 = vmatpush3.bf16.msra.mxu1 %v3012_v4  ;;  %vm324_vm14 = vmor %vm322_vm13, %vm323_vm8  ;;  %v3026_v5 = vld [vmem:[%s3581_s1 + $0x88] sm:$0xff]  }
   0xe   : > { %s2996_s24 = smul.u32 20, %s3587_s13  ;;  %2820 = vmatprep.subr.bf16.mxu1 %v3092_v1  ;;  %vm326_vm15 = vmor %vm324_vm14, %vm325_vm11  ;;  %s2456_s26 = sshll.u32 %s3587_s13, 2 }
   0xf   : > { %2809 = vmatpush3.bf16.msra.mxu0 %v3011_v6  ;;  %vm3184_vm2 = vmor %vm326_vm15, %vm327_vm12  ;;  %s168_s29 = scalar_lea.vmem %s3583_s3, %s2456_s26 }
  0x10   : > { %s3159_s4 = scalar_lea.vmem %s3580_s0, %s2996_s24  ;;  %2810 = vmatprep.subr.bf16.mxu0 %v3092_v1 }
  0x11   : > { %v3080_v12 = vld.sshfl [vmem:[%s3159_s4] sm:$0x5 pattern:$0x75316420]  ;;  %2821 = vmatpush3.bf16.msra.mxu1 %v3014_v8 }
  0x12   : > { %v2462_v15 = vld.sshfl [vmem:[%s3159_s4] sm:$0x11 pattern:$0x75316420]  ;;  %2822 = vmatprep.subr.bf16.mxu1 %v3092_v1  ;;  %v196_v25 = vrot.slane %v3080_v12, %v3169_v18 }
  0x13   : > { %v2463_v16 = vld.sshfl [vmem:[%s3159_s4 + $0x4] sm:$0x11 pattern:$0x75316420]  ;;  %v277_v17 = vcombine.high %v2462_v15, %v2462_v15  ;;  %2811 = vmatpush3.bf16.msra.mxu0 %v3013_v7  ;;  %v284_v21 = vrot.slane %v2462_v15, %v3169_v18  ;;  %v3025_v7 = vld [vmem:[%s3581_s1 + $0x78] sm:$0xff]  }
  0x14   : > { %v299_v19 = vcombine.high %v2463_v16, %v2463_v16  ;;  %v306_v23 = vrot.slane %v2463_v16, %v3169_v18  ;;  %2828 = vmatprep.subr.bf16.mxu0 %v3092_v1  ;;  %v2479_v35 = vld.sshfl [vmem:[%s3159_s4] sm:$0x10 pattern:$0x75316420] }
  0x15   : > { %v291_v22 = vrot.slane %v277_v17, %v3169_v18  ;;  %2823 = vmatpush3.bf16.msra.mxu1 %v3017_v14  ;;  %v330_v26 = vshrl.u32 %v284_v21, 16  ;;  %v2480_v37 = vld.sshfl [vmem:[%s3159_s4 + $0x4] sm:$0x10 pattern:$0x75316420]  ;;  %v452_v38 = vcombine.high %v2479_v35, %v2479_v35  ;;  %v3027_v14 = vld [vmem:[%s3581_s1 + $0x90] sm:$0xff]  }
  0x16   : > { %v313_v24 = vrot.slane %v299_v19, %v3169_v18  ;;  %v339_v28 = vshrl.u32 %v306_v23, 16  ;;  %2840 = vmatprep.subr.bf16.mxu1 %v3092_v1  ;;  %2813 = vmatmul.mubr.msk.bf16.vlgmr.msra.gmra.mrb[0].mxu0 %vm221_vm1, %v196_v25  ;;  %v467_v40 = vcombine.high %v2480_v37, %v2480_v37  ;;  %v2494_v45 = vld.sshfl [vmem:[%s3159_s4] sm:$0x12 pattern:$0x75316420]  ;;  %v3029_v21 = vld [vmem:[%s3581_s1 + $0x98] sm:$0xff]  }
  0x17   : > { %v335_v27 = vshll.u32 %v291_v22, 16  ;;  %2829 = vmatpush3.bf16.msra.mxu0 %v3016_v20  ;;  %2836 = vmatprep.mubr.msk.bf16.mxu0 %vm3093_vm0, %v3092_v1  ;;  %v459_v42 = vrot.slane %v452_v38, %v3169_v18  ;;  %v2495_v49 = vld.sshfl [vmem:[%s3159_s4 + $0x4] sm:$0x12 pattern:$0x75316420]  ;;  %v580_v50 = vcombine.high %v2494_v45, %v2494_v45  ;;  %v587_v51 = vrot.slane %v2494_v45, %v3169_v18  ;;  %v3030_v22 = vld [vmem:[%s3581_s1 + $0xa8] sm:$0xff]  }
  0x18   : > { %v344_v29 = vshll.u32 %v313_v24, 16  ;;  %2830 = vmatprep.subr.bf16.mxu0 %v3092_v1  ;;  %v3214_v44 = vrot.slane %v467_v40, %v3169_v18  ;;  %v603_v52 = vcombine.high %v2495_v49, %v2495_v49  ;;  %v610_v53 = vrot.slane %v2495_v49, %v3169_v18  ;;  %v2529_v8 = vld.sshfl [vmem:[%s3159_s4 + $0x8] sm:$0x11 pattern:$0x75316420]  ;;  %v3028_v16 = vld [vmem:[%s3581_s1 + $0xa0] sm:$0xff]  }
  0x19   : > { %v337_v32 = vsel %vm3184_vm2, %v330_v26, %v335_v27  ;;  %v594_v55 = vrot.slane %v580_v50, %v3169_v18  ;;  %v595_v56 = vcombine.high %v587_v51, %v587_v51  ;;  %v863_v10 = vcombine.high %v2529_v8, %v2529_v8  ;;  %v3081_v12 = vld.sshfl [vmem:[%s3159_s4 + $0x4] sm:$0x5 pattern:$0x75316420] }
  0x1a   : > { %v3198_v33 = vsel %vm3184_vm2, %v339_v28, %v344_v29  ;;  %v484_v48 = vcombine.low %v459_v42, %v3214_v44  ;;  %v617_v57 = vrot.slane %v603_v52, %v3169_v18  ;;  %v618_v58 = vcombine.high %v610_v53, %v610_v53  ;;  %v2548_v20 = vld.sshfl [vmem:[%s3159_s4 + $0x8] sm:$0x10 pattern:$0x75316420]  ;;  %v3033_v27 = vld [vmem:[%s3581_s1 + $0xc0] sm:$0xff]   ;;  %v3032_v29 = vld [vmem:[%s3581_s1 + $0xb0] sm:$0xff]  }
  0x1b   : > { %v356_v34 = vcombine.low %v337_v32, %v3198_v33  ;;  %2831 = vmatpush3.bf16.msra.mxu0 %v3018_v31  ;;  %v620_v62 = vshrl.u32 %v594_v55, 16  ;;  %v625_v63 = vshll.u32 %v595_v56, 16  ;;  %v870_v11 = vrot.slane %v2529_v8, %v3169_v18  ;;  %v2565_v24 = vld.sshfl [vmem:[%s3159_s4 + $0x8] sm:$0x12 pattern:$0x75316420] }
  0x1c   : > { %2832 = vmatprep.subr.bf16.mxu0 %v3092_v1  ;;  %v491_v54 = vrot.slane %v484_v48, %v3169_v18  ;;  %v629_v0 = vshrl.u32 %v617_v57, 16  ;;  %v634_v2 = vshll.u32 %v618_v58, 16  ;;  %v877_v15 = vrot.slane %v863_v10, %v3169_v18  ;;  %v3035_v35 = vld [vmem:[%s3581_s1 + $0xc8] sm:$0xff]   ;;  %v3037_v42 = vld [vmem:[%s3581_s1 + $0xe0] sm:$0xff]   ;;  %v3040_v53 = vld [vmem:[%s3581_s1 + $0xf0] sm:$0xff]  }
  0x1d   : > { %v363_v39 = vrot.slane %v356_v34, %v3169_v18  ;;  %v627_v3 = vsel %vm3184_vm2, %v620_v62, %v625_v63  ;;  %v888_v17 = vshrl.u32 %v870_v11, 16  ;;  %v759_v25 = vrot.slane %v3081_v12, %v3169_v18  ;;  %v3034_v34 = vld [vmem:[%s3581_s1 + $0xb8] sm:$0xff]   ;;  %v3039_v48 = vld [vmem:[%s3581_s1 + $0xe8] sm:$0xff]   ;;  %v3041_v51 = vld [vmem:[%s3581_s1 + $0x100] sm:$0xff]  }
  0x1e   : > { %v498_v59 = vrot.slane %v491_v54, %v3169_v18  ;;  %v3249_v4 = vsel %vm3184_vm2, %v629_v0, %v634_v2  ;;  %v893_v19 = vshll.u32 %v877_v15, 16  ;;  %v1016_v26 = vcombine.high %v2548_v20, %v2548_v20  ;;  %v3043_v55 = vld [vmem:[%s3581_s1 + $0x108] sm:$0xff]   ;;  %v3042_v57 = vld [vmem:[%s3581_s1 + $0xf8] sm:$0xff]   ;;  %v3045_v63 = vld [vmem:[%s3581_s1 + $0x120] sm:$0xff]  }
  0x1f   : > { %v370_v43 = vrot.slane %v363_v39, %v3169_v18  ;;  %2833 = vmatpush3.bf16.msra.mxu0 %v3019_v36  ;;  %v646_v6 = vcombine.low %v627_v3, %v3249_v4  ;;  %v1152_v31 = vcombine.high %v2565_v24, %v2565_v24  ;;  %v1159_v32 = vrot.slane %v2565_v24, %v3169_v18  ;;  %v2618_v3 = vld.sshfl [vmem:[%s3159_s4 + $0xc] sm:$0x10 pattern:$0x75316420]  ;;  %v3050_v10 = vld [vmem:[%s3581_s1 + $0x140] sm:$0xff]   ;;  %v3049_v12 = vld [vmem:[%s3581_s1 + $0x130] sm:$0xff]  }
  0x20   : > { %2834 = vmatprep.subr.bf16.mxu0 %v3092_v1  ;;  %v3287_v23 = vsel %vm3184_vm2, %v888_v17, %v893_v19  ;;  %v3051_v19 = vld [vmem:[%s3581_s1 + $0x138] sm:$0xff]   ;;  %v3053_v24 = vld [vmem:[%s3581_s1 + $0x150] sm:$0xff]  }
  0x21   : > { %2825 = vmatmul.mubr.msk.bf16.vlgmr.msra.gmra.mrb[0].mxu1 %vm221_vm1, %v370_v43  ;;  %v653_v9 = vrot.slane %v646_v6, %v3169_v18  ;;  %v905_v28 = vcombine.low %v3198_v33, %v3287_v23  ;;  %v3310_v33 = vrot.slane %v1016_v26, %v3169_v18  ;;  %v1166_v37 = vrot.slane %v1152_v31, %v3169_v18  ;;  %v3047_v6 = vld [vmem:[%s3581_s1 + $0x128] sm:$0xff]  }
  0x22   : > { %2841 = vmatpush3.bf16.msra.mxu1 %v3020_v41  ;;  %2848 = vmatprep.mubr.msk.bf16.mxu1 %vm3093_vm0, %v3092_v1  ;;  %v1167_v38 = vcombine.high %v1159_v32, %v1159_v32  ;;  %v3036_v41 = vld [vmem:[%s3581_s1 + $0xd0] sm:$0xff]   ;;  %v3056_v31 = vld [vmem:[%s3581_s1 + $0x168] sm:$0xff]  }
  0x23   : > { %2842 = vmatprep.subr.bf16.mxu1 %v3092_v1  ;;  %2835 = vmatpush3.bf16.msra.mxu0 %v3021_v46  ;;  %v660_v13 = vrot.slane %v653_v9, %v3169_v18  ;;  %v912_v36 = vrot.slane %v905_v28, %v3169_v18  ;;  %v1033_v39 = vcombine.low %v3214_v44, %v3310_v33  ;;  %v1178_v43 = vshrl.u32 %v1166_v37, 16  ;;  %v3038_v46 = vld [vmem:[%s3581_s1 + $0xd8] sm:$0xff]   ;;  %v3057_v37 = vld [vmem:[%s3581_s1 + $0x170] sm:$0xff]  }
  0x24   : > { %2852 = vmatprep.subr.bf16.mxu0 %v3092_v1  ;;  %v1183_v45 = vshll.u32 %v1167_v38, 16  ;;  %v1565_v9 = vcombine.high %v2618_v3, %v2618_v3 }
  0x25   : > { %v919_v40 = vrot.slane %v912_v36, %v3169_v18  ;;  %v1040_v44 = vrot.slane %v1033_v39, %v3169_v18  ;;  %v3060_v39 = vld [vmem:[%s3581_s1 + $0x188] sm:$0xff]  }
  0x26   : > { %2843 = vmatpush3.bf16.msra.mxu1 %v3022_v47  ;;  %2837 = vmatmul.mubr.msk.bf16.vlgmr.msra.gmra.mrb[4].mxu0 %vm221_vm1, %v498_v59  ;;  %v2599_v47 = vld.sshfl [vmem:[%s3159_s4 + $0xc] sm:$0x11 pattern:$0x75316420]  ;;  %v3344_v49 = vsel %vm3184_vm2, %v1178_v43, %v1183_v45  ;;  %v3415_v15 = vrot.slane %v1565_v9, %v3169_v18 }
  0x27   : > { %2844 = vmatprep.subr.bf16.mxu1 %v3092_v1  ;;  %2853 = vmatpush3.bf16.msra.mxu0 %v3024_v61  ;;  %v1047_v50 = vrot.slane %v1040_v44, %v3169_v18  ;;  %v1195_v52 = vcombine.low %v3249_v4, %v3344_v49  ;;  %v1412_v54 = vcombine.high %v2599_v47, %v2599_v47  ;;  %v3082_v61 = vld.sshfl [vmem:[%s3159_s4 + $0x8] sm:$0x5 pattern:$0x75316420]  ;;  %v3046_v4 = vld [vmem:[%s3581_s1 + $0x118] sm:$0xff]  }
  0x28   : > { %2860 = vmatprep.mubr.msk.bf16.mxu0 %vm3093_vm0, %v3092_v1  ;;  %2854 = vmatprep.subr.bf16.mxu0 %v3092_v1  ;;  %v1419_v58 = vrot.slane %v2599_v47, %v3169_v18  ;;  %v1308_v8 = vrot.slane %v3082_v61, %v3169_v18  ;;  %v3083_v45 = vld.sshfl [vmem:[%s3159_s4 + $0xc] sm:$0x5 pattern:$0x75316420]  ;;  %v3062_v47 = vld [vmem:[%s3581_s1 + $0x1a0] sm:$0xff]  }
  0x29   : > { %v1202_v56 = vrot.slane %v1195_v52, %v3169_v18  ;;  %v1426_v59 = vrot.slane %v1412_v54, %v3169_v18  ;;  %v3064_v52 = vld [vmem:[%s3581_s1 + $0x1a8] sm:$0xff]   ;;  %v2705_v54 = vld.sshfl [vmem:[%s3159_s4 + $0x10] sm:$0x12 pattern:$0x75316420] }
  0x2a   : > { %2845 = vmatpush3.bf16.msra.mxu1 %v3023_v60  ;;  %v3044_v60 = vld [vmem:[%s3581_s1 + $0x110] sm:$0xff]   ;;  %v1437_v0 = vshrl.u32 %v1419_v58, 16  ;;  %v2257_v61 = vrot.slane %v2705_v54, %v3169_v18 }
  0x2b   : > { %2846 = vmatprep.subr.bf16.mxu1 %v3092_v1  ;;  %2855 = vmatpush3.bf16.msra.mxu0 %v3026_v5  ;;  %v1209_v62 = vrot.slane %v1202_v56, %v3169_v18  ;;  %v1442_v2 = vshll.u32 %v1426_v59, 16  ;;  %v2635_v5 = vld.sshfl [vmem:[%s3159_s4 + $0xc] sm:$0x12 pattern:$0x75316420]  ;;  %v3066_v59 = vld [vmem:[%s3581_s1 + $0x1b0] sm:$0xff]  }
  0x2c   : > { %2856 = vmatprep.subr.bf16.mxu0 %v3092_v1 }
  0x2e   : > { %2847 = vmatpush3.bf16.msra.mxu1 %v3025_v7  ;;  %v3396_v7 = vsel %vm3184_vm2, %v1437_v0, %v1442_v2  ;;  %v3068_v2 = vld [vmem:[%s3581_s1 + $0x1b8] sm:$0xff]  }
  0x2f   : > { %2864 = vmatprep.subr.bf16.mxu1 %v3092_v1  ;;  %2857 = vmatpush3.bf16.msra.mxu0 %v3027_v14  ;;  %v1454_v11 = vcombine.low %v3287_v23, %v3396_v7  ;;  %v1708_v14 = vrot.slane %v2635_v5, %v3169_v18 }
  0x30   : > { %2858 = vmatprep.subr.bf16.mxu0 %v3092_v1 }
  0x31   : > { %2849 = vmatmul.mubr.msk.bf16.vlgmr.msra.gmra.mrb[4].mxu1 %vm221_vm1, %v660_v13  ;;  %v1701_v13 = vcombine.high %v2635_v5, %v2635_v5  ;;  %v1461_v17 = vrot.slane %v1454_v11, %v3169_v18 }
  0x32   : > { %2865 = vmatpush3.bf16.msra.mxu1 %v3028_v16  ;;  %2872 = vmatprep.mubr.msk.bf16.mxu1 %vm3093_vm0, %v3092_v1  ;;  %v3052_v16 = vld [vmem:[%s3581_s1 + $0x148] sm:$0xff]  }
  0x33   : > { %2866 = vmatprep.subr.bf16.mxu1 %v3092_v1  ;;  %2859 = vmatpush3.bf16.msra.mxu0 %v3029_v21  ;;  %v1715_v20 = vrot.slane %v1701_v13, %v3169_v18  ;;  %v1716_v21 = vcombine.high %v1708_v14, %v1708_v14  ;;  %v1468_v23 = vrot.slane %v1461_v17, %v3169_v18  ;;  %v3073_v13 = vld [vmem:[%s3581_s1 + $0x1e8] sm:$0xff]   ;;  %v3074_v17 = vld [vmem:[%s3581_s1 + $0x1f0] sm:$0xff]  }
  0x34   : > { %2876 = vmatprep.subr.bf16.mxu0 %v3092_v1 }
  0x35   : > { %v1727_v26 = vshrl.u32 %v1715_v20, 16 }
  0x36   : > { %2867 = vmatpush3.bf16.msra.mxu1 %v3030_v22  ;;  %2861 = vmatmul.mubr.msk.bf16.vlgmr.msra.gmra.mrb[8].mxu0 %vm221_vm1, %v759_v25  ;;  %v1582_v22 = vcombine.low %v3310_v33, %v3415_v15  ;;  %v3054_v25 = vld [vmem:[%s3581_s1 + $0x160] sm:$0xff]  }
  0x37   : > { %2868 = vmatprep.subr.bf16.mxu1 %v3092_v1  ;;  %2877 = vmatpush3.bf16.msra.mxu0 %v3033_v27  ;;  %v1732_v27 = vshll.u32 %v1716_v21, 16 }
  0x38   : > { %2884 = vmatprep.mubr.msk.bf16.mxu0 %vm3093_vm0, %v3092_v1  ;;  %2878 = vmatprep.subr.bf16.mxu0 %v3092_v1  ;;  %v1589_v28 = vrot.slane %v1582_v22, %v3169_v18 }
  0x39   : > { %v3451_v32 = vsel %vm3184_vm2, %v1727_v26, %v1732_v27 }
  0x3a   : > { %2869 = vmatpush3.bf16.msra.mxu1 %v3032_v29  ;;  %v3055_v29 = vld [vmem:[%s3581_s1 + $0x158] sm:$0xff]   ;;  %v1596_v33 = vrot.slane %v1589_v28, %v3169_v18  ;;  %v1744_v36 = vcombine.low %v3344_v49, %v3451_v32 }
  0x3b   : > { %2870 = vmatprep.subr.bf16.mxu1 %v3092_v1  ;;  %2879 = vmatpush3.bf16.msra.mxu0 %v3035_v35  ;;  %v3058_v35 = vld [vmem:[%s3581_s1 + $0x180] sm:$0xff]  }
  0x3c   : > { %2880 = vmatprep.subr.bf16.mxu0 %v3092_v1 }
  0x3e   : > { %2871 = vmatpush3.bf16.msra.mxu1 %v3034_v34  ;;  %v2669_v34 = vld.sshfl [vmem:[%s3159_s4 + $0x10] sm:$0x11 pattern:$0x75316420] }
  0x3f   : > { %2888 = vmatprep.subr.bf16.mxu1 %v3092_v1  ;;  %2881 = vmatpush3.bf16.msra.mxu0 %v3036_v41  ;;  %v1961_v38 = vcombine.high %v2669_v34, %v2669_v34  ;;  %v3059_v41 = vld [vmem:[%s3581_s1 + $0x178] sm:$0xff]  }
  0x40   : > { %2882 = vmatprep.subr.bf16.mxu0 %v3092_v1 }
  0x41   : > { %2873 = vmatmul.mubr.msk.bf16.vlgmr.msra.gmra.mrb[8].mxu1 %vm221_vm1, %v919_v40  ;;  %v1751_v40 = vrot.slane %v1744_v36, %v3169_v18  ;;  %v1975_v43 = vrot.slane %v1961_v38, %v3169_v18 }
  0x42   : > { %2889 = vmatpush3.bf16.msra.mxu1 %v3037_v42  ;;  %2896 = vmatprep.mubr.msk.bf16.mxu1 %vm3093_vm0, %v3092_v1  ;;  %v1968_v42 = vrot.slane %v2669_v34, %v3169_v18 }
  0x43   : > { %2890 = vmatprep.subr.bf16.mxu1 %v3092_v1  ;;  %2883 = vmatpush3.bf16.msra.mxu0 %v3038_v46  ;;  %v1758_v44 = vrot.slane %v1751_v40, %v3169_v18  ;;  %v3061_v46 = vld [vmem:[%s3581_s1 + $0x190] sm:$0xff]   ;;  %v1991_v49 = vshll.u32 %v1975_v43, 16 }
  0x44   : > { %2900 = vmatprep.subr.bf16.mxu0 %v3092_v1 }
  0x46   : > { %2891 = vmatpush3.bf16.msra.mxu1 %v3039_v48  ;;  %2885 = vmatmul.mubr.msk.bf16.vlgmr.msra.gmra.mrb[12].mxu0 %vm221_vm1, %v1047_v50  ;;  %v1986_v48 = vshrl.u32 %v1968_v42, 16  ;;  %v3063_v50 = vld [vmem:[%s3581_s1 + $0x198] sm:$0xff]  }
  0x47   : > { %2892 = vmatprep.subr.bf16.mxu1 %v3092_v1  ;;  %2901 = vmatpush3.bf16.msra.mxu0 %v3041_v51  ;;  %v2688_v51 = vld.sshfl [vmem:[%s3159_s4 + $0x10] sm:$0x10 pattern:$0x75316420] }
  0x48   : > { %2908 = vmatprep.mubr.msk.bf16.mxu0 %vm3093_vm0, %v3092_v1  ;;  %2902 = vmatprep.subr.bf16.mxu0 %v3092_v1  ;;  %v2114_v56 = vcombine.high %v2688_v51, %v2688_v51 }
  0x4a   : > { %2893 = vmatpush3.bf16.msra.mxu1 %v3040_v53  ;;  %v1993_v53 = vsel %vm3184_vm2, %v1986_v48, %v1991_v49 }
  0x4b   : > { %2894 = vmatprep.subr.bf16.mxu1 %v3092_v1  ;;  %2903 = vmatpush3.bf16.msra.mxu0 %v3043_v55  ;;  %v1857_v55 = vrot.slane %v3083_v45, %v3169_v18  ;;  %v2003_v58 = vcombine.low %v3396_v7, %v1993_v53  ;;  %v3070_v7 = vld [vmem:[%s3581_s1 + $0x1d0] sm:$0xff]  }
  0x4c   : > { %2904 = vmatprep.subr.bf16.mxu0 %v3092_v1 }
  0x4d   : > { %v2010_v0 = vrot.slane %v2003_v58, %v3169_v18 }
  0x4e   : > { %2895 = vmatpush3.bf16.msra.mxu1 %v3042_v57  ;;  %v3067_v57 = vld [vmem:[%s3581_s1 + $0x1c0] sm:$0xff]  }
  0x4f   : > { %2912 = vmatprep.subr.bf16.mxu1 %v3092_v1  ;;  %2905 = vmatpush3.bf16.msra.mxu0 %v3044_v60  ;;  %v2250_v60 = vcombine.high %v2705_v54, %v2705_v54 }
  0x50   : > { %2906 = vmatprep.subr.bf16.mxu0 %v3092_v1 }
  0x51   : > { %2897 = vmatmul.mubr.msk.bf16.vlgmr.msra.gmra.mrb[12].mxu1 %vm221_vm1, %v1209_v62  ;;  %v2121_v62 = vrot.slane %v2114_v56, %v3169_v18  ;;  %v2264_v3 = vrot.slane %v2250_v60, %v3169_v18 }
  0x52   : > { %2913 = vmatpush3.bf16.msra.mxu1 %v3045_v63  ;;  %2920 = vmatprep.mubr.msk.bf16.mxu1 %vm3093_vm0, %v3092_v1  ;;  %v3069_v63 = vld [vmem:[%s3581_s1 + $0x1c8] sm:$0xff]  }
  0x53   : > { %2914 = vmatprep.subr.bf16.mxu1 %v3092_v1  ;;  %2907 = vmatpush3.bf16.msra.mxu0 %v3046_v4  ;;  %v2265_v4 = vcombine.high %v2257_v61, %v2257_v61  ;;  %v2131_v5 = vcombine.low %v3415_v15, %v2121_v62  ;;  %v2276_v9 = vshrl.u32 %v2264_v3, 16 }
  0x54   : > { %2924 = vmatprep.subr.bf16.mxu0 %v3092_v1 }
  0x55   : > { %v2138_v11 = vrot.slane %v2131_v5, %v3169_v18 }
  0x56   : > { %2915 = vmatpush3.bf16.msra.mxu1 %v3047_v6  ;;  %2909 = vmatmul.mubr.msk.bf16.vlgmr.msra.gmra.mrb[16].mxu0 %vm221_vm1, %v1308_v8  ;;  %v2017_v6 = vrot.slane %v2010_v0, %v3169_v18  ;;  %v3071_v8 = vld [vmem:[%s3581_s1 + $0x1e0] sm:$0xff]  }
  0x57   : > { %2916 = vmatprep.subr.bf16.mxu1 %v3092_v1  ;;  %2925 = vmatpush3.bf16.msra.mxu0 %v3050_v10  ;;  %v2281_v10 = vshll.u32 %v2265_v4, 16  ;;  %v2145_v15 = vrot.slane %v2138_v11, %v3169_v18 }
  0x58   : > { %2932 = vmatprep.mubr.msk.bf16.mxu0 %vm3093_vm0, %v3092_v1  ;;  %2926 = vmatprep.subr.bf16.mxu0 %v3092_v1 }
  0x59   : > { %v2283_v14 = vsel %vm3184_vm2, %v2276_v9, %v2281_v10 }
  0x5a   : > { %2917 = vmatpush3.bf16.msra.mxu1 %v3049_v12  ;;  %v3072_v12 = vld [vmem:[%s3581_s1 + $0x1d8] sm:$0xff]  }
  0x5b   : > { %2918 = vmatprep.subr.bf16.mxu1 %v3092_v1  ;;  %2927 = vmatpush3.bf16.msra.mxu0 %v3052_v16  ;;  %v2293_v16 = vcombine.low %v3451_v32, %v2283_v14 }
  0x5c   : > { %2928 = vmatprep.subr.bf16.mxu0 %v3092_v1 }
  0x5d   : > { %v2300_v30 = vrot.slane %v2293_v16, %v3169_v18 }
  0x5e   : > { %2919 = vmatpush3.bf16.msra.mxu1 %v3051_v19  ;;  %v3075_v19 = vld [vmem:[%s3581_s1 + $0x1f8] sm:$0xff]  }
  0x5f   : > { %2936 = vmatprep.subr.bf16.mxu1 %v3092_v1  ;;  %2929 = vmatpush3.bf16.msra.mxu0 %v3053_v24  ;;  %v2307_v20 = vrot.slane %v2300_v30, %v3169_v18 }
  0x60   : > { %2930 = vmatprep.subr.bf16.mxu0 %v3092_v1 }
  0x61   : > { %2921 = vmatmul.mubr.msk.bf16.vlgmr.msra.gmra.mrb[16].mxu1 %vm221_vm1, %v1468_v23 }
  0x62   : > { %2937 = vmatpush3.bf16.msra.mxu1 %v3054_v25  ;;  %2944 = vmatprep.mubr.msk.bf16.mxu1 %vm3093_vm0, %v3092_v1 }
  0x63   : > { %2938 = vmatprep.subr.bf16.mxu1 %v3092_v1  ;;  %2931 = vmatpush3.bf16.msra.mxu0 %v3055_v29 }
  0x64   : > { %2948 = vmatprep.subr.bf16.mxu0 %v3092_v1 }
  0x66   : > { %2939 = vmatpush3.bf16.msra.mxu1 %v3056_v31  ;;  %2933 = vmatmul.mubr.msk.bf16.vlgmr.msra.gmra.mrb[20].mxu0 %vm221_vm1, %v1596_v33 }
  0x67   : > { %2940 = vmatprep.subr.bf16.mxu1 %v3092_v1  ;;  %2949 = vmatpush3.bf16.msra.mxu0 %v3058_v35 }
  0x68   : > { %2956 = vmatprep.mubr.msk.bf16.mxu0 %vm3093_vm0, %v3092_v1  ;;  %2950 = vmatprep.subr.bf16.mxu0 %v3092_v1 }
  0x6a   : > { %2941 = vmatpush3.bf16.msra.mxu1 %v3057_v37 }
  0x6b   : > { %2942 = vmatprep.subr.bf16.mxu1 %v3092_v1  ;;  %2951 = vmatpush3.bf16.msra.mxu0 %v3060_v39 }
  0x6c   : > { %2952 = vmatprep.subr.bf16.mxu0 %v3092_v1 }
  0x6e   : > { %2943 = vmatpush3.bf16.msra.mxu1 %v3059_v41 }
  0x6f   : > { %2960 = vmatprep.subr.bf16.mxu1 %v3092_v1  ;;  %2953 = vmatpush3.bf16.msra.mxu0 %v3061_v46 }
  0x70   : > { %2954 = vmatprep.subr.bf16.mxu0 %v3092_v1 }
  0x71   : > { %2945 = vmatmul.mubr.msk.bf16.vlgmr.msra.gmra.mrb[20].mxu1 %vm221_vm1, %v1758_v44 }
  0x72   : > { %2961 = vmatpush3.bf16.msra.mxu1 %v3062_v47  ;;  %2968 = vmatprep.mubr.msk.bf16.mxu1 %vm3093_vm0, %v3092_v1 }
  0x73   : > { %2962 = vmatprep.subr.bf16.mxu1 %v3092_v1  ;;  %2955 = vmatpush3.bf16.msra.mxu0 %v3063_v50 }
  0x74   : > { %2972 = vmatprep.subr.bf16.mxu0 %v3092_v1 }
  0x76   : > { %2963 = vmatpush3.bf16.msra.mxu1 %v3064_v52  ;;  %2957 = vmatmul.mubr.msk.bf16.vlgmr.msra.gmra.mrb[24].mxu0 %vm221_vm1, %v1857_v55 }
  0x77   : > { %2964 = vmatprep.subr.bf16.mxu1 %v3092_v1  ;;  %2973 = vmatpush3.bf16.msra.mxu0 %v3067_v57 }
  0x78   : > { %2980 = vmatprep.mubr.msk.bf16.mxu0 %vm3093_vm0, %v3092_v1  ;;  %2974 = vmatprep.subr.bf16.mxu0 %v3092_v1 }
  0x7a   : > { %2965 = vmatpush3.bf16.msra.mxu1 %v3066_v59 }
  0x7b   : > { %2966 = vmatprep.subr.bf16.mxu1 %v3092_v1  ;;  %2975 = vmatpush3.bf16.msra.mxu0 %v3069_v63 }
  0x7c   : > { %2976 = vmatprep.subr.bf16.mxu0 %v3092_v1 }
  0x7e   : > { %2967 = vmatpush3.bf16.msra.mxu1 %v3068_v2 }
  0x7f   : > { %2984 = vmatprep.subr.bf16.mxu1 %v3092_v1  ;;  %2977 = vmatpush3.bf16.msra.mxu0 %v3070_v7 }
  0x80   : > { %2978 = vmatprep.subr.bf16.mxu0 %v3092_v1 }
  0x81   : > { %2969 = vmatmul.mubr.msk.bf16.vlgmr.msra.gmra.mrb[24].mxu1 %vm221_vm1, %v2017_v6 }
  0x82   : > { %2985 = vmatpush3.bf16.msra.mxu1 %v3071_v8  ;;  %2992 = vmatprep.mubr.msk.bf16.mxu1 %vm3093_vm0, %v3092_v1 }
  0x83   : > { %2986 = vmatprep.subr.bf16.mxu1 %v3092_v1  ;;  %2979 = vmatpush3.bf16.msra.mxu0 %v3072_v12 }
  0x86   : > { %2987 = vmatpush3.bf16.msra.mxu1 %v3073_v13  ;;  %2981 = vmatmul.mubr.msk.bf16.vlgmr.msra.gmra.mrb[28].mxu0 %vm221_vm1, %v2145_v15 }
  0x87   : > { %2988 = vmatprep.subr.bf16.mxu1 %v3092_v1 }
  0x8a   : > { %2989 = vmatpush3.bf16.msra.mxu1 %v3074_v17 }
  0x8b   : > { %2990 = vmatprep.subr.bf16.mxu1 %v3092_v1 }
  0x8e   : > { %2991 = vmatpush3.bf16.msra.mxu1 %v3075_v19 }
  0x91   : > { %2993 = vmatmul.mubr.msk.bf16.vlgmr.msra.gmra.mrb[28].mxu1 %vm221_vm1, %v2307_v20 }
  0xe9   : > { %v259_v21 = vpop.f32.mrb[0].mxu0 }
  0xea   : > { %265 = vst [vmem:[#allocation2] sm:$0xf] %v259_v21  ;;  %v2814_v22 = vpop.f32.mrb[1].mxu0 }
  0xeb   : > { %v262_v23 = vpop.f32.mrb[2].mxu0 }
  0xec   : > { %v2815_v24 = vpop.f32.mrb[3].mxu0 }
  0xf1   : > { %v438_v25 = vld [vmem:[#allocation2] sm:$0xf] }
  0xf4   : > { %v432_v26 = vpop.f32.mrb[0].mxu1 }
  0xf5   : > { %v439_v27 = vadd.f32 %v438_v25, %v432_v26  ;;  %v2826_v28 = vpop.f32.mrb[1].mxu1 }
  0xf6   : > { %v435_v29 = vpop.f32.mrb[2].mxu1 }
  0xf7   : > { %440 = vst [vmem:[#allocation2] sm:$0xf] %v439_v27  ;;  %v2827_v31 = vpop.f32.mrb[3].mxu1 }
  0xf9   : > { %v560_v32 = vpop.f32.mrb[4].mxu0 }
  0xfa   : > { %v2838_v34 = vpop.f32.mrb[5].mxu0 }
  0xfb   : > { %v563_v1 = vpop.f32.mrb[6].mxu0 }
  0xfc   : > { %v2839_v18 = vpop.f32.mrb[7].mxu0 }
  0xfe   : > { %v566_v33 = vld [vmem:[#allocation2] sm:$0xf] }
  0xff   : > { %v567_v35 = vadd.f32 %v566_v33, %v560_v32 }
 0x101   : > { %568 = vst [vmem:[#allocation2] sm:$0xf] %v567_v35 }
 0x104   : > { %v722_v36 = vpop.f32.mrb[4].mxu1 }
 0x105   : > { %v2850_v37 = vpop.f32.mrb[5].mxu1 }
 0x106   : > { %v725_v38 = vpop.f32.mrb[6].mxu1 }
 0x107   : > { %v2851_v39 = vpop.f32.mrb[7].mxu1 }
 0x108   : > { %v728_v40 = vld [vmem:[#allocation2] sm:$0xf] }
 0x109   : > { %v729_v41 = vadd.f32 %v728_v40, %v722_v36  ;;  %v821_v42 = vpop.f32.mrb[8].mxu0 }
 0x10a   : > { %v2862_v43 = vpop.f32.mrb[9].mxu0 }
 0x10b   : > { %730 = vst [vmem:[#allocation2] sm:$0xf] %v729_v41  ;;  %v824_v45 = vpop.f32.mrb[10].mxu0 }
 0x10c   : > { %v2863_v44 = vpop.f32.mrb[11].mxu0 }
 0x112   : > { %v827_v46 = vld [vmem:[#allocation2] sm:$0xf] }
 0x113   : > { %v828_v47 = vadd.f32 %v827_v46, %v821_v42 }
 0x114   : > { %v981_v48 = vpop.f32.mrb[8].mxu1 }
 0x115   : > { %829 = vst [vmem:[#allocation2] sm:$0xf] %v828_v47  ;;  %v2874_v49 = vpop.f32.mrb[9].mxu1 }
 0x116   : > { %v984_v50 = vpop.f32.mrb[10].mxu1 }
 0x117   : > { %v2875_v51 = vpop.f32.mrb[11].mxu1  ;;  %v2721_v50 = vld [vmem:[%s3582_s2] ss:$0 sm:$0xff] }
 0x119   : > { %v1109_v52 = vpop.f32.mrb[12].mxu0 }
 0x11a   : > { %v2886_v54 = vpop.f32.mrb[13].mxu0 }
 0x11b   : > { %v1112_v56 = vpop.f32.mrb[14].mxu0 }
 0x11c   : > { %v987_v53 = vld [vmem:[#allocation2] sm:$0xf]  ;;  %v2887_v57 = vpop.f32.mrb[15].mxu0 }
 0x11d   : > { %v988_v55 = vadd.f32 %v987_v53, %v981_v48 }
 0x11f   : > { %989 = vst [vmem:[#allocation2] sm:$0xf] %v988_v55 }
 0x124   : > { %v1271_v58 = vpop.f32.mrb[12].mxu1 }
 0x125   : > { %v2898_v59 = vpop.f32.mrb[13].mxu1 }
 0x126   : > { %v1115_v60 = vld [vmem:[#allocation2] sm:$0xf]  ;;  %v1274_v61 = vpop.f32.mrb[14].mxu1 }
 0x127   : > { %v1116_v62 = vadd.f32 %v1115_v60, %v1109_v52  ;;  %v2899_v63 = vpop.f32.mrb[15].mxu1 }
 0x129   : > { %1117 = vst [vmem:[#allocation2] sm:$0xf] %v1116_v62  ;;  %v1370_v0 = vpop.f32.mrb[16].mxu0 }
 0x12a   : > { %v2910_v2 = vpop.f32.mrb[17].mxu0 }
 0x12b   : > { %v1373_v3 = vpop.f32.mrb[18].mxu0 }
 0x12c   : > { %v2911_v4 = vpop.f32.mrb[19].mxu0 }
 0x130   : > { %v1277_v5 = vld [vmem:[#allocation2] sm:$0xf] }
 0x131   : > { %v1278_v6 = vadd.f32 %v1277_v5, %v1271_v58 }
 0x133   : > { %1279 = vst [vmem:[#allocation2] sm:$0xf] %v1278_v6 }
 0x134   : > { %v1530_v7 = vpop.f32.mrb[16].mxu1 }
 0x135   : > { %v2922_v8 = vpop.f32.mrb[17].mxu1 }
 0x136   : > { %v1533_v9 = vpop.f32.mrb[18].mxu1 }
 0x137   : > { %v2923_v10 = vpop.f32.mrb[19].mxu1 }
 0x139   : > { %v1658_v13 = vpop.f32.mrb[20].mxu0 }
 0x13a   : > { %v1376_v11 = vld [vmem:[#allocation2] sm:$0xf]  ;;  %v2934_v14 = vpop.f32.mrb[21].mxu0 }
 0x13b   : > { %v1377_v12 = vadd.f32 %v1376_v11, %v1370_v0  ;;  %v1661_v15 = vpop.f32.mrb[22].mxu0 }
 0x13c   : > { %v2935_v16 = vpop.f32.mrb[23].mxu0 }
 0x13d   : > { %1378 = vst [vmem:[#allocation2] sm:$0xf] %v1377_v12 }
 0x144   : > { %v1536_v17 = vld [vmem:[#allocation2] sm:$0xf]  ;;  %v1820_v30 = vpop.f32.mrb[20].mxu1 }
 0x145   : > { %v1537_v19 = vadd.f32 %v1536_v17, %v1530_v7  ;;  %v2946_v20 = vpop.f32.mrb[21].mxu1 }
 0x146   : > { %v1823_v21 = vpop.f32.mrb[22].mxu1 }
 0x147   : > { %1538 = vst [vmem:[#allocation2] sm:$0xf] %v1537_v19  ;;  %v2947_v22 = vpop.f32.mrb[23].mxu1 }
 0x149   : > { %v1919_v23 = vpop.f32.mrb[24].mxu0 }
 0x14a   : > { %v2958_v24 = vpop.f32.mrb[25].mxu0 }
 0x14b   : > { %v1922_v25 = vpop.f32.mrb[26].mxu0 }
 0x14c   : > { %v2959_v27 = vpop.f32.mrb[27].mxu0 }
 0x14e   : > { %v1664_v26 = vld [vmem:[#allocation2] sm:$0xf] }
 0x14f   : > { %v1665_v28 = vadd.f32 %v1664_v26, %v1658_v13 }
 0x151   : > { %1666 = vst [vmem:[#allocation2] sm:$0xf] %v1665_v28 }
 0x154   : > { %v2079_v29 = vpop.f32.mrb[24].mxu1 }
 0x155   : > { %v2970_v31 = vpop.f32.mrb[25].mxu1 }
 0x156   : > { %v2082_v32 = vpop.f32.mrb[26].mxu1 }
 0x157   : > { %v2971_v34 = vpop.f32.mrb[27].mxu1 }
 0x158   : > { %v1826_v1 = vld [vmem:[#allocation2] sm:$0xf] }
 0x159   : > { %v1827_v33 = vadd.f32 %v1826_v1, %v1820_v30  ;;  %v2207_v18 = vpop.f32.mrb[28].mxu0 }
 0x15a   : > { %v2982_v35 = vpop.f32.mrb[29].mxu0 }
 0x15b   : > { %1828 = vst [vmem:[#allocation2] sm:$0xf] %v1827_v33  ;;  %v2210_v36 = vpop.f32.mrb[30].mxu0 }
 0x15c   : > { %v2983_v37 = vpop.f32.mrb[31].mxu0 }
 0x162   : > { %v1925_v38 = vld [vmem:[#allocation2] sm:$0xf] }
 0x163   : > { %v1926_v39 = vadd.f32 %v1925_v38, %v1919_v23 }
 0x164   : > { %v2369_v40 = vpop.f32.mrb[28].mxu1 }
 0x165   : > { %1927 = vst [vmem:[#allocation2] sm:$0xf] %v1926_v39  ;;  %v2994_v41 = vpop.f32.mrb[29].mxu1 }
 0x166   : > { %v2372_v42 = vpop.f32.mrb[30].mxu1 }
 0x167   : > { %v2995_v43 = vpop.f32.mrb[31].mxu1 }
 0x16c   : > { %v2085_v45 = vld [vmem:[#allocation2] sm:$0xf] }
 0x16d   : > { %v2086_v44 = vadd.f32 %v2085_v45, %v2079_v29 }
 0x16f   : > { %2087 = vst [vmem:[#allocation2] sm:$0xf] %v2086_v44 }
 0x176   : > { %v2213_v46 = vld [vmem:[#allocation2] sm:$0xf] }
 0x177   : > { %v2214_v47 = vadd.f32 %v2213_v46, %v2207_v18 }
 0x179   : > { %2215 = vst [vmem:[#allocation2] sm:$0xf] %v2214_v47 }
 0x180   : > { %v2375_v48 = vld [vmem:[#allocation2] sm:$0xf] }
 0x181   : > { %v2376_v49 = vadd.f32 %v2375_v48, %v2369_v40 }
 0x183   : > { %2377 = vst [vmem:[#allocation2] sm:$0xf] %v2376_v49 }
 0x18a   : > { %v2378_v51 = vld [vmem:[#allocation2] sm:$0xf] }
 0x18b   : > { %v2386_v52 = vadd.f32 %v2721_v50, %v2378_v51 }
 0x18d   : > { %v2387_v53 = vand.u32 2147483647, %v2386_v52  ;;  %vm2393_vm0 = vcmp.ge.f32.partialorder %v2386_v52, 0.0 }
 0x18f   : > { %v2388_v54 = vsub.f32 0.0, %v2387_v53 }
 0x191   : > { %v2389_v55 = vmul.f32 1.442695, %v2388_v54 }
 0x193   : > { %3076 = vpow2.f32 %v2389_v55 }
 0x19d   : > { %v3077_v56 = vpop.eup %3076 }
 0x19e   : > { %v2391_v57 = vadd.f32 1.0, %v3077_v56 }
 0x1a0   : > { %3078 = vrcp.f32 %v2391_v57 }
 0x1aa   : > { %v3079_v58 = vpop.eup %3078 }
 0x1ab   : > { %v2394_v59 = vmul.f32 %v3079_v58, %v3077_v56 }
 0x1ad   : > { %v2395_v60 = vsel %vm2393_vm0, %v3079_v58, %v2394_v59 }
 0x1ae   : > { %2396 = vst [vmem:[%s168_s29] sm:$0xf] %v2395_v60 }
 0x1af PF: > { %s13_s12 = sadd.s32 1, %s3090_s12  }
 0x1b0   : > { %p10_p4 = scmp.ge.s32.totalorder %s13_s12, 4  }
 0x1b2   :  { %12 = sbr.rel (!%p10_p4) target bundleno = 1 (0x1), region = 80 }

</bundles_post_ra>
